<compile_context>
chip_gen: v6e
topology: v6e:2x2x1
jax: 0.10.0
libtpu: 0.0.40
codegen_flags: <defaults>
</compile_context>

<pallas_src>
import functools
import math

import jax
import jax.numpy as jnp
import numpy as np
from jax import lax
from jax.experimental import pallas as pl
from jax.experimental.pallas import tpu as pltpu


def _round_up(x, m):
    return (x + m - 1) // m * m


def _sublane(dtype):
    # minimum sublane multiple for the second-to-last block dim: f32 -> 8, bf16 -> 16.
    return 8 * (4 // jnp.dtype(dtype).itemsize)


def _flash_sdpa_kernel(q_ref, k_ref, v_ref, o_ref, m_sc, l_sc, acc_sc, *,
                       tk, lk_real, mask_k, compute_dtype):
    """One (tq, tk) tile of softmax(q @ k^T) @ v with an online-softmax accumulator.

    Grid = (B, cdiv(Lq,tq), cdiv(Lk,tk)). The Lk axis is last and 'arbitrary'; the
    output block index is independent of it, so m/l/acc scratch carries state
    across it.
    """
    kv = pl.program_id(2)
    is_last = kv == pl.num_programs(2) - 1

    @pl.when(kv == 0)
    def _():
        m_sc[...] = jnp.full_like(m_sc, -jnp.inf)
        l_sc[...] = jnp.zeros_like(l_sc)
        acc_sc[...] = jnp.zeros_like(acc_sc)

    # (q / s) @ k^T * s == q @ k^T : the PyTorch module's scale pair cancels, so
    # both VPU multiplies are elided (identical up to rounding).
    # bf16 operands + f32 accumulation run at full MXU rate on v5e/v6e/v7x
    # (f32 operands are emulated with multiple passes, ~3-6x slower).
    q_blk = q_ref[...].astype(compute_dtype)
    k_blk = k_ref[...].astype(compute_dtype)
    v_blk = v_ref[...].astype(compute_dtype)

    # NT contraction keeps D in lanes for both operands (no XLU transpose of k).
    s = lax.dot_general(q_blk, k_blk,
                        dimension_numbers=(((1,), (1,)), ((), ())),
                        preferred_element_type=jnp.float32)  # (tq, tk) f32

    if mask_k:
        # Lk % tk != 0: only the LAST kv block can hold out-of-range (garbage)
        # key columns / value rows. lax.cond keeps the iota+compare+select off the
        # VPU for every other kv step.
        def _mask_tail(ops):
            s_, v_ = ops
            col = kv * tk + lax.broadcasted_iota(jnp.int32, s_.shape, 1)
            row = kv * tk + lax.broadcasted_iota(jnp.int32, v_.shape, 0)
            # large-negative finite (not -inf) so no inf-inf NaN; exp underflows to 0.
            s_ = jnp.where(col < lk_real, s_, -1e30)
            # zero garbage V rows so zero-weight * garbage can never produce NaN/Inf.
            v_ = jnp.where(row < lk_real, v_, jnp.zeros_like(v_))
            return s_, v_

        s, v_blk = lax.cond(is_last, _mask_tail, lambda ops: ops, (s, v_blk))

    m_prev = m_sc[...]
    m_new = jnp.maximum(m_prev, jnp.max(s, axis=-1, keepdims=True))
    alpha = jnp.exp(m_prev - m_new)
    p = jnp.exp(s - m_new)  # f32 on the EUP
    # TODO(synk): on v6e/v7x p could be computed in bf16 and sum(p) folded into the
    # PV matmul via a ones column; kept in f32 here for v5e portability.
    l_sc[...] = alpha * l_sc[...] + jnp.sum(p, axis=-1, keepdims=True)
    acc_sc[...] = alpha * acc_sc[...] + jnp.dot(
        p.astype(compute_dtype), v_blk, preferred_element_type=jnp.float32)
    m_sc[...] = m_new

    @pl.when(is_last)
    def _():
        # Normalization folded into the finalize step: one reciprocal per query row
        # (EUP slot) + one Newton refinement instead of O(tq * Lk) divides.
        l = l_sc[...]
        inv = pl.reciprocal(l, approx=True)
        inv = inv * (2.0 - l * inv)  # Newton step -> ~exact 1/l
        # dropout_p == 0.0 -> identity.
        # TODO(synk): stateful-PRNG dropout (pltpu.prng_random_bits) if p > 0 is ever needed.
        o_ref[...] = (acc_sc[...] * inv).astype(o_ref.dtype)


def model_forward(q, k, v, dropout_p=0.0, *, tq_pref=512, tk_pref=256,
                  compute_dtype=jnp.bfloat16, kv_buffer_count=2):
    """Pallas/TPU equivalent of Model.forward.

    Notes:
      * the PyTorch forward_helper references a global `value`; the intended
        tensor is the `v` argument of forward, which is what we use here.
      * both arms of the module's scale_factor branch are sqrt(k.shape[2]) and
        the resulting (q / s) ... (* s) pair cancels exactly, so it is elided.
      * compute_dtype=jnp.bfloat16 (default) runs the MXU matmuls in bf16 with
        f32 accumulation; pass jnp.float32 for strict-f32 matmul numerics.
    """
    B, Lq, D = q.shape
    Bk, Lk, Dk = k.shape
    Bv, Lkv, Dv = v.shape
    assert Dk == D and Bk == B and Bv == B and Lkv == Lk
    assert dropout_p == 0.0  # dropout is a no-op at p=0 (the module default)
    compute_dtype = jnp.dtype(compute_dtype)

    out_dtype = q.dtype  # module semantics: output dtype follows the inputs

    # MXU-aligned tiles. tq=512 halves K/V re-streaming vs. 256; small sequences
    # fall back to lane-dense tk (multiple of 128) and dtype-legal tq sublanes.
    sub = _sublane(q.dtype)
    tq = tq_pref if Lq >= tq_pref else _round_up(Lq, sub)
    tk = tk_pref if Lk >= tk_pref else _round_up(Lk, 128)
    n_q_tiles = pl.cdiv(Lq, tq)
    n_k_tiles = pl.cdiv(Lk, tk)
    mask_k = (n_k_tiles * tk) != Lk
    # v7x note: keep B * n_q_tiles >= 2 if possible so both TensorCores get work;
    # with tq=512 this holds for any B >= 2 or Lq > 512.

    # K/V are re-streamed from HBM once per q tile; when the kernel computes in
    # bf16 anyway, pre-casting them halves that traffic (the one-off cast pass
    # only pays for itself when there is more than one q tile).
    if (compute_dtype == jnp.dtype(jnp.bfloat16) and k.dtype == jnp.float32
            and n_q_tiles > 1):
        k = k.astype(jnp.bfloat16)
        v = v.astype(jnp.bfloat16)

    kv_spec_kwargs = {}
    if kv_buffer_count > 2:
        # Optional sweep knob (review: try Buffered(3) if K/V DMA becomes exposed).
        kv_spec_kwargs["pipeline_mode"] = pl.Buffered(kv_buffer_count)

    kernel = functools.partial(_flash_sdpa_kernel, tk=tk, lk_real=Lk,
                               mask_k=mask_k, compute_dtype=compute_dtype)

    out = pl.pallas_call(
        kernel,
        out_shape=jax.ShapeDtypeStruct((B, Lq, Dv), out_dtype),
        grid_spec=pltpu.PrefetchScalarGridSpec(
            num_scalar_prefetch=0,
            # Grids via cdiv: ragged last tiles are handled in-kernel (key/value
            # masking) and by OOB-write dropping (queries) — no jnp.pad HBM copies.
            grid=(B, n_q_tiles, n_k_tiles),
            in_specs=[
                pl.BlockSpec((pl.Squeezed(), tq, D), lambda b, i, j: (b, i, 0)),
                pl.BlockSpec((pl.Squeezed(), tk, D), lambda b, i, j: (b, j, 0),
                             **kv_spec_kwargs),
                pl.BlockSpec((pl.Squeezed(), tk, Dv), lambda b, i, j: (b, j, 0),
                             **kv_spec_kwargs),
            ],
            out_specs=pl.BlockSpec(
                (pl.Squeezed(), tq, Dv), lambda b, i, j: (b, i, 0)),
            scratch_shapes=[
                pltpu.VMEM((tq, 1), jnp.float32),    # running row-max m
                pltpu.VMEM((tq, 1), jnp.float32),    # running denominator l
                pltpu.VMEM((tq, Dv), jnp.float32),   # output accumulator
            ],
        ),
        compiler_params=pltpu.CompilerParams(
            dimension_semantics=("parallel", "parallel", "arbitrary"),
            vmem_limit_bytes=48 * 1024 * 1024,
        ),
    )(q, k, v)
    return out


def _reference(q, k, v):
    s = math.sqrt(k.shape[2])
    qk = jnp.einsum("bqd,bkd->bqk", (q / s).astype(jnp.float32),
                    k.astype(jnp.float32)) * s
    p = jax.nn.softmax(qk, axis=-1)
    return jnp.einsum("bqk,bkd->bqd", p, v.astype(jnp.float32))


if __name__ == "__main__":
    key = jax.random.PRNGKey(0)
    kq, kk, kv_ = jax.random.split(key, 3)
    # Small shapes consistent with the module layout (B, L, D); Lq/Lk chosen so the
    # kernel exercises multi-tile Lk accumulation plus ragged (non-divisible) tiles.
    B, Lq, Lk, D, Dv = 2, 250, 320, 128, 128
    q = jax.random.normal(kq, (B, Lq, D), dtype=jnp.float32)
    k = jax.random.normal(kk, (B, Lk, D), dtype=jnp.float32)
    v = jax.random.normal(kv_, (B, Lk, Dv), dtype=jnp.float32)

    ref_f32 = jax.block_until_ready(_reference(q, k, v))
    # Reference matched to the kernel's bf16 MXU operand rounding. (The module's
    # cancelling scale leaves O(sqrt(D)) logits, so a raw f32 comparison of the
    # bf16 path would need a much looser tolerance near softmax ties.)
    qb = q.astype(jnp.bfloat16).astype(jnp.float32)
    kb = k.astype(jnp.bfloat16).astype(jnp.float32)
    vb = v.astype(jnp.bfloat16).astype(jnp.float32)
    ref_bf16 = jax.block_until_ready(_reference(qb, kb, vb))

    # 1) Default bf16-MXU path: single ragged q tile (250 in a 256 block) and a
    #    ragged last kv tile (320 over two 256 blocks) -> exercises OOB + masking.
    out = jax.block_until_ready(model_forward(q, k, v, dropout_p=0.0))
    np.testing.assert_allclose(np.asarray(out), np.asarray(ref_bf16),
                               rtol=1e-2, atol=1e-2)

    # 2) Multi-tile path: two q tiles (triggers wrapper-side bf16 K/V streaming)
    #    and three kv tiles with a masked ragged tail.
    out2 = jax.block_until_ready(
        model_forward(q, k, v, dropout_p=0.0, tq_pref=128, tk_pref=128))
    np.testing.assert_allclose(np.asarray(out2), np.asarray(ref_bf16),
                               rtol=1e-2, atol=1e-2)

    # 3) Strict-f32 matmul path: validates exact module semantics to 5e-3.
    out3 = jax.block_until_ready(
        model_forward(q, k, v, dropout_p=0.0, compute_dtype=jnp.float32))
    np.testing.assert_allclose(np.asarray(out3), np.asarray(ref_f32),
                               rtol=5e-3, atol=5e-3)

    print("KERNEL_OK")
</pallas_src>

<mosaic_0001>
module attributes {stable_mosaic.version = 11 : i64} {
  func.func @_flash_sdpa_kernel(%arg0: i32, %arg1: i32, %arg2: i32, %arg3: memref<1x256x128xf32, #tpu.memory_space<vmem>>, %arg4: memref<1x256x128xf32, #tpu.memory_space<vmem>>, %arg5: memref<1x256x128xf32, #tpu.memory_space<vmem>>, %arg6: memref<1x256x128xf32, #tpu.memory_space<vmem>>, %arg7: memref<256x1xf32, #tpu.memory_space<vmem>>, %arg8: memref<256x1xf32, #tpu.memory_space<vmem>>, %arg9: memref<256x128xf32, #tpu.memory_space<vmem>>) attributes {dimension_semantics = [#tpu.dimension_semantics<parallel>, #tpu.dimension_semantics<parallel>, #tpu.dimension_semantics<arbitrary>], iteration_bounds = array<i64: 2, 1, 2>, scalar_prefetch = 0 : i64, scratch_operands = 3 : i64, tpu.core_type = #tpu.core_type<tc>, window_params = [{transform_indices = @transform_0, window_bounds = array<i64: 1, 256, 128>}, {transform_indices = @transform_1, window_bounds = array<i64: 1, 256, 128>}, {transform_indices = @transform_2, window_bounds = array<i64: 1, 256, 128>}, {transform_indices = @transform_3, window_bounds = array<i64: 1, 256, 128>}]} {
    %c1_i32 = arith.constant 1 : i32
    %0 = arith.cmpi eq, %arg2, %c1_i32 : i32
    %c0_i32 = arith.constant 0 : i32
    %1 = arith.cmpi eq, %arg2, %c0_i32 : i32
    %2 = arith.extui %1 : i1 to i32
    %c0_i32_0 = arith.constant 0 : i32
    %3 = arith.cmpi ne, %2, %c0_i32_0 : i32
    scf.if %3 {
      %cst_26 = arith.constant 0xFF800000 : f32
      %42 = vector.broadcast %cst_26 : f32 to vector<256x1xf32>
      %c0_27 = arith.constant 0 : index
      %c0_28 = arith.constant 0 : index
      %43 = vector.load %arg7[%c0_27, %c0_28] : memref<256x1xf32, #tpu.memory_space<vmem>>, vector<256x1xf32>
      tpu.vector_store %arg7[%c0_27, %c0_28], %42 {strides = array<i32>} : memref<256x1xf32, #tpu.memory_space<vmem>>, vector<256x1xf32>,
      %cst_29 = arith.constant 0.000000e+00 : f32
      %44 = vector.broadcast %cst_29 : f32 to vector<256x1xf32>
      %c0_30 = arith.constant 0 : index
      %c0_31 = arith.constant 0 : index
      %45 = vector.load %arg8[%c0_30, %c0_31] : memref<256x1xf32, #tpu.memory_space<vmem>>, vector<256x1xf32>
      tpu.vector_store %arg8[%c0_30, %c0_31], %44 {strides = array<i32>} : memref<256x1xf32, #tpu.memory_space<vmem>>, vector<256x1xf32>,
      %cst_32 = arith.constant 0.000000e+00 : f32
      %46 = vector.broadcast %cst_32 : f32 to vector<256x128xf32>
      %c0_33 = arith.constant 0 : index
      %c0_34 = arith.constant 0 : index
      %47 = vector.load %arg9[%c0_33, %c0_34] : memref<256x128xf32, #tpu.memory_space<vmem>>, vector<256x128xf32>
      tpu.vector_store %arg9[%c0_33, %c0_34], %46 {strides = array<i32>} : memref<256x128xf32, #tpu.memory_space<vmem>>, vector<256x128xf32>,
    } else {
    }
    %c0 = arith.constant 0 : index
    %c0_1 = arith.constant 0 : index
    %c0_2 = arith.constant 0 : index
    %4 = vector.load %arg3[%c0, %c0_1, %c0_2] : memref<1x256x128xf32, #tpu.memory_space<vmem>>, vector<1x256x128xf32>
    %5 = vector.shape_cast %4 : vector<1x256x128xf32> to vector<256x128xf32>
    %6 = arith.truncf %5 : vector<256x128xf32> to vector<256x128xbf16>
    %c0_3 = arith.constant 0 : index
    %c0_4 = arith.constant 0 : index
    %c0_5 = arith.constant 0 : index
    %7 = vector.load %arg4[%c0_3, %c0_4, %c0_5] : memref<1x256x128xf32, #tpu.memory_space<vmem>>, vector<1x256x128xf32>
    %8 = vector.shape_cast %7 : vector<1x256x128xf32> to vector<256x128xf32>
    %9 = arith.truncf %8 : vector<256x128xf32> to vector<256x128xbf16>
    %c0_6 = arith.constant 0 : index
    %c0_7 = arith.constant 0 : index
    %c0_8 = arith.constant 0 : index
    %10 = vector.load %arg5[%c0_6, %c0_7, %c0_8] : memref<1x256x128xf32, #tpu.memory_space<vmem>>, vector<1x256x128xf32>
    %11 = vector.shape_cast %10 : vector<1x256x128xf32> to vector<256x128xf32>
    %12 = arith.truncf %11 : vector<256x128xf32> to vector<256x128xbf16>
    %cst = arith.constant dense<0.000000e+00> : vector<256x256xf32>
    %13 = tpu.matmul %6, %9, %cst {dimension_numbers = #tpu.dot_dimension_numbers<[1], [1], [0], [0], [0, 0, 1, 0], [], []>} : vector<256x128xbf16>, vector<256x128xbf16>, vector<256x256xf32> -> vector<256x256xf32>
    %14 = arith.extui %0 : i1 to i32
    %c0_i32_9 = arith.constant 0 : i32
    %15 = arith.cmpi ne, %14, %c0_i32_9 : i32
    %16:2 = scf.if %15 -> (vector<256x256xf32>, vector<256x128xbf16>) {
      %c256_i32 = arith.constant 256 : i32
      %42 = arith.muli %arg2, %c256_i32 : i32
      %43 = tpu.iota {dimensions = array<i32: 1>} : vector<256x256xi32>
      %44 = vector.broadcast %42 : i32 to vector<256x256xi32>
      %45 = arith.addi %44, %43 : vector<256x256xi32>
      %c256_i32_26 = arith.constant 256 : i32
      %46 = arith.muli %arg2, %c256_i32_26 : i32
      %47 = tpu.iota {dimensions = array<i32: 0>} : vector<256x128xi32>
      %48 = vector.broadcast %46 : i32 to vector<256x128xi32>
      %49 = arith.addi %48, %47 : vector<256x128xi32>
      %c320_i32 = arith.constant 320 : i32
      %50 = vector.broadcast %c320_i32 : i32 to vector<256x256xi32>
      %51 = arith.cmpi slt, %45, %50 : vector<256x256xi32>
      %cst_27 = arith.constant -1.000000e+30 : f32
      %52 = vector.broadcast %cst_27 : f32 to vector<256x256xf32>
      %53 = arith.select %51, %13, %52 : vector<256x256xi1>, vector<256x256xf32>
      %c320_i32_28 = arith.constant 320 : i32
      %54 = vector.broadcast %c320_i32_28 : i32 to vector<256x128xi32>
      %55 = arith.cmpi slt, %49, %54 : vector<256x128xi32>
      %cst_29 = arith.constant 0.000000e+00 : bf16
      %56 = vector.broadcast %cst_29 : bf16 to vector<256x128xbf16>
      %57 = arith.select %55, %12, %56 : vector<256x128xi1>, vector<256x128xbf16>
      scf.yield %53, %57 : vector<256x256xf32>, vector<256x128xbf16>
    } else {
      scf.yield %13, %12 : vector<256x256xf32>, vector<256x128xbf16>
    }
    %c0_10 = arith.constant 0 : index
    %c0_11 = arith.constant 0 : index
    %17 = vector.load %arg7[%c0_10, %c0_11] : memref<256x1xf32, #tpu.memory_space<vmem>>, vector<256x1xf32>
    %cst_12 = arith.constant dense<0xFF800000> : vector<256xf32>
    %18 = vector.multi_reduction <maximumf>, %16#0, %cst_12 [1] : vector<256x256xf32> to vector<256xf32>
    %19 = vector.shape_cast %18 : vector<256xf32> to vector<256x1xf32>
    %20 = arith.maximumf %17, %19 : vector<256x1xf32>
    %21 = arith.subf %17, %20 : vector<256x1xf32>
    %22 = math.exp %21 : vector<256x1xf32>
    %23 = vector.broadcast %20 : vector<256x1xf32> to vector<256x256xf32>
    %24 = arith.subf %16#0, %23 : vector<256x256xf32>
    %25 = math.exp %24 : vector<256x256xf32>
    %c0_13 = arith.constant 0 : index
    %c0_14 = arith.constant 0 : index
    %26 = vector.load %arg8[%c0_13, %c0_14] : memref<256x1xf32, #tpu.memory_space<vmem>>, vector<256x1xf32>
    %27 = arith.mulf %22, %26 : vector<256x1xf32>
    %cst_15 = arith.constant dense<0.000000e+00> : vector<256xf32>
    %28 = vector.multi_reduction <add>, %25, %cst_15 [1] : vector<256x256xf32> to vector<256xf32>
    %29 = vector.shape_cast %28 : vector<256xf32> to vector<256x1xf32>
    %30 = arith.addf %27, %29 : vector<256x1xf32>
    %c0_16 = arith.constant 0 : index
    %c0_17 = arith.constant 0 : index
    %31 = vector.load %arg8[%c0_16, %c0_17] : memref<256x1xf32, #tpu.memory_space<vmem>>, vector<256x1xf32>
    tpu.vector_store %arg8[%c0_16, %c0_17], %30 {strides = array<i32>} : memref<256x1xf32, #tpu.memory_space<vmem>>, vector<256x1xf32>,
    %c0_18 = arith.constant 0 : index
    %c0_19 = arith.constant 0 : index
    %32 = vector.load %arg9[%c0_18, %c0_19] : memref<256x128xf32, #tpu.memory_space<vmem>>, vector<256x128xf32>
    %33 = vector.broadcast %22 : vector<256x1xf32> to vector<256x128xf32>
    %34 = arith.mulf %33, %32 : vector<256x128xf32>
    %35 = arith.truncf %25 : vector<256x256xf32> to vector<256x256xbf16>
    %cst_20 = arith.constant dense<0.000000e+00> : vector<256x128xf32>
    %36 = tpu.matmul %35, %16#1, %cst_20 {dimension_numbers = #tpu.dot_dimension_numbers<[1], [0], [0], [1], [0, 0, 1, 1], [], []>} : vector<256x256xbf16>, vector<256x128xbf16>, vector<256x128xf32> -> vector<256x128xf32>
    %37 = arith.addf %34, %36 : vector<256x128xf32>
    %c0_21 = arith.constant 0 : index
    %c0_22 = arith.constant 0 : index
    %38 = vector.load %arg9[%c0_21, %c0_22] : memref<256x128xf32, #tpu.memory_space<vmem>>, vector<256x128xf32>
    tpu.vector_store %arg9[%c0_21, %c0_22], %37 {strides = array<i32>} : memref<256x128xf32, #tpu.memory_space<vmem>>, vector<256x128xf32>,
    %c0_23 = arith.constant 0 : index
    %c0_24 = arith.constant 0 : index
    %39 = vector.load %arg7[%c0_23, %c0_24] : memref<256x1xf32, #tpu.memory_space<vmem>>, vector<256x1xf32>
    tpu.vector_store %arg7[%c0_23, %c0_24], %20 {strides = array<i32>} : memref<256x1xf32, #tpu.memory_space<vmem>>, vector<256x1xf32>,
    %40 = arith.extui %0 : i1 to i32
    %c0_i32_25 = arith.constant 0 : i32
    %41 = arith.cmpi ne, %40, %c0_i32_25 : i32
    scf.if %41 {
      %c0_26 = arith.constant 0 : index
      %c0_27 = arith.constant 0 : index
      %42 = vector.load %arg8[%c0_26, %c0_27] : memref<256x1xf32, #tpu.memory_space<vmem>>, vector<256x1xf32>
      %43 = tpu.reciprocal %42 {approx = true} : vector<256x1xf32> -> vector<256x1xf32>
      %44 = arith.mulf %42, %43 : vector<256x1xf32>
      %cst_28 = arith.constant 2.000000e+00 : f32
      %45 = vector.broadcast %cst_28 : f32 to vector<256x1xf32>
      %46 = arith.subf %45, %44 : vector<256x1xf32>
      %47 = arith.mulf %43, %46 : vector<256x1xf32>
      %c0_29 = arith.constant 0 : index
      %c0_30 = arith.constant 0 : index
      %48 = vector.load %arg9[%c0_29, %c0_30] : memref<256x128xf32, #tpu.memory_space<vmem>>, vector<256x128xf32>
      %49 = vector.broadcast %47 : vector<256x1xf32> to vector<256x128xf32>
      %50 = arith.mulf %48, %49 : vector<256x128xf32>
      %c0_31 = arith.constant 0 : index
      %c0_32 = arith.constant 0 : index
      %c0_33 = arith.constant 0 : index
      %51 = vector.load %arg6[%c0_31, %c0_32, %c0_33] : memref<1x256x128xf32, #tpu.memory_space<vmem>>, vector<1x256x128xf32>
      %52 = vector.shape_cast %51 : vector<1x256x128xf32> to vector<256x128xf32>
      %53 = vector.shape_cast %50 : vector<256x128xf32> to vector<1x256x128xf32>
      tpu.vector_store %arg6[%c0_31, %c0_32, %c0_33], %53 {strides = array<i32>} : memref<1x256x128xf32, #tpu.memory_space<vmem>>, vector<1x256x128xf32>,
    } else {
    }
    return
  }
  func.func @transform_0(%arg0: i32, %arg1: i32, %arg2: i32) -> (i32, i32, i32) {
    %c0_i32 = arith.constant 0 : i32
    %c0_i32_0 = arith.constant 0 : i32
    return %arg0, %arg1, %c0_i32 : i32, i32, i32
  }
  func.func @transform_1(%arg0: i32, %arg1: i32, %arg2: i32) -> (i32, i32, i32) {
    %c0_i32 = arith.constant 0 : i32
    %c0_i32_0 = arith.constant 0 : i32
    return %arg0, %arg2, %c0_i32 : i32, i32, i32
  }
  func.func @transform_2(%arg0: i32, %arg1: i32, %arg2: i32) -> (i32, i32, i32) {
    %c0_i32 = arith.constant 0 : i32
    %c0_i32_0 = arith.constant 0 : i32
    return %arg0, %arg2, %c0_i32 : i32, i32, i32
  }
  func.func @transform_3(%arg0: i32, %arg1: i32, %arg2: i32) -> (i32, i32, i32) {
    %c0_i32 = arith.constant 0 : i32
    %c0_i32_0 = arith.constant 0 : i32
    return %arg0, %arg1, %c0_i32 : i32, i32, i32
  }
}

</mosaic_0001>

<bundles_post_ra>
// kernel: tpu_custom_call.1
= control target key start
LH: loop header
LB: loop body
LE: loop exit
PB: predicated region body
PF: predicated region fallthrough
CT: control target
= control target key end

     0   :  { %8 = vsyncpa [#allocation6], 0  ;;  %s8597_s0 = inlined_call_operand.vmem [shape: f32[2,250,128], index: 0, kind: input, shape index: {}]   ;;  %s8598_s1 = inlined_call_operand.vmem [shape: f32[2,320,128], index: 1, kind: input, shape index: {}]   ;;  %s8599_s2 = inlined_call_operand.hbm [shape: f32[2,320,128], index: 2, kind: input, shape index: {}]   ;;  %s8600_s3 = inlined_call_operand.vmem [shape: f32[2,250,128], index: 3, kind: output, shape index: {}]  }
   0x1   :  { %10 = vsyncpa [#allocation6 + $0x1], 0  ;;  %s5413_s12 = smov 0   ;;  %s5415_s13 = smov 0  }
   0x2   :  { %s5417_s14 = smov 0   ;;  %s5419_s15 = smov 0  }
   0x3   :  { %s5421_s16 = smov 0   ;;  %s5423_s17 = smov 0  }
   0x4   :  { %s5425_s18 = smov 0   ;;  %s5427_s19 = smov 0  }
   0x5 LB: > { %s28_s20 = sadd.s32 1, %s5055_s17  ;;  %s35_s21 = sadd.s32 1, %s5059_s18  ;;  %s5063_s19 = sphi %s5427_s19, %s16_s19   ;;  %s5059_s18 = sphi %s5425_s18, %s9411_s18   ;;  %s5055_s17 = sphi %s5423_s17, %s9410_s17   ;;  %s5051_s16 = sphi %s5421_s16, %s9409_s16   ;;  %s5047_s15 = sphi %s5419_s15, %s9408_s15   ;;  %s5043_s14 = sphi %s5417_s14, %s9407_s14   ;;  %s5039_s13 = sphi %s5415_s13, %s9406_s13   ;;  %s5035_s12 = sphi %s5413_s12, %s9405_s12  }
   0x6   : > { %p29_p0 = scmp.ge.s32.totalorder %s28_s20, 2  ;;  %s3152_s22 = sadd.s32 4294967295, %s5063_s19  }
   0x7   : > { %p107_p1 = scmp.ne.s32.totalorder %s5043_s14, %s5039_s13  ;;  %p108_p2 = scmp.eq.s32.totalorder %s5063_s19, 0 }
   0x8   : > { %s9413_s20 = smov (%p29_p0, %s28_s20), 0  ;;  %s9415_s21 = smov (!%p29_p0, %s35_s21), %s5059_s18 }
   0x9   : > { %s96_s23 = ssub.s32 %s5055_s17, %s9413_s20  ;;  %p37_p3 = scmp.ge.s32.totalorder %s9415_s21, 2 }
   0xa   : > { %p113_p4 = scmp.ne.s32.totalorder %s5039_s13, %s5035_s12  ;;  %p109_p5 = por %p108_p2, %p107_p1 }
   0xb   : > { %p114_p6 = scmp.eq.s32.totalorder %s3152_s22, 0  ;;  %s9417_s21 = smov (%p37_p3, %s9415_s21), 0 }
   0xc   : > { %s95_s25 = ssub.s32 %s5059_s18, %s9417_s21  ;;  %s100_s27 = sadd.s32 1, %s5043_s14 }
   0xd   : > { %p5465_p7 = por %p114_p6, %p113_p4  ;;  %s97_s26 = sor.u32 %s96_s23, %s95_s25 }
   0xe   : > { %p98_p8 = scmp.eq.s32.totalorder %s97_s26, 0  ;;  %p3155_p9 = scmp.ge.s32.totalorder %s5063_s19, 4 }
  0x10   : > { %s5473_s28 = scalar_select %p98_p8, %s5043_s14, %s100_s27  }
  0x11   : > { %161 = sbr.rel (%p3155_p9) target bundleno = 57 (0x39), region = 16 }
  0x16   : > { %198 = sbr.rel (!%p109_p5) target bundleno = 57 (0x39), region = 28  ;;  %s199_s29 = sand.u32 (%p109_p5), 1, %s5043_s14  }
  0x17   : > { %s3157_s30 = sshll.u32 (%p109_p5), %s5055_s17, 5  ;;  %s3156_s4 = sshll.u32 (%p109_p5), %s199_s29, 8 }
  0x18   : > { %s205_s5 = ssub.s32 (%p109_p5), 40, %s3157_s30  ;;  %s5481_s8 = scalar_lea.sflag (%p109_p5), [#allocation6], %s199_s29 }
  0x19   : > { %p206_p10 = scmp.lt.s32.totalorder (%p109_p5), %s205_s5, 32  ;;  %s203_s9 = scalar_lea.vmem (%p109_p5), [#allocation5], %s3156_s4 }
  0x1b   : > { %s9419_s5 = smov (!%p206_p10, %s205_s5), 32 }
  0x1c   : > { %s5478_s6 = sshll.u32 %s9419_s5, 7 }
  0x1d   : > { %s210_s7 = ssub.s32 4096, %s5478_s6 }
  0x1e   : > { %211 = vsyncadd %s5481_s8, %s210_s7  ;;  %p3159_p11 = scmp.ne.s32.totalorder %s5478_s6, 0  ;;  %s3355_s10 = smul.u32 40, %s5059_s18 }
  0x1f   : > { %s218_s11 = sshll.u32 %s203_s9, 4  ;;  %s4655_s5 = scalar_lea.hbm %s8599_s2, 10240  ;;  %s5486_s11 = int_to_ptr.vmem [resolvable:$true] %s218_s11 }
  0x20   : > { %s214_s12 = sadd.s32 %s3355_s10, %s3157_s30 }
  0x21   : > { %s3160_s22 = sshll.u32 %s214_s12, 7 }
  0x22   : > { %s5491_s26 = scalar_lea.hbm %s8599_s2, %s3160_s22 }
  0x23   : > { %s4651_s27 = scalar_lea.hbm %s5491_s26, %s5478_s6 }
  0x24   : > { %p4652_p12 = scmp.ne.s32.totalorder %s5491_s26, %s4651_s27  ;;  %p4657_p1 = scmp.lt.s32.totalorder %s4655_s5, %s4651_s27 }
  0x26   : > { %p4653_p13 = pnand %p4652_p12, %p3159_p11 }
  0x28   : > { %p4654_p0 = pneg %p4653_p13 }
  0x2a   : > { %p4659_p2 = pnand %p4657_p1, %p4654_p0 }
  0x2c   : > { %4662 = shalt.err (!%p4659_p2)
}
  0x2d   : > { %s4663_s30 = scalar_lea.vmem %s5486_s11, %s5478_s6  ;;  %s5385_s7 = smov [#allocation5]  }
  0x2e   : > { %p4664_p3 = scmp.ne.s32.totalorder %s5486_s11, %s4663_s30  ;;  %s4667_s9 = sshll.u32 %s5385_s7, 4  ;;  %s4668_s9 = int_to_ptr.vmem [resolvable:$false] %s4667_s9 }
  0x2f   : > { %s4669_s10 = scalar_lea.vmem %s4668_s9, 8192  ;;  %p4670_p6 = scmp.lt.s32.totalorder %s5486_s11, %s4668_s9 }
  0x30   : > { %p4665_p4 = pnand %p4664_p3, %p3159_p11  ;;  %p4671_p8 = scmp.lt.s32.totalorder %s4669_s10, %s4663_s30 }
  0x32   : > { %p4666_p5 = pneg %p4665_p4  ;;  %p4672_p9 = por %p4671_p8, %p4670_p6 }
  0x34   : > { %p4673_p10 = pnand %p4672_p9, %p4666_p5 }
  0x36   : > { %4676 = shalt.err (!%p4673_p10)
}
  0x37   : > { %s5386_s12 = smov 128   ;;  %s5387_s22 = smov 8  }
  0x38   : > { %224 = dma.hbm_to_vmem [thread:$0]  (%p3159_p11), %s5491_s26, %s5478_s6, %s5486_s11, %s5481_s8, %s5386_s12, %s5386_s12, %s5387_s22  }
  0x39 PF: > { %p3163_p12 = scmp.ge.s32.totalorder %s5063_s19, 1  ;;  %p226_p13 = scmp.lt.s32.totalorder %s5063_s19, 5 }
  0x3b   : > { %p227_p0 = pnand %p3163_p12, %p226_p13 }
  0x3d   : > { %230 = sbr.rel (%p227_p0) target bundleno = 1553 (0x611), region = 32 }
  0x42   : > { %s232_s23 = sand.u32 1, %s5039_s13  }
  0x43   : > { %s3164_s25 = sshll.u32 %s232_s23, 8  ;;  %s233_s27 = scalar_lea.sflag [#allocation6], %s232_s23 }
  0x44   : > { %s5516_s29 = scalar_lea.vmem [#allocation5], %s3164_s25 }
  0x45   : > { %5030 = dma.done.wait (%p5465_p7), %s233_s27, 4096  }
  0x46   : > { %5032 = vsyncadd (%p5465_p7), %s233_s27, 4294963200  ;;  %p286_p11 = scmp.lt.s32.totalorder %s5051_s16, 1  ;;  %s3167_s6 = sshll.u32 %s5047_s15, 5 }
  0x47   : > { %p302_p1 = scmp.lt.s32.totalorder %s3167_s6, 39  ;;  %p3171_p7 = scmp.ne.s32.totalorder %s5047_s15, 0 }
  0x48   : > { %s9421_s16 = smov (!%p286_p11, %s5051_s16), 1 }
  0x49   : > { %s9423_s6 = smov (!%p302_p1, %s3167_s6), 39  ;;  %s3193_s8 = sshll.u32 %s9421_s16, 8 }
  0x4a   : > { %s3356_s11 = smul.u32 40, %s9421_s16  ;;  %s5528_s5 = scalar_lea.vmem %s8597_s0, %s3193_s8 }
  0x4b   : > { %s5533_s24 = scalar_lea.vmem %s8600_s3, %s3193_s8  ;;  %335 = sbr.rel (%p3171_p7) target bundleno = 129 (0x81), region = 40 }
  0x4c   : > { %s305_s9 = sadd.s32 %s3356_s11, %s9423_s6 }
  0x4d   : > { %s3168_s10 = sshll.u32 %s305_s9, 3 }
  0x4e   : > { %s5538_s23 = scalar_lea.vmem %s8598_s1, %s3168_s10 }
  0x50   : > { %vm336_vm0 = vcmask 7168   ;;  %v5388_v0 = vmov -inf   ;;  %v5389_v1 = vmov 0.0  }
  0x51   : > { %337 = vst.msk [vmem:[#allocation2] sm:$0xff] %vm336_vm0, %v5388_v0  ;;  %338 = vst.msk [vmem:[#allocation2 + $0x8] sm:$0xff] %vm336_vm0, %v5388_v0 }
  0x52   : > { %339 = vst.msk [vmem:[#allocation2 + $0x10] sm:$0xff] %vm336_vm0, %v5388_v0  ;;  %340 = vst.msk [vmem:[#allocation2 + $0x18] sm:$0xff] %vm336_vm0, %v5388_v0 }
  0x53   : > { %341 = vst.msk [vmem:[#allocation2 + $0x20] sm:$0xff] %vm336_vm0, %v5388_v0  ;;  %342 = vst.msk [vmem:[#allocation2 + $0x28] sm:$0xff] %vm336_vm0, %v5388_v0 }
  0x54   : > { %343 = vst.msk [vmem:[#allocation2 + $0x30] sm:$0xff] %vm336_vm0, %v5388_v0  ;;  %344 = vst.msk [vmem:[#allocation2 + $0x38] sm:$0xff] %vm336_vm0, %v5388_v0 }
  0x55   : > { %345 = vst.msk [vmem:[#allocation2 + $0x40] sm:$0xff] %vm336_vm0, %v5388_v0  ;;  %346 = vst.msk [vmem:[#allocation2 + $0x48] sm:$0xff] %vm336_vm0, %v5388_v0 }
  0x56   : > { %347 = vst.msk [vmem:[#allocation2 + $0x50] sm:$0xff] %vm336_vm0, %v5388_v0  ;;  %348 = vst.msk [vmem:[#allocation2 + $0x58] sm:$0xff] %vm336_vm0, %v5388_v0 }
  0x57   : > { %349 = vst.msk [vmem:[#allocation2 + $0x60] sm:$0xff] %vm336_vm0, %v5388_v0  ;;  %350 = vst.msk [vmem:[#allocation2 + $0x68] sm:$0xff] %vm336_vm0, %v5388_v0 }
  0x58   : > { %351 = vst.msk [vmem:[#allocation2 + $0x70] sm:$0xff] %vm336_vm0, %v5388_v0  ;;  %352 = vst.msk [vmem:[#allocation2 + $0x78] sm:$0xff] %vm336_vm0, %v5388_v0 }
  0x59   : > { %353 = vst.msk [vmem:[#allocation2 + $0x80] sm:$0xff] %vm336_vm0, %v5388_v0  ;;  %354 = vst.msk [vmem:[#allocation2 + $0x88] sm:$0xff] %vm336_vm0, %v5388_v0 }
  0x5a   : > { %355 = vst.msk [vmem:[#allocation2 + $0x90] sm:$0xff] %vm336_vm0, %v5388_v0  ;;  %356 = vst.msk [vmem:[#allocation2 + $0x98] sm:$0xff] %vm336_vm0, %v5388_v0 }
  0x5b   : > { %357 = vst.msk [vmem:[#allocation2 + $0xa0] sm:$0xff] %vm336_vm0, %v5388_v0  ;;  %358 = vst.msk [vmem:[#allocation2 + $0xa8] sm:$0xff] %vm336_vm0, %v5388_v0 }
  0x5c   : > { %359 = vst.msk [vmem:[#allocation2 + $0xb0] sm:$0xff] %vm336_vm0, %v5388_v0  ;;  %360 = vst.msk [vmem:[#allocation2 + $0xb8] sm:$0xff] %vm336_vm0, %v5388_v0 }
  0x5d   : > { %361 = vst.msk [vmem:[#allocation2 + $0xc0] sm:$0xff] %vm336_vm0, %v5388_v0  ;;  %362 = vst.msk [vmem:[#allocation2 + $0xc8] sm:$0xff] %vm336_vm0, %v5388_v0 }
  0x5e   : > { %363 = vst.msk [vmem:[#allocation2 + $0xd0] sm:$0xff] %vm336_vm0, %v5388_v0  ;;  %364 = vst.msk [vmem:[#allocation2 + $0xd8] sm:$0xff] %vm336_vm0, %v5388_v0 }
  0x5f   : > { %365 = vst.msk [vmem:[#allocation2 + $0xe0] sm:$0xff] %vm336_vm0, %v5388_v0  ;;  %366 = vst.msk [vmem:[#allocation2 + $0xe8] sm:$0xff] %vm336_vm0, %v5388_v0 }
  0x60   : > { %367 = vst.msk [vmem:[#allocation2 + $0xf0] sm:$0xff] %vm336_vm0, %v5388_v0  ;;  %368 = vst.msk [vmem:[#allocation2 + $0xf8] sm:$0xff] %vm336_vm0, %v5388_v0 }
  0x61   : > { %369 = vst.msk [vmem:[#allocation3] sm:$0xff] %vm336_vm0, %v5389_v1  ;;  %370 = vst.msk [vmem:[#allocation3 + $0x8] sm:$0xff] %vm336_vm0, %v5389_v1 }
  0x62   : > { %371 = vst.msk [vmem:[#allocation3 + $0x10] sm:$0xff] %vm336_vm0, %v5389_v1  ;;  %372 = vst.msk [vmem:[#allocation3 + $0x18] sm:$0xff] %vm336_vm0, %v5389_v1 }
  0x63   : > { %373 = vst.msk [vmem:[#allocation3 + $0x20] sm:$0xff] %vm336_vm0, %v5389_v1  ;;  %374 = vst.msk [vmem:[#allocation3 + $0x28] sm:$0xff] %vm336_vm0, %v5389_v1 }
  0x64   : > { %375 = vst.msk [vmem:[#allocation3 + $0x30] sm:$0xff] %vm336_vm0, %v5389_v1  ;;  %376 = vst.msk [vmem:[#allocation3 + $0x38] sm:$0xff] %vm336_vm0, %v5389_v1 }
  0x65   : > { %377 = vst.msk [vmem:[#allocation3 + $0x40] sm:$0xff] %vm336_vm0, %v5389_v1  ;;  %378 = vst.msk [vmem:[#allocation3 + $0x48] sm:$0xff] %vm336_vm0, %v5389_v1 }
  0x66   : > { %379 = vst.msk [vmem:[#allocation3 + $0x50] sm:$0xff] %vm336_vm0, %v5389_v1  ;;  %380 = vst.msk [vmem:[#allocation3 + $0x58] sm:$0xff] %vm336_vm0, %v5389_v1 }
  0x67   : > { %381 = vst.msk [vmem:[#allocation3 + $0x60] sm:$0xff] %vm336_vm0, %v5389_v1  ;;  %382 = vst.msk [vmem:[#allocation3 + $0x68] sm:$0xff] %vm336_vm0, %v5389_v1 }
  0x68   : > { %383 = vst.msk [vmem:[#allocation3 + $0x70] sm:$0xff] %vm336_vm0, %v5389_v1  ;;  %384 = vst.msk [vmem:[#allocation3 + $0x78] sm:$0xff] %vm336_vm0, %v5389_v1 }
  0x69   : > { %385 = vst.msk [vmem:[#allocation3 + $0x80] sm:$0xff] %vm336_vm0, %v5389_v1  ;;  %386 = vst.msk [vmem:[#allocation3 + $0x88] sm:$0xff] %vm336_vm0, %v5389_v1 }
  0x6a   : > { %387 = vst.msk [vmem:[#allocation3 + $0x90] sm:$0xff] %vm336_vm0, %v5389_v1  ;;  %388 = vst.msk [vmem:[#allocation3 + $0x98] sm:$0xff] %vm336_vm0, %v5389_v1 }
  0x6b   : > { %389 = vst.msk [vmem:[#allocation3 + $0xa0] sm:$0xff] %vm336_vm0, %v5389_v1  ;;  %390 = vst.msk [vmem:[#allocation3 + $0xa8] sm:$0xff] %vm336_vm0, %v5389_v1 }
  0x6c   : > { %391 = vst.msk [vmem:[#allocation3 + $0xb0] sm:$0xff] %vm336_vm0, %v5389_v1  ;;  %392 = vst.msk [vmem:[#allocation3 + $0xb8] sm:$0xff] %vm336_vm0, %v5389_v1 }
  0x6d   : > { %393 = vst.msk [vmem:[#allocation3 + $0xc0] sm:$0xff] %vm336_vm0, %v5389_v1  ;;  %394 = vst.msk [vmem:[#allocation3 + $0xc8] sm:$0xff] %vm336_vm0, %v5389_v1 }
  0x6e   : > { %395 = vst.msk [vmem:[#allocation3 + $0xd0] sm:$0xff] %vm336_vm0, %v5389_v1  ;;  %396 = vst.msk [vmem:[#allocation3 + $0xd8] sm:$0xff] %vm336_vm0, %v5389_v1 }
  0x6f   : > { %397 = vst.msk [vmem:[#allocation3 + $0xe0] sm:$0xff] %vm336_vm0, %v5389_v1  ;;  %398 = vst.msk [vmem:[#allocation3 + $0xe8] sm:$0xff] %vm336_vm0, %v5389_v1 }
  0x70   : > { %399 = vst.msk [vmem:[#allocation3 + $0xf0] sm:$0xff] %vm336_vm0, %v5389_v1  ;;  %400 = vst.msk [vmem:[#allocation3 + $0xf8] sm:$0xff] %vm336_vm0, %v5389_v1 }
  0x71   : > { %401 = vst [vmem:[#allocation4 + $0xb0] sm:$0xff] %v5389_v1  ;;  %402 = vst [vmem:[#allocation4] sm:$0xff] %v5389_v1 }
  0x72   : > { %403 = vst [vmem:[#allocation4 + $0xd8] sm:$0xff] %v5389_v1  ;;  %404 = vst [vmem:[#allocation4 + $0x18] sm:$0xff] %v5389_v1 }
  0x73   : > { %405 = vst [vmem:[#allocation4 + $0x50] sm:$0xff] %v5389_v1  ;;  %406 = vst [vmem:[#allocation4 + $0x68] sm:$0xff] %v5389_v1 }
  0x74   : > { %407 = vst [vmem:[#allocation4 + $0x30] sm:$0xff] %v5389_v1  ;;  %408 = vst [vmem:[#allocation4 + $0x48] sm:$0xff] %v5389_v1 }
  0x75   : > { %409 = vst [vmem:[#allocation4 + $0x80] sm:$0xff] %v5389_v1  ;;  %410 = vst [vmem:[#allocation4 + $0x88] sm:$0xff] %v5389_v1 }
  0x76   : > { %411 = vst [vmem:[#allocation4 + $0xe8] sm:$0xff] %v5389_v1  ;;  %412 = vst [vmem:[#allocation4 + $0xb8] sm:$0xff] %v5389_v1 }
  0x77   : > { %413 = vst [vmem:[#allocation4 + $0x60] sm:$0xff] %v5389_v1  ;;  %414 = vst [vmem:[#allocation4 + $0xf0] sm:$0xff] %v5389_v1 }
  0x78   : > { %415 = vst [vmem:[#allocation4 + $0x8] sm:$0xff] %v5389_v1  ;;  %416 = vst [vmem:[#allocation4 + $0x78] sm:$0xff] %v5389_v1 }
  0x79   : > { %417 = vst [vmem:[#allocation4 + $0x38] sm:$0xff] %v5389_v1  ;;  %418 = vst [vmem:[#allocation4 + $0x58] sm:$0xff] %v5389_v1 }
  0x7a   : > { %419 = vst [vmem:[#allocation4 + $0x40] sm:$0xff] %v5389_v1  ;;  %420 = vst [vmem:[#allocation4 + $0xc8] sm:$0xff] %v5389_v1 }
  0x7b   : > { %421 = vst [vmem:[#allocation4 + $0xe0] sm:$0xff] %v5389_v1  ;;  %422 = vst [vmem:[#allocation4 + $0x90] sm:$0xff] %v5389_v1 }
  0x7c   : > { %423 = vst [vmem:[#allocation4 + $0x70] sm:$0xff] %v5389_v1  ;;  %424 = vst [vmem:[#allocation4 + $0xc0] sm:$0xff] %v5389_v1 }
  0x7d   : > { %425 = vst [vmem:[#allocation4 + $0xa8] sm:$0xff] %v5389_v1  ;;  %426 = vst [vmem:[#allocation4 + $0xd0] sm:$0xff] %v5389_v1 }
  0x7e   : > { %427 = vst [vmem:[#allocation4 + $0x10] sm:$0xff] %v5389_v1  ;;  %428 = vst [vmem:[#allocation4 + $0x28] sm:$0xff] %v5389_v1 }
  0x7f   : > { %429 = vst [vmem:[#allocation4 + $0xa0] sm:$0xff] %v5389_v1  ;;  %430 = vst [vmem:[#allocation4 + $0xf8] sm:$0xff] %v5389_v1 }
  0x80   : > { %431 = vst [vmem:[#allocation4 + $0x20] sm:$0xff] %v5389_v1  ;;  %432 = vst [vmem:[#allocation4 + $0x98] sm:$0xff] %v5389_v1 }
  0x81 PF: > { %v511_v2 = vld [vmem:[%s5538_s23 + $0xf0] sm:$0xff]  ;;  %v512_v3 = vld [vmem:[%s5538_s23 + $0xf8] sm:$0xff]  ;;  %v529_v4 = vld [vmem:[%s5516_s29] sm:$0xff]  ;;  %p3172_p2 = scmp.ne.s32.totalorder %s5047_s15, 1 }
  0x82   : > { %v528_v5 = vpack.c.bf16 %v512_v3, %v511_v2  ;;  %v530_v6 = vld [vmem:[%s5516_s29 + $0x8] sm:$0xff]  ;;  %v531_v7 = vld [vmem:[%s5516_s29 + $0x10] sm:$0xff]  ;;  %v532_v8 = vld [vmem:[%s5516_s29 + $0x18] sm:$0xff] }
  0x83   : > { %v533_v9 = vld [vmem:[%s5516_s29 + $0x20] sm:$0xff]  ;;  %v534_v10 = vld [vmem:[%s5516_s29 + $0x28] sm:$0xff]  ;;  %v535_v11 = vld [vmem:[%s5516_s29 + $0x30] sm:$0xff]  ;;  %v5678_v12 = vpack.c.bf16 %v530_v6, %v529_v4  ;;  %v5680_v13 = vpack.c.bf16 %v532_v8, %v531_v7 }
  0x84   : > { %v536_v14 = vld [vmem:[%s5516_s29 + $0x38] sm:$0xff]  ;;  %v537_v15 = vld [vmem:[%s5516_s29 + $0x40] sm:$0xff]  ;;  %v538_v16 = vld [vmem:[%s5516_s29 + $0x48] sm:$0xff]  ;;  %v5685_v17 = vpack.c.bf16 %v534_v10, %v533_v9  ;;  %3195 = vmatprep.subr.bf16.mxu0 %v528_v5 }
  0x85   : > { %8681 = vst [vmem:[#allocation8_spill] sm:$0xff] %v5678_v12  ;;  %8682 = vst [vmem:[#allocation9_spill] sm:$0xff] %v5680_v13  ;;  %v539_v18 = vld [vmem:[%s5516_s29 + $0x50] sm:$0xff]  ;;  %v540_v19 = vld [vmem:[%s5516_s29 + $0x58] sm:$0xff]  ;;  %v5690_v21 = vpack.c.bf16 %v536_v14, %v535_v11  ;;  %v5692_v22 = vpack.c.bf16 %v538_v16, %v537_v15 }
  0x86   : > { %8683 = vst [vmem:[#allocation10_spill] sm:$0xff] %v5685_v17  ;;  %v541_v20 = vld [vmem:[%s5516_s29 + $0x60] sm:$0xff]  ;;  %v542_v23 = vld [vmem:[%s5516_s29 + $0x68] sm:$0xff]  ;;  %v543_v24 = vld [vmem:[%s5516_s29 + $0x70] sm:$0xff]  ;;  %v5697_v26 = vpack.c.bf16 %v540_v19, %v539_v18 }
  0x87   : > { %8684 = vst [vmem:[#allocation11_spill] sm:$0xff] %v5690_v21  ;;  %8685 = vst [vmem:[#allocation12_spill] sm:$0xff] %v5692_v22  ;;  %v544_v25 = vld [vmem:[%s5516_s29 + $0x78] sm:$0xff]  ;;  %v545_v27 = vld [vmem:[%s5516_s29 + $0x80] sm:$0xff]  ;;  %v5702_v30 = vpack.c.bf16 %v542_v23, %v541_v20 }
  0x88   : > { %8686 = vst [vmem:[#allocation13_spill] sm:$0xff] %v5697_v26  ;;  %v546_v28 = vld [vmem:[%s5516_s29 + $0x88] sm:$0xff]  ;;  %v547_v29 = vld [vmem:[%s5516_s29 + $0x90] sm:$0xff]  ;;  %v5704_v31 = vpack.c.bf16 %v544_v25, %v543_v24  ;;  %v548_v32 = vld [vmem:[%s5516_s29 + $0x98] sm:$0xff] }
  0x89   : > { %8687 = vst [vmem:[#allocation14_spill] sm:$0xff] %v5702_v30  ;;  %v549_v33 = vld [vmem:[%s5516_s29 + $0xa0] sm:$0xff]  ;;  %v550_v34 = vld [vmem:[%s5516_s29 + $0xa8] sm:$0xff]  ;;  %v5709_v35 = vpack.c.bf16 %v546_v28, %v545_v27  ;;  %v551_v36 = vld [vmem:[%s5516_s29 + $0xb0] sm:$0xff]  ;;  %v5714_v39 = vpack.c.bf16 %v548_v32, %v547_v29 }
  0x8a   : > { %8688 = vst [vmem:[#allocation15_spill] sm:$0xff] %v5704_v31  ;;  %v552_v37 = vld [vmem:[%s5516_s29 + $0xb8] sm:$0xff]  ;;  %v553_v38 = vld [vmem:[%s5516_s29 + $0xc0] sm:$0xff]  ;;  %v5716_v40 = vpack.c.bf16 %v550_v34, %v549_v33  ;;  %v554_v41 = vld [vmem:[%s5516_s29 + $0xc8] sm:$0xff] }
  0x8b   : > { %8689 = vst [vmem:[#allocation16_spill] sm:$0xff] %v5709_v35  ;;  %8690 = vst [vmem:[#allocation17_spill] sm:$0xff] %v5714_v39  ;;  %v555_v42 = vld [vmem:[%s5516_s29 + $0xd0] sm:$0xff]  ;;  %v556_v43 = vld [vmem:[%s5516_s29 + $0xd8] sm:$0xff]  ;;  %v5721_v44 = vpack.c.bf16 %v552_v37, %v551_v36  ;;  %v5726_v48 = vpack.c.bf16 %v554_v41, %v553_v38 }
  0x8c   : > { %8691 = vst [vmem:[#allocation18_spill] sm:$0xff] %v5716_v40  ;;  %v557_v45 = vld [vmem:[%s5516_s29 + $0xe0] sm:$0xff]  ;;  %v558_v46 = vld [vmem:[%s5516_s29 + $0xe8] sm:$0xff]  ;;  %v559_v47 = vld [vmem:[%s5516_s29 + $0xf0] sm:$0xff]  ;;  %v5728_v49 = vpack.c.bf16 %v556_v43, %v555_v42 }
  0x8d   : > { %8692 = vst [vmem:[#allocation19_spill] sm:$0xff] %v5721_v44  ;;  %8693 = vst [vmem:[#allocation20_spill] sm:$0xff] %v5726_v48  ;;  %v560_v50 = vld [vmem:[%s5516_s29 + $0xf8] sm:$0xff]  ;;  %v5731_v51 = vpack.c.bf16 %v558_v46, %v557_v45  ;;  %v495_v52 = vld [vmem:[%s5538_s23 + $0x70] sm:$0xff] }
  0x8e   : > { %8694 = vst [vmem:[#allocation21_spill] sm:$0xff] %v5728_v49  ;;  %v496_v53 = vld [vmem:[%s5538_s23 + $0x78] sm:$0xff]  ;;  %v5735_v54 = vpack.c.bf16 %v560_v50, %v559_v47  ;;  %v509_v56 = vld [vmem:[%s5538_s23 + $0xe0] sm:$0xff]  ;;  %v510_v57 = vld [vmem:[%s5538_s23 + $0xe8] sm:$0xff] }
  0x8f   : > { %8695 = vst [vmem:[#allocation22_spill] sm:$0xff] %v5731_v51  ;;  %v520_v55 = vpack.c.bf16 %v496_v53, %v495_v52  ;;  %v527_v58 = vpack.c.bf16 %v510_v57, %v509_v56  ;;  %v493_v59 = vld [vmem:[%s5538_s23 + $0x60] sm:$0xff]  ;;  %v494_v60 = vld [vmem:[%s5538_s23 + $0x68] sm:$0xff]  ;;  %v507_v61 = vld [vmem:[%s5538_s23 + $0xd0] sm:$0xff] }
  0x90   : > { %8696 = vst [vmem:[#allocation23_spill] sm:$0xff] %v5735_v54  ;;  %v508_v62 = vld [vmem:[%s5538_s23 + $0xd8] sm:$0xff]  ;;  %v519_v63 = vpack.c.bf16 %v494_v60, %v493_v59  ;;  %v433_v1 = vld [vmem:[%s5528_s5] sm:$0xff]  ;;  %v434_v2 = vld [vmem:[%s5528_s5 + $0x8] sm:$0xff] }
  0x91   : > { %3196 = vmatpush3.bf16.xpose.msra.mxu0 %v520_v55  ;;  %v526_v0 = vpack.c.bf16 %v508_v62, %v507_v61  ;;  %v465_v3 = vpack.c.bf16 %v434_v2, %v433_v1  ;;  %v491_v4 = vld [vmem:[%s5538_s23 + $0x50] sm:$0xff]  ;;  %v492_v5 = vld [vmem:[%s5538_s23 + $0x58] sm:$0xff]  ;;  %v505_v6 = vld [vmem:[%s5538_s23 + $0xc0] sm:$0xff] }
  0x92   : > { %3197 = vmatprep.subr.bf16.mxu0 %v527_v58  ;;  %v506_v7 = vld [vmem:[%s5538_s23 + $0xc8] sm:$0xff]  ;;  %v518_v8 = vpack.c.bf16 %v492_v5, %v491_v4  ;;  %v489_v10 = vld [vmem:[%s5538_s23 + $0x40] sm:$0xff]  ;;  %v503_v14 = vld [vmem:[%s5538_s23 + $0xb0] sm:$0xff] }
  0x93   : > { %3211 = vmatprep.mubr.bf16.mxu0 %v465_v3  ;;  %v525_v9 = vpack.c.bf16 %v506_v7, %v505_v6  ;;  %v490_v11 = vld [vmem:[%s5538_s23 + $0x48] sm:$0xff]  ;;  %v504_v15 = vld [vmem:[%s5538_s23 + $0xb8] sm:$0xff]  ;;  %v487_v19 = vld [vmem:[%s5538_s23 + $0x30] sm:$0xff] }
  0x94   : > { %v517_v16 = vpack.c.bf16 %v490_v11, %v489_v10  ;;  %v524_v18 = vpack.c.bf16 %v504_v15, %v503_v14  ;;  %v488_v20 = vld [vmem:[%s5538_s23 + $0x38] sm:$0xff]  ;;  %v501_v23 = vld [vmem:[%s5538_s23 + $0xa0] sm:$0xff]  ;;  %v502_v24 = vld [vmem:[%s5538_s23 + $0xa8] sm:$0xff] }
  0x95   : > { %v516_v25 = vpack.c.bf16 %v488_v20, %v487_v19  ;;  %v523_v27 = vpack.c.bf16 %v502_v24, %v501_v23  ;;  %v485_v28 = vld [vmem:[%s5538_s23 + $0x20] sm:$0xff]  ;;  %v486_v29 = vld [vmem:[%s5538_s23 + $0x28] sm:$0xff]  ;;  %v499_v32 = vld [vmem:[%s5538_s23 + $0x90] sm:$0xff] }
  0x96   : > { %v500_v33 = vld [vmem:[%s5538_s23 + $0x98] sm:$0xff]  ;;  %v515_v34 = vpack.c.bf16 %v486_v29, %v485_v28  ;;  %v483_v37 = vld [vmem:[%s5538_s23 + $0x10] sm:$0xff]  ;;  %v497_v41 = vld [vmem:[%s5538_s23 + $0x80] sm:$0xff] }
  0x97   : > { %v522_v36 = vpack.c.bf16 %v500_v33, %v499_v32  ;;  %v484_v38 = vld [vmem:[%s5538_s23 + $0x18] sm:$0xff]  ;;  %v498_v42 = vld [vmem:[%s5538_s23 + $0x88] sm:$0xff]  ;;  %v481_v46 = vld [vmem:[%s5538_s23] sm:$0xff] }
  0x98   : > { %v514_v43 = vpack.c.bf16 %v484_v38, %v483_v37  ;;  %v521_v45 = vpack.c.bf16 %v498_v42, %v497_v41  ;;  %v482_v47 = vld [vmem:[%s5538_s23 + $0x8] sm:$0xff]  ;;  %v435_v52 = vld [vmem:[%s5528_s5 + $0x10] sm:$0xff]  ;;  %v436_v53 = vld [vmem:[%s5528_s5 + $0x18] sm:$0xff] }
  0x99   : > { %3198 = vmatpush3.bf16.xpose.msra.mxu0 %v519_v63  ;;  %v513_v50 = vpack.c.bf16 %v482_v47, %v481_v46  ;;  %v466_v55 = vpack.c.bf16 %v436_v53, %v435_v52  ;;  %v437_v56 = vld [vmem:[%s5528_s5 + $0x20] sm:$0xff]  ;;  %v438_v57 = vld [vmem:[%s5528_s5 + $0x28] sm:$0xff]  ;;  %v439_v59 = vld [vmem:[%s5528_s5 + $0x30] sm:$0xff] }
  0x9a   : > { %3199 = vmatprep.subr.bf16.mxu0 %v526_v0  ;;  %v467_v58 = vpack.c.bf16 %v438_v57, %v437_v56  ;;  %v440_v60 = vld [vmem:[%s5528_s5 + $0x38] sm:$0xff]  ;;  %v441_v62 = vld [vmem:[%s5528_s5 + $0x40] sm:$0xff]  ;;  %v442_v63 = vld [vmem:[%s5528_s5 + $0x48] sm:$0xff] }
  0x9b   : > { %v468_v61 = vpack.c.bf16 %v440_v60, %v439_v59  ;;  %v469_v0 = vpack.c.bf16 %v442_v63, %v441_v62  ;;  %v443_v1 = vld [vmem:[%s5528_s5 + $0x50] sm:$0xff]  ;;  %v444_v2 = vld [vmem:[%s5528_s5 + $0x58] sm:$0xff]  ;;  %v445_v4 = vld [vmem:[%s5528_s5 + $0x60] sm:$0xff] }
  0x9c   : > { %v446_v5 = vld [vmem:[%s5528_s5 + $0x68] sm:$0xff]  ;;  %v447_v7 = vld [vmem:[%s5528_s5 + $0x70] sm:$0xff]  ;;  %v449_v10 = vld [vmem:[%s5528_s5 + $0x80] sm:$0xff] }
  0x9d   : > { %v471_v6 = vpack.c.bf16 %v446_v5, %v445_v4  ;;  %v450_v11 = vld [vmem:[%s5528_s5 + $0x88] sm:$0xff]  ;;  %v451_v15 = vld [vmem:[%s5528_s5 + $0x90] sm:$0xff]  ;;  %v453_v19 = vld [vmem:[%s5528_s5 + $0xa0] sm:$0xff] }
  0x9e   : > { %v473_v14 = vpack.c.bf16 %v450_v11, %v449_v10  ;;  %v454_v20 = vld [vmem:[%s5528_s5 + $0xa8] sm:$0xff]  ;;  %v455_v24 = vld [vmem:[%s5528_s5 + $0xb0] sm:$0xff]  ;;  %v457_v28 = vld [vmem:[%s5528_s5 + $0xc0] sm:$0xff] }
  0x9f   : > { %v475_v23 = vpack.c.bf16 %v454_v20, %v453_v19  ;;  %v458_v29 = vld [vmem:[%s5528_s5 + $0xc8] sm:$0xff]  ;;  %v459_v33 = vld [vmem:[%s5528_s5 + $0xd0] sm:$0xff]  ;;  %v461_v37 = vld [vmem:[%s5528_s5 + $0xe0] sm:$0xff] }
  0xa0   : > { %v477_v32 = vpack.c.bf16 %v458_v29, %v457_v28  ;;  %v462_v38 = vld [vmem:[%s5528_s5 + $0xe8] sm:$0xff]  ;;  %v463_v42 = vld [vmem:[%s5528_s5 + $0xf0] sm:$0xff] }
  0xa1   : > { %3200 = vmatpush3.bf16.xpose.msra.mxu0 %v518_v8  ;;  %v448_v8 = vld [vmem:[%s5528_s5 + $0x78] sm:$0xff]  ;;  %v479_v41 = vpack.c.bf16 %v462_v38, %v461_v37 }
  0xa2   : > { %3201 = vmatprep.subr.bf16.mxu0 %v525_v9  ;;  %v472_v9 = vpack.c.bf16 %v448_v8, %v447_v7 }
  0xa9   : > { %3202 = vmatpush3.bf16.xpose.msra.mxu0 %v517_v16  ;;  %v452_v16 = vld [vmem:[%s5528_s5 + $0x98] sm:$0xff] }
  0xaa   : > { %3203 = vmatprep.subr.bf16.mxu0 %v524_v18  ;;  %v474_v18 = vpack.c.bf16 %v452_v16, %v451_v15 }
  0xb1   : > { %3204 = vmatpush3.bf16.xpose.msra.mxu0 %v516_v25  ;;  %v456_v25 = vld [vmem:[%s5528_s5 + $0xb8] sm:$0xff] }
  0xb2   : > { %3205 = vmatprep.subr.bf16.mxu0 %v523_v27  ;;  %v476_v27 = vpack.c.bf16 %v456_v25, %v455_v24 }
  0xb9   : > { %3206 = vmatpush3.bf16.xpose.msra.mxu0 %v515_v34  ;;  %v460_v34 = vld [vmem:[%s5528_s5 + $0xd8] sm:$0xff] }
  0xba   : > { %3207 = vmatprep.subr.bf16.mxu0 %v522_v36  ;;  %v478_v36 = vpack.c.bf16 %v460_v34, %v459_v33 }
  0xc1   : > { %3208 = vmatpush3.bf16.xpose.msra.mxu0 %v514_v43  ;;  %v464_v43 = vld [vmem:[%s5528_s5 + $0xf8] sm:$0xff] }
  0xc2   : > { %3209 = vmatprep.subr.bf16.mxu0 %v521_v45  ;;  %v480_v45 = vpack.c.bf16 %v464_v43, %v463_v42 }
  0xc9   : > { %3210 = vmatpush3.bf16.xpose.msra.mxu0 %v513_v50 }
  0xd0   : > { %3212 = vmatmul.mubr.bf16.vlgmr.msra.gmra.mxu0 %v465_v3  ;;  %v470_v3 = vpack.c.bf16 %v444_v2, %v443_v1 }
  0xd1   : > { %3213 = vmatprep.mubr.bf16.mxu0 %v466_v55 }
  0xd8   : > { %3214 = vmatmul.mubr.bf16.gmra.mxu0 %v466_v55 }
  0xd9   : > { %3215 = vmatprep.mubr.bf16.mxu0 %v467_v58 }
  0xe0   : > { %3216 = vmatmul.mubr.bf16.gmra.mxu0 %v467_v58 }
  0xe1   : > { %3217 = vmatprep.mubr.bf16.mxu0 %v468_v61 }
  0xe8   : > { %3218 = vmatmul.mubr.bf16.gmra.mxu0 %v468_v61 }
  0xe9   : > { %3219 = vmatprep.mubr.bf16.mxu0 %v469_v0 }
  0xf0   : > { %3220 = vmatmul.mubr.bf16.gmra.mxu0 %v469_v0 }
  0xf1   : > { %3221 = vmatprep.mubr.bf16.mxu0 %v470_v3 }
  0xf8   : > { %3222 = vmatmul.mubr.bf16.gmra.mxu0 %v470_v3 }
  0xf9   : > { %3223 = vmatprep.mubr.bf16.mxu0 %v471_v6 }
 0x100   : > { %3224 = vmatmul.mubr.bf16.gmra.mxu0 %v471_v6 }
 0x101   : > { %3225 = vmatprep.mubr.bf16.mxu0 %v472_v9 }
 0x108   : > { %3226 = vmatmul.mubr.bf16.gmra.mxu0 %v472_v9 }
 0x109   : > { %3227 = vmatprep.mubr.bf16.mxu0 %v473_v14 }
 0x110   : > { %3228 = vmatmul.mubr.bf16.gmra.mxu0 %v473_v14 }
 0x111   : > { %3229 = vmatprep.mubr.bf16.mxu0 %v474_v18 }
 0x118   : > { %3230 = vmatmul.mubr.bf16.gmra.mxu0 %v474_v18 }
 0x119   : > { %3231 = vmatprep.mubr.bf16.mxu0 %v475_v23 }
 0x120   : > { %3232 = vmatmul.mubr.bf16.gmra.mxu0 %v475_v23 }
 0x121   : > { %3233 = vmatprep.mubr.bf16.mxu0 %v476_v27 }
 0x128   : > { %3234 = vmatmul.mubr.bf16.gmra.mxu0 %v476_v27 }
 0x129   : > { %3235 = vmatprep.mubr.bf16.mxu0 %v477_v32 }
 0x130   : > { %3236 = vmatmul.mubr.bf16.gmra.mxu0 %v477_v32 }
 0x131   : > { %3237 = vmatprep.mubr.bf16.mxu0 %v478_v36 }
 0x138   : > { %3238 = vmatmul.mubr.bf16.gmra.mxu0 %v478_v36 }
 0x139   : > { %3239 = vmatprep.mubr.bf16.mxu0 %v479_v41 }
 0x140   : > { %3240 = vmatmul.mubr.bf16.gmra.mxu0 %v479_v41 }
 0x141   : > { %3241 = vmatprep.mubr.bf16.mxu0 %v480_v45 }
 0x148   : > { %3242 = vmatmul.mubr.bf16.gmra.mxu0 %v480_v45 }
 0x190   : > { %v5797_v46 = vpop.f32.mrf.mxu0 }
 0x191   : > { %8697 = vst [vmem:[#allocation24_spill] sm:$0xff] %v5797_v46  ;;  %v6052_v46 = vmov 0  }
 0x192   : > { %v5799_v47 = vpop.f32.mrf.mxu0  ;;  %8771 = vst [vmem:[#allocation98_spill] sm:$0xff] %v6052_v46  ;;  %v6072_v46 = vmov 0  }
 0x193   : > { %8698 = vst [vmem:[#allocation25_spill] sm:$0xff] %v5799_v47  ;;  %v6050_v47 = vmov 0  }
 0x194   : > { %v5801_v50 = vpop.f32.mrf.mxu0  ;;  %8770 = vst [vmem:[#allocation97_spill] sm:$0xff] %v6050_v47  ;;  %v6070_v47 = vmov 0  }
 0x195   : > { %8699 = vst [vmem:[#allocation26_spill] sm:$0xff] %v5801_v50  ;;  %v6048_v50 = vmov 0  }
 0x196   : > { %v5803_v52 = vpop.f32.mrf.mxu0  ;;  %8769 = vst [vmem:[#allocation96_spill] sm:$0xff] %v6048_v50  ;;  %v6068_v50 = vmov 0  }
 0x197   : > { %8700 = vst [vmem:[#allocation27_spill] sm:$0xff] %v5803_v52  ;;  %v6046_v52 = vmov 0  }
 0x198   : > { %v5805_v53 = vpop.f32.mrf.mxu0  ;;  %8768 = vst [vmem:[#allocation95_spill] sm:$0xff] %v6046_v52  ;;  %v6066_v52 = vmov 0  }
 0x199   : > { %8701 = vst [vmem:[#allocation28_spill] sm:$0xff] %v5805_v53  ;;  %v6044_v53 = vmov 0  }
 0x19a   : > { %v5807_v55 = vpop.f32.mrf.mxu0  ;;  %8767 = vst [vmem:[#allocation94_spill] sm:$0xff] %v6044_v53  ;;  %v6064_v53 = vmov 0  }
 0x19b   : > { %8702 = vst [vmem:[#allocation29_spill] sm:$0xff] %v5807_v55  ;;  %v6042_v55 = vmov 0  }
 0x19c   : > { %v5809_v56 = vpop.f32.mrf.mxu0  ;;  %8766 = vst [vmem:[#allocation93_spill] sm:$0xff] %v6042_v55  ;;  %v6062_v55 = vmov 0  }
 0x19d   : > { %8703 = vst [vmem:[#allocation30_spill] sm:$0xff] %v5809_v56  ;;  %v6040_v56 = vmov 0   ;;  %8776 = vst [vmem:[#allocation103_spill] sm:$0xff] %v6062_v55  ;;  %v6084_v55 = vmov 0  }
 0x19e   : > { %v5811_v57 = vpop.f32.mrf.mxu0  ;;  %8765 = vst [vmem:[#allocation92_spill] sm:$0xff] %v6040_v56  ;;  %v6060_v56 = vmov 0  }
 0x19f   : > { %8704 = vst [vmem:[#allocation31_spill] sm:$0xff] %v5811_v57  ;;  %v6038_v57 = vmov 0   ;;  %8775 = vst [vmem:[#allocation102_spill] sm:$0xff] %v6060_v56  ;;  %v6082_v56 = vmov 0  }
 0x1a0   : > { %v5813_v58 = vpop.f32.mrf.mxu0  ;;  %8764 = vst [vmem:[#allocation91_spill] sm:$0xff] %v6038_v57  ;;  %v6058_v57 = vmov 0  }
 0x1a1   : > { %8705 = vst [vmem:[#allocation32_spill] sm:$0xff] %v5813_v58  ;;  %v6036_v58 = vmov 0   ;;  %8774 = vst [vmem:[#allocation101_spill] sm:$0xff] %v6058_v57  ;;  %v6080_v57 = vmov 0  }
 0x1a2   : > { %v5815_v59 = vpop.f32.mrf.mxu0  ;;  %8763 = vst [vmem:[#allocation90_spill] sm:$0xff] %v6036_v58  ;;  %v6056_v58 = vmov 0  }
 0x1a3   : > { %8706 = vst [vmem:[#allocation33_spill] sm:$0xff] %v5815_v59  ;;  %v6034_v59 = vmov 0   ;;  %8773 = vst [vmem:[#allocation100_spill] sm:$0xff] %v6056_v58  ;;  %v6078_v58 = vmov 0  }
 0x1a4   : > { %v5817_v60 = vpop.f32.mrf.mxu0  ;;  %8762 = vst [vmem:[#allocation89_spill] sm:$0xff] %v6034_v59  ;;  %v6076_v59 = vmov 0  }
 0x1a5   : > { %8707 = vst [vmem:[#allocation34_spill] sm:$0xff] %v5817_v60  ;;  %v6032_v60 = vmov 0  }
 0x1a6   : > { %v5819_v61 = vpop.f32.mrf.mxu0  ;;  %8761 = vst [vmem:[#allocation88_spill] sm:$0xff] %v6032_v60  ;;  %v6054_v60 = vmov 0  }
 0x1a7   : > { %8708 = vst [vmem:[#allocation35_spill] sm:$0xff] %v5819_v61  ;;  %v6030_v61 = vmov 0   ;;  %8772 = vst [vmem:[#allocation99_spill] sm:$0xff] %v6054_v60  ;;  %v6074_v60 = vmov 0  }
 0x1a8   : > { %v5821_v62 = vpop.f32.mrf.mxu0 }
 0x1a9   : > { %8709 = vst [vmem:[#allocation36_spill] sm:$0xff] %v5821_v62  ;;  %v6028_v62 = vmov 0  }
 0x1aa   : > { %v5823_v63 = vpop.f32.mrf.mxu0 }
 0x1ab   : > { %8710 = vst [vmem:[#allocation37_spill] sm:$0xff] %v5823_v63  ;;  %v6026_v63 = vmov 0  }
 0x1ac   : > { %v5825_v0 = vpop.f32.mrf.mxu0 }
 0x1ad   : > { %8711 = vst [vmem:[#allocation38_spill] sm:$0xff] %v5825_v0  ;;  %v6024_v0 = vmov 0  }
 0x1ae   : > { %v5827_v1 = vpop.f32.mrf.mxu0 }
 0x1af   : > { %8712 = vst [vmem:[#allocation39_spill] sm:$0xff] %v5827_v1  ;;  %v6022_v1 = vmov 0  }
 0x1b0   : > { %v5829_v2 = vpop.f32.mrf.mxu0 }
 0x1b1   : > { %8713 = vst [vmem:[#allocation40_spill] sm:$0xff] %v5829_v2  ;;  %v6020_v2 = vmov 0  }
 0x1b2   : > { %v5831_v3 = vpop.f32.mrf.mxu0 }
 0x1b3   : > { %8714 = vst [vmem:[#allocation41_spill] sm:$0xff] %v5831_v3  ;;  %v6018_v3 = vmov 0  }
 0x1b4   : > { %v5833_v4 = vpop.f32.mrf.mxu0 }
 0x1b5   : > { %8715 = vst [vmem:[#allocation42_spill] sm:$0xff] %v5833_v4  ;;  %v6016_v4 = vmov 0  }
 0x1b6   : > { %v5835_v5 = vpop.f32.mrf.mxu0 }
 0x1b7   : > { %8716 = vst [vmem:[#allocation43_spill] sm:$0xff] %v5835_v5  ;;  %v6014_v5 = vmov 0  }
 0x1b8   : > { %v5837_v6 = vpop.f32.mrf.mxu0 }
 0x1b9   : > { %8717 = vst [vmem:[#allocation44_spill] sm:$0xff] %v5837_v6  ;;  %v6012_v6 = vmov 0  }
 0x1ba   : > { %v5839_v7 = vpop.f32.mrf.mxu0 }
 0x1bb   : > { %8718 = vst [vmem:[#allocation45_spill] sm:$0xff] %v5839_v7  ;;  %v6010_v7 = vmov 0  }
 0x1bc   : > { %v5841_v8 = vpop.f32.mrf.mxu0 }
 0x1bd   : > { %8719 = vst [vmem:[#allocation46_spill] sm:$0xff] %v5841_v8  ;;  %v6008_v8 = vmov 0  }
 0x1be   : > { %v5843_v9 = vpop.f32.mrf.mxu0 }
 0x1bf   : > { %8720 = vst [vmem:[#allocation47_spill] sm:$0xff] %v5843_v9  ;;  %v6006_v9 = vmov 0  }
 0x1c0   : > { %v5845_v10 = vpop.f32.mrf.mxu0 }
 0x1c1   : > { %8721 = vst [vmem:[#allocation48_spill] sm:$0xff] %v5845_v10  ;;  %v6004_v10 = vmov 0  }
 0x1c2   : > { %v5847_v11 = vpop.f32.mrf.mxu0 }
 0x1c3   : > { %8722 = vst [vmem:[#allocation49_spill] sm:$0xff] %v5847_v11  ;;  %v6002_v11 = vmov 0  }
 0x1c4   : > { %v5849_v14 = vpop.f32.mrf.mxu0 }
 0x1c5   : > { %8723 = vst [vmem:[#allocation50_spill] sm:$0xff] %v5849_v14  ;;  %v6000_v14 = vmov 0  }
 0x1c6   : > { %v5851_v15 = vpop.f32.mrf.mxu0 }
 0x1c7   : > { %8724 = vst [vmem:[#allocation51_spill] sm:$0xff] %v5851_v15  ;;  %v5998_v15 = vmov 0  }
 0x1c8   : > { %v5853_v16 = vpop.f32.mrf.mxu0 }
 0x1c9   : > { %8725 = vst [vmem:[#allocation52_spill] sm:$0xff] %v5853_v16  ;;  %v5996_v16 = vmov 0  }
 0x1ca   : > { %v5855_v18 = vpop.f32.mrf.mxu0 }
 0x1cb   : > { %8726 = vst [vmem:[#allocation53_spill] sm:$0xff] %v5855_v18  ;;  %v5994_v18 = vmov 0  }
 0x1cc   : > { %v5857_v19 = vpop.f32.mrf.mxu0 }
 0x1cd   : > { %8727 = vst [vmem:[#allocation54_spill] sm:$0xff] %v5857_v19  ;;  %v5992_v19 = vmov 0  }
 0x1ce   : > { %v5859_v20 = vpop.f32.mrf.mxu0 }
 0x1cf   : > { %8728 = vst [vmem:[#allocation55_spill] sm:$0xff] %v5859_v20  ;;  %v5990_v20 = vmov 0  }
 0x1d0   : > { %v5861_v23 = vpop.f32.mrf.mxu0 }
 0x1d1   : > { %8729 = vst [vmem:[#allocation56_spill] sm:$0xff] %v5861_v23  ;;  %v5988_v23 = vmov 0  }
 0x1d2   : > { %v5863_v24 = vpop.f32.mrf.mxu0 }
 0x1d3   : > { %8730 = vst [vmem:[#allocation57_spill] sm:$0xff] %v5863_v24  ;;  %v5986_v24 = vmov 0  }
 0x1d4   : > { %v5865_v25 = vpop.f32.mrf.mxu0 }
 0x1d5   : > { %8731 = vst [vmem:[#allocation58_spill] sm:$0xff] %v5865_v25  ;;  %v5984_v25 = vmov 0  }
 0x1d6   : > { %v5867_v27 = vpop.f32.mrf.mxu0 }
 0x1d7   : > { %8732 = vst [vmem:[#allocation59_spill] sm:$0xff] %v5867_v27  ;;  %v5982_v27 = vmov 0  }
 0x1d8   : > { %v5869_v28 = vpop.f32.mrf.mxu0 }
 0x1d9   : > { %8733 = vst [vmem:[#allocation60_spill] sm:$0xff] %v5869_v28  ;;  %v5980_v28 = vmov 0  }
 0x1da   : > { %v5871_v29 = vpop.f32.mrf.mxu0 }
 0x1db   : > { %8734 = vst [vmem:[#allocation61_spill] sm:$0xff] %v5871_v29  ;;  %v5978_v29 = vmov 0  }
 0x1dc   : > { %v5873_v32 = vpop.f32.mrf.mxu0 }
 0x1dd   : > { %8735 = vst [vmem:[#allocation62_spill] sm:$0xff] %v5873_v32  ;;  %v5976_v32 = vmov 0  }
 0x1de   : > { %v5875_v33 = vpop.f32.mrf.mxu0 }
 0x1df   : > { %8736 = vst [vmem:[#allocation63_spill] sm:$0xff] %v5875_v33  ;;  %v5974_v33 = vmov 0  }
 0x1e0   : > { %v5877_v34 = vpop.f32.mrf.mxu0 }
 0x1e1   : > { %8737 = vst [vmem:[#allocation64_spill] sm:$0xff] %v5877_v34  ;;  %v5972_v34 = vmov 0  }
 0x1e2   : > { %v5879_v36 = vpop.f32.mrf.mxu0 }
 0x1e3   : > { %8738 = vst [vmem:[#allocation65_spill] sm:$0xff] %v5879_v36  ;;  %v5970_v36 = vmov 0  }
 0x1e4   : > { %v5881_v37 = vpop.f32.mrf.mxu0 }
 0x1e5   : > { %8739 = vst [vmem:[#allocation66_spill] sm:$0xff] %v5881_v37  ;;  %v5968_v37 = vmov 0  }
 0x1e6   : > { %v5883_v38 = vpop.f32.mrf.mxu0 }
 0x1e7   : > { %8740 = vst [vmem:[#allocation67_spill] sm:$0xff] %v5883_v38  ;;  %v5966_v38 = vmov 0  }
 0x1e8   : > { %v5885_v41 = vpop.f32.mrf.mxu0 }
 0x1e9   : > { %8741 = vst [vmem:[#allocation68_spill] sm:$0xff] %v5885_v41  ;;  %v5964_v41 = vmov 0  }
 0x1ea   : > { %v5887_v42 = vpop.f32.mrf.mxu0 }
 0x1eb   : > { %8742 = vst [vmem:[#allocation69_spill] sm:$0xff] %v5887_v42  ;;  %v5962_v42 = vmov 0  }
 0x1ec   : > { %v5889_v43 = vpop.f32.mrf.mxu0 }
 0x1ed   : > { %8743 = vst [vmem:[#allocation70_spill] sm:$0xff] %v5889_v43  ;;  %v5960_v43 = vmov 0  }
 0x1ee   : > { %v5891_v45 = vpop.f32.mrf.mxu0 }
 0x1ef   : > { %8744 = vst [vmem:[#allocation71_spill] sm:$0xff] %v5891_v45  ;;  %v5958_v45 = vmov 0  }
 0x1f0   : > { %v5893_v54 = vpop.f32.mrf.mxu0 }
 0x1f1   : > { %8745 = vst [vmem:[#allocation72_spill] sm:$0xff] %v5893_v54  ;;  %v5956_v54 = vmov 0  }
 0x1f2   : > { %v5895_v51 = vpop.f32.mrf.mxu0 }
 0x1f3   : > { %8746 = vst [vmem:[#allocation73_spill] sm:$0xff] %v5895_v51  ;;  %v5954_v51 = vmov 0  }
 0x1f4   : > { %v5897_v49 = vpop.f32.mrf.mxu0 }
 0x1f5   : > { %8747 = vst [vmem:[#allocation74_spill] sm:$0xff] %v5897_v49  ;;  %v5952_v49 = vmov 0  }
 0x1f6   : > { %v5899_v48 = vpop.f32.mrf.mxu0 }
 0x1f7   : > { %8748 = vst [vmem:[#allocation75_spill] sm:$0xff] %v5899_v48  ;;  %v5950_v48 = vmov 0  }
 0x1f8   : > { %v5901_v44 = vpop.f32.mrf.mxu0 }
 0x1f9   : > { %8749 = vst [vmem:[#allocation76_spill] sm:$0xff] %v5901_v44  ;;  %v5948_v44 = vmov 0  }
 0x1fa   : > { %v5903_v40 = vpop.f32.mrf.mxu0 }
 0x1fb   : > { %8750 = vst [vmem:[#allocation77_spill] sm:$0xff] %v5903_v40  ;;  %v5946_v40 = vmov 0  }
 0x1fc   : > { %v5905_v39 = vpop.f32.mrf.mxu0 }
 0x1fd   : > { %8751 = vst [vmem:[#allocation78_spill] sm:$0xff] %v5905_v39  ;;  %v5926_v39 = vmov 0  }
 0x1fe   : > { %v5907_v35 = vpop.f32.mrf.mxu0 }
 0x1ff   : > { %8752 = vst [vmem:[#allocation79_spill] sm:$0xff] %v5907_v35  ;;  %v5928_v35 = vmov 0  }
 0x200   : > { %v5909_v31 = vpop.f32.mrf.mxu0 }
 0x201   : > { %8753 = vst [vmem:[#allocation80_spill] sm:$0xff] %v5909_v31  ;;  %v5930_v31 = vmov 0  }
 0x202   : > { %v5911_v30 = vpop.f32.mrf.mxu0 }
 0x203   : > { %8754 = vst [vmem:[#allocation81_spill] sm:$0xff] %v5911_v30  ;;  %v5932_v30 = vmov 0  }
 0x204   : > { %v5913_v26 = vpop.f32.mrf.mxu0 }
 0x205   : > { %8755 = vst [vmem:[#allocation82_spill] sm:$0xff] %v5913_v26  ;;  %v5934_v26 = vmov 0  }
 0x206   : > { %v5915_v22 = vpop.f32.mrf.mxu0 }
 0x207   : > { %8756 = vst [vmem:[#allocation83_spill] sm:$0xff] %v5915_v22  ;;  %v5936_v22 = vmov 0  }
 0x208   : > { %v5917_v21 = vpop.f32.mrf.mxu0 }
 0x209   : > { %8757 = vst [vmem:[#allocation84_spill] sm:$0xff] %v5917_v21  ;;  %v5938_v21 = vmov 0  }
 0x20a   : > { %v5919_v17 = vpop.f32.mrf.mxu0 }
 0x20b   : > { %8758 = vst [vmem:[#allocation85_spill] sm:$0xff] %v5919_v17  ;;  %v5940_v17 = vmov 0   ;;  %772 = sbr.rel (%p3172_p2) target bundleno = 630 (0x276), region = 44 }
 0x20c   : > { %v5921_v13 = vpop.f32.mrf.mxu0 }
 0x20d   : > { %8759 = vst [vmem:[#allocation86_spill] sm:$0xff] %v5921_v13  ;;  %v5942_v13 = vmov 0  }
 0x20e   : > { %v5923_v12 = vpop.f32.mrf.mxu0 }
 0x20f   : > { %8760 = vst [vmem:[#allocation87_spill] sm:$0xff] %v5923_v12  ;;  %v5944_v12 = vmov 0  }
 0x210   : > { %v774_v0 = vlaneseq  ;;  %s3173_s16 = sshll.u32 %s5047_s15, 8 }
 0x211   : > { %v6089_v4 = vstv %s3173_s16 }
 0x212   : > { %v775_v1 = vand.u32 127, %v774_v0  ;;  %v781_v2 = vshrl.u32 %v774_v0, 7 }
 0x214   : > { %v776_v3 = vadd.s32 128, %v775_v1  ;;  %v6092_v5 = vadd.s32 %v6089_v4, %v775_v1  ;;  %v782_v6 = vadd.s32 8, %v781_v2  ;;  %v783_v7 = vadd.s32 16, %v781_v2 }
 0x215   : > { %v784_v8 = vadd.s32 24, %v781_v2  ;;  %v785_v9 = vadd.s32 32, %v781_v2  ;;  %v786_v11 = vadd.s32 40, %v781_v2  ;;  %v787_v12 = vadd.s32 48, %v781_v2 }
 0x216   : > { %v6095_v10 = vadd.s32 %v6089_v4, %v776_v3  ;;  %v788_v13 = vadd.s32 56, %v781_v2  ;;  %v789_v17 = vadd.s32 64, %v781_v2  ;;  %v790_v21 = vadd.s32 72, %v781_v2  ;;  %v8777_v3 = vld [vmem:[#allocation24_spill] sm:$0xff] }
 0x217   : > { %v791_v22 = vadd.s32 80, %v781_v2  ;;  %v792_v26 = vadd.s32 88, %v781_v2  ;;  %v793_v30 = vadd.s32 96, %v781_v2  ;;  %v794_v31 = vadd.s32 104, %v781_v2 }
 0x218   : > { %v795_v35 = vadd.s32 112, %v781_v2  ;;  %v796_v39 = vadd.s32 120, %v781_v2  ;;  %v797_v40 = vadd.s32 128, %v781_v2  ;;  %v798_v44 = vadd.s32 136, %v781_v2 }
 0x219   : > { %v799_v48 = vadd.s32 144, %v781_v2  ;;  %v800_v49 = vadd.s32 152, %v781_v2  ;;  %v801_v51 = vadd.s32 160, %v781_v2  ;;  %v802_v54 = vadd.s32 168, %v781_v2 }
 0x21a   : > { %v803_v46 = vadd.s32 176, %v781_v2  ;;  %v804_v47 = vadd.s32 184, %v781_v2  ;;  %v805_v50 = vadd.s32 192, %v781_v2  ;;  %v806_v52 = vadd.s32 200, %v781_v2 }
 0x21b   : > { %v807_v53 = vadd.s32 208, %v781_v2  ;;  %v808_v55 = vadd.s32 216, %v781_v2  ;;  %v809_v56 = vadd.s32 224, %v781_v2  ;;  %v810_v57 = vadd.s32 232, %v781_v2 }
 0x21c   : > { %v811_v58 = vadd.s32 240, %v781_v2  ;;  %v812_v59 = vadd.s32 248, %v781_v2  ;;  %v6098_v60 = vadd.s32 %v781_v2, %v6089_v4  ;;  %v6101_v61 = vadd.s32 %v782_v6, %v6089_v4 }
 0x21d   : > { %v6104_v62 = vadd.s32 %v783_v7, %v6089_v4  ;;  %v6107_v63 = vadd.s32 %v784_v8, %v6089_v4  ;;  %v6110_v14 = vadd.s32 %v785_v9, %v6089_v4  ;;  %v6113_v15 = vadd.s32 %v786_v11, %v6089_v4  ;;  %v8779_v8 = vld [vmem:[#allocation25_spill] sm:$0xff]  ;;  %v8781_v9 = vld [vmem:[#allocation26_spill] sm:$0xff] }
 0x21e   : > { %v6116_v16 = vadd.s32 %v787_v12, %v6089_v4  ;;  %v6119_v18 = vadd.s32 %v788_v13, %v6089_v4  ;;  %v6122_v19 = vadd.s32 %v789_v17, %v6089_v4  ;;  %v6125_v20 = vadd.s32 %v790_v21, %v6089_v4  ;;  %v8783_v12 = vld [vmem:[#allocation27_spill] sm:$0xff]  ;;  %v8785_v13 = vld [vmem:[#allocation28_spill] sm:$0xff]  ;;  %v8787_v17 = vld [vmem:[#allocation29_spill] sm:$0xff] }
 0x21f   : > { %v6128_v23 = vadd.s32 %v791_v22, %v6089_v4  ;;  %v6131_v24 = vadd.s32 %v792_v26, %v6089_v4  ;;  %v6134_v25 = vadd.s32 %v793_v30, %v6089_v4  ;;  %v6137_v27 = vadd.s32 %v794_v31, %v6089_v4  ;;  %v8789_v22 = vld [vmem:[#allocation30_spill] sm:$0xff]  ;;  %v8793_v26 = vld [vmem:[#allocation32_spill] sm:$0xff]  ;;  %v8795_v30 = vld [vmem:[#allocation33_spill] sm:$0xff] }
 0x220   : > { %v6140_v28 = vadd.s32 %v795_v35, %v6089_v4  ;;  %v6143_v29 = vadd.s32 %v796_v39, %v6089_v4  ;;  %v6146_v32 = vadd.s32 %v797_v40, %v6089_v4  ;;  %v6149_v33 = vadd.s32 %v798_v44, %v6089_v4  ;;  %v8797_v31 = vld [vmem:[#allocation34_spill] sm:$0xff]  ;;  %v8799_v35 = vld [vmem:[#allocation35_spill] sm:$0xff]  ;;  %v8801_v40 = vld [vmem:[#allocation36_spill] sm:$0xff] }
 0x221   : > { %v6152_v34 = vadd.s32 %v799_v48, %v6089_v4  ;;  %vm845_vm1 = vcmp.lt.s32.totalorder %v6092_v5, 320  ;;  %v6156_v36 = vadd.s32 %v800_v49, %v6089_v4  ;;  %v6159_v37 = vadd.s32 %v801_v51, %v6089_v4  ;;  %v8803_v48 = vld [vmem:[#allocation37_spill] sm:$0xff]  ;;  %v8805_v51 = vld [vmem:[#allocation38_spill] sm:$0xff] }
 0x222   : > { %v6162_v38 = vadd.s32 %v802_v54, %v6089_v4  ;;  %vm846_vm2 = vcmp.lt.s32.totalorder %v6095_v10, 320  ;;  %v6166_v41 = vadd.s32 %v803_v46, %v6089_v4  ;;  %v6169_v42 = vadd.s32 %v804_v47, %v6089_v4  ;;  %v8934_v10 = vld [vmem:[#allocation8_spill] sm:$0xff] }
 0x223   : > { %v6172_v43 = vadd.s32 %v805_v50, %v6089_v4  ;;  %v6175_v45 = vadd.s32 %v806_v52, %v6089_v4  ;;  %v6178_v0 = vadd.s32 %v807_v53, %v6089_v4  ;;  %v6181_v1 = vadd.s32 %v808_v55, %v6089_v4 }
 0x224   : > { %v6184_v2 = vadd.s32 %v809_v56, %v6089_v4  ;;  %v6189_v55 = vsel %vm845_vm1, %v8777_v3, -1e+30   ;;  %v6192_v6 = vadd.s32 %v810_v57, %v6089_v4  ;;  %v6195_v7 = vadd.s32 %v811_v58, %v6089_v4  ;;  %v8807_v3 = vld [vmem:[#allocation39_spill] sm:$0xff] }
 0x225   : > { %8778 = vst [vmem:[#allocation104_spill] sm:$0xff] %v6189_v55  ;;  %v6200_v56 = vsel %vm846_vm2, %v8779_v8, -1e+30   ;;  %v6205_v57 = vsel %vm845_vm1, %v8781_v9, -1e+30   ;;  %v6208_v11 = vadd.s32 %v812_v59, %v6089_v4  ;;  %v8791_v4 = vld [vmem:[#allocation31_spill] sm:$0xff] }
 0x226   : > { %8780 = vst [vmem:[#allocation105_spill] sm:$0xff] %v6200_v56  ;;  %8782 = vst [vmem:[#allocation106_spill] sm:$0xff] %v6205_v57  ;;  %v6213_v58 = vsel %vm846_vm2, %v8783_v12, -1e+30   ;;  %v6218_v59 = vsel %vm845_vm1, %v8785_v13, -1e+30  }
 0x227   : > { %8784 = vst [vmem:[#allocation107_spill] sm:$0xff] %v6213_v58  ;;  %8786 = vst [vmem:[#allocation108_spill] sm:$0xff] %v6218_v59  ;;  %v6223_v21 = vsel %vm846_vm2, %v8787_v17, -1e+30   ;;  %v6228_v46 = vsel %vm845_vm1, %v8789_v22, -1e+30  }
 0x228   : > { %8788 = vst [vmem:[#allocation109_spill] sm:$0xff] %v6223_v21  ;;  %8790 = vst [vmem:[#allocation110_spill] sm:$0xff] %v6228_v46  ;;  %v6233_v47 = vsel %vm846_vm2, %v8791_v4, -1e+30   ;;  %v6238_v50 = vsel %vm845_vm1, %v8793_v26, -1e+30  }
 0x229   : > { %8792 = vst [vmem:[#allocation111_spill] sm:$0xff] %v6233_v47  ;;  %8794 = vst [vmem:[#allocation112_spill] sm:$0xff] %v6238_v50  ;;  %v6243_v52 = vsel %vm846_vm2, %v8795_v30, -1e+30   ;;  %v6248_v53 = vsel %vm845_vm1, %v8797_v31, -1e+30  }
 0x22a   : > { %8796 = vst [vmem:[#allocation113_spill] sm:$0xff] %v6243_v52  ;;  %8798 = vst [vmem:[#allocation114_spill] sm:$0xff] %v6248_v53  ;;  %v6253_v39 = vsel %vm846_vm2, %v8799_v35, -1e+30   ;;  %v6258_v44 = vsel %vm845_vm1, %v8801_v40, -1e+30  }
 0x22b   : > { %8800 = vst [vmem:[#allocation103_spill] sm:$0xff] %v6253_v39  ;;  %8802 = vst [vmem:[#allocation102_spill] sm:$0xff] %v6258_v44  ;;  %v6263_v49 = vsel %vm846_vm2, %v8803_v48, -1e+30   ;;  %v6268_v54 = vsel %vm845_vm1, %v8805_v51, -1e+30  }
 0x22c   : > { %8804 = vst [vmem:[#allocation101_spill] sm:$0xff] %v6263_v49  ;;  %8806 = vst [vmem:[#allocation100_spill] sm:$0xff] %v6268_v54  ;;  %v6273_v8 = vsel %vm846_vm2, %v8807_v3, -1e+30   ;;  %v8809_v9 = vld [vmem:[#allocation40_spill] sm:$0xff]  ;;  %v8811_v13 = vld [vmem:[#allocation41_spill] sm:$0xff] }
 0x22d   : > { %8808 = vst [vmem:[#allocation99_spill] sm:$0xff] %v6273_v8  ;;  %v6278_v12 = vsel %vm845_vm1, %v8809_v9, -1e+30   ;;  %v6283_v17 = vsel %vm846_vm2, %v8811_v13, -1e+30   ;;  %v8813_v21 = vld [vmem:[#allocation42_spill] sm:$0xff] }
 0x22e   : > { %8810 = vst [vmem:[#allocation98_spill] sm:$0xff] %v6278_v12  ;;  %8812 = vst [vmem:[#allocation97_spill] sm:$0xff] %v6283_v17  ;;  %v6288_v22 = vsel %vm845_vm1, %v8813_v21, -1e+30   ;;  %v8815_v4 = vld [vmem:[#allocation43_spill] sm:$0xff]  ;;  %v8817_v30 = vld [vmem:[#allocation44_spill] sm:$0xff] }
 0x22f   : > { %8814 = vst [vmem:[#allocation96_spill] sm:$0xff] %v6288_v22  ;;  %v6293_v26 = vsel %vm846_vm2, %v8815_v4, -1e+30   ;;  %v6298_v31 = vsel %vm845_vm1, %v8817_v30, -1e+30   ;;  %v8819_v35 = vld [vmem:[#allocation45_spill] sm:$0xff] }
 0x230   : > { %8816 = vst [vmem:[#allocation95_spill] sm:$0xff] %v6293_v26  ;;  %8818 = vst [vmem:[#allocation94_spill] sm:$0xff] %v6298_v31  ;;  %v6303_v39 = vsel %vm846_vm2, %v8819_v35, -1e+30   ;;  %v8821_v40 = vld [vmem:[#allocation46_spill] sm:$0xff]  ;;  %v8823_v48 = vld [vmem:[#allocation47_spill] sm:$0xff] }
 0x231   : > { %8820 = vst [vmem:[#allocation93_spill] sm:$0xff] %v6303_v39  ;;  %v6308_v44 = vsel %vm845_vm1, %v8821_v40, -1e+30   ;;  %v6313_v49 = vsel %vm846_vm2, %v8823_v48, -1e+30   ;;  %v8825_v51 = vld [vmem:[#allocation48_spill] sm:$0xff] }
 0x232   : > { %8822 = vst [vmem:[#allocation92_spill] sm:$0xff] %v6308_v44  ;;  %8824 = vst [vmem:[#allocation91_spill] sm:$0xff] %v6313_v49  ;;  %v6318_v54 = vsel %vm845_vm1, %v8825_v51, -1e+30   ;;  %v8827_v3 = vld [vmem:[#allocation49_spill] sm:$0xff]  ;;  %v8829_v9 = vld [vmem:[#allocation50_spill] sm:$0xff] }
 0x233   : > { %8826 = vst [vmem:[#allocation90_spill] sm:$0xff] %v6318_v54  ;;  %v6323_v8 = vsel %vm846_vm2, %v8827_v3, -1e+30   ;;  %v6328_v12 = vsel %vm845_vm1, %v8829_v9, -1e+30   ;;  %v8831_v13 = vld [vmem:[#allocation51_spill] sm:$0xff] }
 0x234   : > { %8828 = vst [vmem:[#allocation89_spill] sm:$0xff] %v6323_v8  ;;  %8830 = vst [vmem:[#allocation88_spill] sm:$0xff] %v6328_v12  ;;  %v6333_v17 = vsel %vm846_vm2, %v8831_v13, -1e+30   ;;  %v8833_v21 = vld [vmem:[#allocation52_spill] sm:$0xff]  ;;  %v8835_v4 = vld [vmem:[#allocation53_spill] sm:$0xff] }
 0x235   : > { %8832 = vst [vmem:[#allocation115_spill] sm:$0xff] %v6333_v17  ;;  %v6338_v22 = vsel %vm845_vm1, %v8833_v21, -1e+30   ;;  %v6343_v26 = vsel %vm846_vm2, %v8835_v4, -1e+30   ;;  %v8837_v30 = vld [vmem:[#allocation54_spill] sm:$0xff] }
 0x236   : > { %8834 = vst [vmem:[#allocation116_spill] sm:$0xff] %v6338_v22  ;;  %8836 = vst [vmem:[#allocation117_spill] sm:$0xff] %v6343_v26  ;;  %v6348_v31 = vsel %vm845_vm1, %v8837_v30, -1e+30   ;;  %v8839_v35 = vld [vmem:[#allocation55_spill] sm:$0xff]  ;;  %v8841_v40 = vld [vmem:[#allocation56_spill] sm:$0xff] }
 0x237   : > { %8838 = vst [vmem:[#allocation118_spill] sm:$0xff] %v6348_v31  ;;  %v6353_v39 = vsel %vm846_vm2, %v8839_v35, -1e+30   ;;  %v6358_v44 = vsel %vm845_vm1, %v8841_v40, -1e+30   ;;  %v8843_v48 = vld [vmem:[#allocation57_spill] sm:$0xff] }
 0x238   : > { %8840 = vst [vmem:[#allocation119_spill] sm:$0xff] %v6353_v39  ;;  %8842 = vst [vmem:[#allocation120_spill] sm:$0xff] %v6358_v44  ;;  %v6363_v3 = vsel %vm846_vm2, %v8843_v48, -1e+30   ;;  %v8845_v49 = vld [vmem:[#allocation58_spill] sm:$0xff]  ;;  %v8847_v51 = vld [vmem:[#allocation59_spill] sm:$0xff] }
 0x239   : > { %8844 = vst [vmem:[#allocation121_spill] sm:$0xff] %v6363_v3  ;;  %v6368_v4 = vsel %vm845_vm1, %v8845_v49, -1e+30   ;;  %v6373_v54 = vsel %vm846_vm2, %v8847_v51, -1e+30   ;;  %v8849_v8 = vld [vmem:[#allocation60_spill] sm:$0xff] }
 0x23a   : > { %8846 = vst [vmem:[#allocation122_spill] sm:$0xff] %v6368_v4  ;;  %8848 = vst [vmem:[#allocation123_spill] sm:$0xff] %v6373_v54  ;;  %v6378_v9 = vsel %vm845_vm1, %v8849_v8, -1e+30   ;;  %v8851_v12 = vld [vmem:[#allocation61_spill] sm:$0xff]  ;;  %v8853_v17 = vld [vmem:[#allocation62_spill] sm:$0xff] }
 0x23b   : > { %8850 = vst [vmem:[#allocation124_spill] sm:$0xff] %v6378_v9  ;;  %v6383_v13 = vsel %vm846_vm2, %v8851_v12, -1e+30   ;;  %v6388_v8 = vsel %vm845_vm1, %v8853_v17, -1e+30   ;;  %v8855_v21 = vld [vmem:[#allocation63_spill] sm:$0xff] }
 0x23c   : > { %8852 = vst [vmem:[#allocation125_spill] sm:$0xff] %v6383_v13  ;;  %8854 = vst [vmem:[#allocation126_spill] sm:$0xff] %v6388_v8  ;;  %v6393_v9 = vsel %vm846_vm2, %v8855_v21, -1e+30   ;;  %v8857_v22 = vld [vmem:[#allocation64_spill] sm:$0xff]  ;;  %v8859_v30 = vld [vmem:[#allocation65_spill] sm:$0xff] }
 0x23d   : > { %8856 = vst [vmem:[#allocation127_spill] sm:$0xff] %v6393_v9  ;;  %v6398_v26 = vsel %vm845_vm1, %v8857_v22, -1e+30   ;;  %v6403_v31 = vsel %vm846_vm2, %v8859_v30, -1e+30   ;;  %v8861_v35 = vld [vmem:[#allocation66_spill] sm:$0xff] }
 0x23e   : > { %8858 = vst [vmem:[#allocation128_spill] sm:$0xff] %v6398_v26  ;;  %8860 = vst [vmem:[#allocation129_spill] sm:$0xff] %v6403_v31  ;;  %v6408_v39 = vsel %vm845_vm1, %v8861_v35, -1e+30   ;;  %v8863_v40 = vld [vmem:[#allocation67_spill] sm:$0xff]  ;;  %v8865_v48 = vld [vmem:[#allocation68_spill] sm:$0xff] }
 0x23f   : > { %8862 = vst [vmem:[#allocation130_spill] sm:$0xff] %v6408_v39  ;;  %v6413_v44 = vsel %vm846_vm2, %v8863_v40, -1e+30   ;;  %v6418_v49 = vsel %vm845_vm1, %v8865_v48, -1e+30   ;;  %v8867_v51 = vld [vmem:[#allocation69_spill] sm:$0xff] }
 0x240   : > { %8864 = vst [vmem:[#allocation131_spill] sm:$0xff] %v6413_v44  ;;  %8866 = vst [vmem:[#allocation132_spill] sm:$0xff] %v6418_v49  ;;  %v6423_v54 = vsel %vm846_vm2, %v8867_v51, -1e+30   ;;  %v8869_v12 = vld [vmem:[#allocation70_spill] sm:$0xff]  ;;  %v8871_v17 = vld [vmem:[#allocation71_spill] sm:$0xff] }
 0x241   : > { %8868 = vst [vmem:[#allocation133_spill] sm:$0xff] %v6423_v54  ;;  %v6428_v13 = vsel %vm845_vm1, %v8869_v12, -1e+30   ;;  %v6433_v21 = vsel %vm846_vm2, %v8871_v17, -1e+30   ;;  %v8873_v22 = vld [vmem:[#allocation72_spill] sm:$0xff] }
 0x242   : > { %v8870_v57 = vmov %v6428_v13  ;;  %v8872_v3 = vmov %v6433_v21  ;;  %v6438_v26 = vsel %vm845_vm1, %v8873_v22, -1e+30   ;;  %v8875_v30 = vld [vmem:[#allocation73_spill] sm:$0xff]  ;;  %v8877_v35 = vld [vmem:[#allocation74_spill] sm:$0xff]  ;;  %v8879_v40 = vld [vmem:[#allocation75_spill] sm:$0xff]  ;;  %vm911_vm3 = vcmp.lt.s32.totalorder %v6098_v60, 320 }
 0x243   : > { %v8874_v4 = vmov %v6438_v26  ;;  %v6443_v31 = vsel %vm846_vm2, %v8875_v30, -1e+30   ;;  %v6448_v39 = vsel %vm845_vm1, %v8877_v35, -1e+30   ;;  %v6453_v44 = vsel %vm846_vm2, %v8879_v40, -1e+30   ;;  %vm6484_vm7 = vmpackc.low %vm911_vm3, %vm911_vm3 }
 0x244   : > { %v8876_v58 = vmov %v6443_v31  ;;  %v8878_v59 = vmov %v6448_v39  ;;  %v8880_v55 = vmov %v6453_v44  ;;  %v8881_v48 = vld [vmem:[#allocation76_spill] sm:$0xff]  ;;  %v8883_v51 = vld [vmem:[#allocation77_spill] sm:$0xff]  ;;  %v8885_v12 = vld [vmem:[#allocation78_spill] sm:$0xff]  ;;  %vm912_vm4 = vcmp.lt.s32.totalorder %v6101_v61, 320 }
 0x245   : > { %v6458_v49 = vsel %vm845_vm1, %v8881_v48, -1e+30   ;;  %v6463_v54 = vsel %vm846_vm2, %v8883_v51, -1e+30   ;;  %v6468_v13 = vsel %vm845_vm1, %v8885_v12, -1e+30   ;;  %vm6499_vm9 = vmpackc.low %vm912_vm4, %vm912_vm4 }
 0x246   : > { %v8882_v8 = vmov %v6458_v49  ;;  %v8884_v9 = vmov %v6463_v54  ;;  %v8886_v46 = vmov %v6468_v13  ;;  %vm913_vm5 = vcmp.lt.s32.totalorder %v6104_v62, 320  ;;  %v8887_v17 = vld [vmem:[#allocation79_spill] sm:$0xff]  ;;  %v8889_v22 = vld [vmem:[#allocation80_spill] sm:$0xff]  ;;  %v8893_v60 = vld [vmem:[#allocation81_spill] sm:$0xff] }
 0x247   : > { %v6476_v21 = vsel %vm846_vm2, %v8887_v17, -1e+30   ;;  %v6481_v26 = vsel %vm845_vm1, %v8889_v22, -1e+30   ;;  %vm914_vm6 = vcmp.lt.s32.totalorder %v6107_v63, 320  ;;  %v8894_v62 = vld [vmem:[#allocation82_spill] sm:$0xff]  ;;  %vm6514_vm11 = vmpackc.low %vm913_vm5, %vm913_vm5 }
 0x248   : > { %v8888_v47 = vmov %v6476_v21  ;;  %v8890_v50 = vmov %v6481_v26  ;;  %v6491_v61 = vsel %vm846_vm2, %v8893_v60, -1e+30   ;;  %v6496_v31 = vsel %vm845_vm1, %v8894_v62, -1e+30   ;;  %v8898_v63 = vld [vmem:[#allocation83_spill] sm:$0xff]  ;;  %v8900_v40 = vld [vmem:[#allocation84_spill] sm:$0xff]  ;;  %vm6529_vm13 = vmpackc.low %vm914_vm6, %vm914_vm6 }
 0x249   : > { %v8895_v52 = vmov %v6496_v31  ;;  %vm915_vm8 = vcmp.lt.s32.totalorder %v6110_v14, 320  ;;  %v6506_v39 = vsel %vm846_vm2, %v8898_v63, -1e+30   ;;  %v6511_v44 = vsel %vm845_vm1, %v8900_v40, -1e+30   ;;  %v8904_v14 = vld [vmem:[#allocation85_spill] sm:$0xff] }
 0x24a   : > { %v8899_v53 = vmov %v6506_v39  ;;  %v8901_v60 = vmov %v6511_v44  ;;  %vm916_vm10 = vcmp.lt.s32.totalorder %v6113_v15, 320  ;;  %v6521_v49 = vsel %vm846_vm2, %v8904_v14, -1e+30   ;;  %v8906_v51 = vld [vmem:[#allocation86_spill] sm:$0xff]  ;;  %v8910_v15 = vld [vmem:[#allocation87_spill] sm:$0xff]  ;;  %vm6541_vm3 = vmpackc.low %vm915_vm8, %vm915_vm8 }
 0x24b   : > { %v8905_v62 = vmov %v6521_v49  ;;  %v6526_v54 = vsel %vm845_vm1, %v8906_v51, -1e+30   ;;  %v6536_v13 = vsel %vm846_vm2, %v8910_v15, -1e+30   ;;  %vm918_vm14 = vcmp.lt.s32.totalorder %v6119_v18, 320  ;;  %vm6549_vm2 = vmpackc.low %vm916_vm10, %vm916_vm10  ;;  %v8938_v51 = vld [vmem:[#allocation9_spill] sm:$0xff] }
 0x24c   : > { %v8907_v63 = vmov %v6526_v54  ;;  %v8911_v56 = vmov %v6536_v13  ;;  %v8912_v5 = vmov 0  ;;  %vm924_vm6 = vcmp.lt.s32.totalorder %v6137_v27, 320  ;;  %v8950_v13 = vld [vmem:[#allocation14_spill] sm:$0xff]  ;;  %v9011_v15 = vld [vmem:[#allocation131_spill] sm:$0xff] }
 0x24d   : > { %v8913_v5 = vsel %vm6541_vm3, 4294967295, %v8912_v5  ;;  %vm925_vm15 = vcmp.lt.s32.totalorder %v6140_v28, 320  ;;  %vm926_vm0 = vcmp.lt.s32.totalorder %v6143_v29, 320  ;;  %vm927_vm8 = vcmp.lt.s32.totalorder %v6146_v32, 320  ;;  %vm950_vm3 = vmpackc.low %vm918_vm14, %vm918_vm14 }
 0x24e   : > { %vm928_vm12 = vcmp.lt.s32.totalorder %v6149_v33, 320  ;;  %vm8916_vm1 = vcmp.lt.s32.totalorder %v6116_v16, 320  ;;  %v5390_v18 = vmov 0   ;;  %vm930_vm10 = vcmp.lt.s32.totalorder %v6156_v36, 320 }
 0x24f   : > { %vm949_vm4 = vmpackc.low %vm8916_vm1, %vm8916_vm1  ;;  %v975_v17 = vsel %vm6484_vm7, 65537, %v5390_v18  ;;  %v976_v21 = vsel %vm6499_vm9, 65537, %v5390_v18  ;;  %v977_v22 = vsel %vm6514_vm11, 65537, %v5390_v18  ;;  %vm8917_vm1 = vcmp.lt.s32.totalorder %v6122_v19, 320 }
 0x250   : > { %vm951_vm5 = vmpackc.low %vm8917_vm1, %vm8917_vm1  ;;  %v978_v16 = vsel %vm6529_vm13, 65537, %v5390_v18  ;;  %vm8918_vm7 = vnez %v8913_v5  ;;  %v980_v30 = vsel %vm6549_vm2, 65537, %v5390_v18  ;;  %v981_v31 = vsel %vm949_vm4, 65537, %v5390_v18  ;;  %v9019_v5 = vld [vmem:[#allocation123_spill] sm:$0xff] }
 0x251   : > { %v979_v26 = vsel %vm8918_vm7, 65537, %v5390_v18  ;;  %vm931_vm9 = vcmp.lt.s32.totalorder %v6159_v37, 320  ;;  %vm8919_vm11 = vcmp.lt.s32.totalorder %v6125_v20, 320  ;;  %v982_v19 = vsel %vm950_vm3, 65537, %v5390_v18  ;;  %vm959_vm13 = vmpackc.low %vm927_vm8, %vm927_vm8 }
 0x252   : > { %vm952_vm14 = vmpackc.low %vm8919_vm11, %vm8919_vm11  ;;  %v983_v35 = vsel %vm951_vm5, 65537, %v5390_v18  ;;  %v3174_v39 = vcombine.low %v975_v17, %v976_v21  ;;  %v3175_v40 = vcombine.low %v977_v22, %v978_v16  ;;  %vm8920_vm1 = vcmp.lt.s32.totalorder %v6128_v23, 320 }
 0x253   : > { %vm953_vm2 = vmpackc.low %vm8920_vm1, %vm8920_vm1  ;;  %v984_v44 = vsel %vm952_vm14, 65537, %v5390_v18  ;;  %v3176_v48 = vcombine.low %v979_v26, %v980_v30  ;;  %v3177_v14 = vcombine.low %v981_v31, %v982_v19  ;;  %vm8921_vm7 = vcmp.lt.s32.totalorder %v6131_v24, 320  ;;  %v8945_v31 = vld [vmem:[#allocation13_spill] sm:$0xff]  ;;  %v8973_v26 = vld [vmem:[#allocation19_spill] sm:$0xff] }
 0x254   : > { %vm954_vm3 = vmpackc.low %vm8921_vm7, %vm8921_vm7  ;;  %v985_v20 = vsel %vm953_vm2, 65537, %v5390_v18  ;;  %v3178_v49 = vcombine.low %v983_v35, %v984_v44  ;;  %vm6600_vm5 = vcmp.ne.s16.totalorder %v3174_v39, 0  ;;  %vm6604_vm11 = vcmp.ne.s16.totalorder %v3175_v40, 0  ;;  %v8941_v44 = vld [vmem:[#allocation12_spill] sm:$0xff] }
 0x255   : > { %vm8927_vm1 = vcmp.lt.s32.totalorder %v6134_v25, 320  ;;  %v986_v24 = vsel %vm954_vm3, 65537, %v5390_v18  ;;  %vm6613_vm7 = vcmp.ne.s16.totalorder %v3176_v48, 0  ;;  %vm6617_vm2 = vcmp.ne.s16.totalorder %v3177_v14, 0  ;;  %vm957_vm14 = vmpackc.low %vm925_vm15, %vm925_vm15  ;;  %v8940_v48 = vld [vmem:[#allocation11_spill] sm:$0xff]  ;;  %v9012_v14 = vld [vmem:[#allocation130_spill] sm:$0xff] }
 0x256   : > { %vm955_vm4 = vmpackc.low %vm8927_vm1, %vm8927_vm1  ;;  %v3179_v17 = vcombine.low %v985_v20, %v986_v24  ;;  %vm6629_vm3 = vcmp.ne.s16.totalorder %v3178_v49, 0  ;;  %v8939_v49 = vld [vmem:[#allocation10_spill] sm:$0xff]  ;;  %v1074_v24 = vsel %vm6617_vm2, %v8940_v48, 0   ;;  %v989_v28 = vsel %vm957_vm14, 65537, %v5390_v18 }
 0x257   : > { %vm956_vm1 = vmpackc.low %vm924_vm6, %vm924_vm6  ;;  %v987_v25 = vsel %vm955_vm4, 65537, %v5390_v18  ;;  %v1073_v20 = vsel %vm6613_vm7, %v8939_v49, 0   ;;  %v1075_v16 = vsel %vm6629_vm3, %v8941_v44, 0   ;;  %v991_v35 = vsel %vm959_vm13, 65537, %v5390_v18 }
 0x258   : > { %v988_v27 = vsel %vm956_vm1, 65537, %v5390_v18  ;;  %vm958_vm15 = vmpackc.low %vm926_vm0, %vm926_vm0  ;;  %vm6655_vm4 = vcmp.ne.s16.totalorder %v3179_v17, 0  ;;  %vm939_vm0 = vcmp.lt.s32.totalorder %v6184_v2, 320  ;;  %v8986_v44 = vmov %v1075_v16  ;;  %v9010_v16 = vld [vmem:[#allocation132_spill] sm:$0xff] }
 0x259   : > { %v3180_v22 = vcombine.low %v987_v25, %v988_v27  ;;  %v990_v30 = vsel %vm958_vm15, 65537, %v5390_v18  ;;  %v1076_v29 = vsel %vm6655_vm4, %v8945_v31, 0   ;;  %vm960_vm14 = vmpackc.low %vm928_vm12, %vm928_vm12  ;;  %vm8949_vm15 = vcmp.lt.s32.totalorder %v6152_v34, 320 }
 0x25a   : > { %v3181_v39 = vcombine.low %v989_v28, %v990_v30  ;;  %vm961_vm6 = vmpackc.low %vm8949_vm15, %vm8949_vm15  ;;  %v992_v32 = vsel %vm960_vm14, 65537, %v5390_v18  ;;  %v8954_v28 = vld [vmem:[#allocation15_spill] sm:$0xff]  ;;  %vm8958_vm15 = vcmp.lt.s32.totalorder %v6166_v41, 320  ;;  %v8959_v30 = vld [vmem:[#allocation16_spill] sm:$0xff]  ;;  %v8985_v40 = vmov %v1076_v29 }
 0x25b   : > { %vm6672_vm1 = vcmp.ne.s16.totalorder %v3180_v22, 0  ;;  %vm962_vm13 = vmpackc.low %vm930_vm10, %vm930_vm10  ;;  %v993_v17 = vsel %vm961_vm6, 65537, %v5390_v18  ;;  %v3182_v21 = vcombine.low %v991_v35, %v992_v32  ;;  %vm8955_vm10 = vcmp.lt.s32.totalorder %v6162_v38, 320 }
 0x25c   : > { %v1077_v33 = vsel %vm6672_vm1, %v8950_v13, 0   ;;  %vm6689_vm8 = vcmp.ne.s16.totalorder %v3181_v39, 0  ;;  %vm963_vm14 = vmpackc.low %vm931_vm9, %vm931_vm9  ;;  %v994_v34 = vsel %vm962_vm13, 65537, %v5390_v18  ;;  %v8964_v39 = vld [vmem:[#allocation17_spill] sm:$0xff]  ;;  %v8987_v48 = vmov %v1074_v24 }
 0x25d   : > { %v1078_v13 = vsel %vm6689_vm8, %v8954_v28, 0   ;;  %vm964_vm6 = vmpackc.low %vm8955_vm10, %vm8955_vm10  ;;  %v995_v36 = vsel %vm963_vm14, 65537, %v5390_v18  ;;  %v3183_v22 = vcombine.low %v993_v17, %v994_v34  ;;  %vm6705_vm12 = vcmp.ne.s16.totalorder %v3182_v21, 0  ;;  %v8969_v34 = vld [vmem:[#allocation18_spill] sm:$0xff] }
 0x25e   : > { %vm965_vm9 = vmpackc.low %vm8958_vm15, %vm8958_vm15  ;;  %v996_v37 = vsel %vm964_vm6, 65537, %v5390_v18  ;;  %v1079_v17 = vsel %vm6705_vm12, %v8959_v30, 0   ;;  %vm8960_vm8 = vcmp.lt.s32.totalorder %v6169_v42, 320  ;;  %vm8963_vm10 = vcmp.lt.s32.totalorder %v6172_v43, 320 }
 0x25f   : > { %vm966_vm13 = vmpackc.low %vm8960_vm8, %vm8960_vm8  ;;  %v997_v38 = vsel %vm965_vm9, 65537, %v5390_v18  ;;  %v3184_v31 = vcombine.low %v995_v36, %v996_v37  ;;  %vm6720_vm14 = vcmp.ne.s16.totalorder %v3183_v22, 0  ;;  %vm8965_vm12 = vcmp.lt.s32.totalorder %v6175_v45, 320 }
 0x260   : > { %vm967_vm15 = vmpackc.low %vm8963_vm10, %vm8963_vm10  ;;  %v998_v41 = vsel %vm966_vm13, 65537, %v5390_v18  ;;  %v1080_v21 = vsel %vm6720_vm14, %v8964_v39, 0   ;;  %vm8968_vm8 = vcmp.lt.s32.totalorder %v6178_v0, 320  ;;  %vm8970_vm13 = vcmp.lt.s32.totalorder %v6181_v1, 320 }
 0x261   : > { %vm968_vm6 = vmpackc.low %vm8965_vm12, %vm8965_vm12  ;;  %v999_v42 = vsel %vm967_vm15, 65537, %v5390_v18  ;;  %v3185_v32 = vcombine.low %v997_v38, %v998_v41  ;;  %vm6735_vm9 = vcmp.ne.s16.totalorder %v3184_v31, 0  ;;  %v8978_v38 = vld [vmem:[#allocation20_spill] sm:$0xff]  ;;  %v8980_v41 = vld [vmem:[#allocation21_spill] sm:$0xff]  ;;  %v8984_v12 = vmov %v1077_v33 }
 0x262   : > { %vm969_vm10 = vmpackc.low %vm8968_vm8, %vm8968_vm8  ;;  %v1000_v43 = vsel %vm968_vm6, 65537, %v5390_v18  ;;  %v1081_v22 = vsel %vm6735_vm9, %v8969_v34, 0   ;;  %vm8974_vm6 = vcmp.lt.s32.totalorder %v6192_v6, 320  ;;  %v8988_v49 = vmov %v1073_v20 }
 0x263   : > { %vm970_vm14 = vmpackc.low %vm8970_vm13, %vm8970_vm13  ;;  %v1001_v45 = vsel %vm969_vm10, 65537, %v5390_v18  ;;  %v3186_v28 = vcombine.low %v999_v42, %v1000_v43  ;;  %vm6750_vm15 = vcmp.ne.s16.totalorder %v3185_v32, 0  ;;  %vm8977_vm10 = vcmp.lt.s32.totalorder %v6195_v7, 320  ;;  %v8981_v42 = vld [vmem:[#allocation22_spill] sm:$0xff]  ;;  %v8982_v32 = vld [vmem:[#allocation23_spill] sm:$0xff] }
 0x264   : > { %vm971_vm12 = vmpackc.low %vm939_vm0, %vm939_vm0  ;;  %v1002_v0 = vsel %vm970_vm14, 65537, %v5390_v18  ;;  %v1082_v26 = vsel %vm6750_vm15, %v8973_v26, 0   ;;  %vm8979_vm13 = vcmp.lt.s32.totalorder %v6208_v11, 320  ;;  %v8989_v51 = vsel %vm6604_vm11, %v8938_v51, 0   ;;  %v9013_v11 = vld [vmem:[#allocation129_spill] sm:$0xff] }
 0x265   : > { %vm972_vm9 = vmpackc.low %vm8974_vm6, %vm8974_vm6  ;;  %v1003_v1 = vsel %vm971_vm12, 65537, %v5390_v18  ;;  %v3187_v37 = vcombine.low %v1001_v45, %v1002_v0  ;;  %vm6765_vm8 = vcmp.ne.s16.totalorder %v3186_v28, 0  ;;  %v8990_v54 = vsel %vm6600_vm5, %v8934_v10, 0   ;;  %v9014_v10 = vld [vmem:[#allocation128_spill] sm:$0xff]  ;;  %v9024_v0 = vld [vmem:[#allocation118_spill] sm:$0xff] }
 0x266   : > { %vm973_vm0 = vmpackc.low %vm8977_vm10, %vm8977_vm10  ;;  %v1004_v2 = vsel %vm972_vm9, 65537, %v5390_v18  ;;  %v1083_v30 = vsel %vm6765_vm8, %v8978_v38, 0   ;;  %v8991_v45 = vmov %v8911_v56  ;;  %v8992_v43 = vmov %v8907_v63  ;;  %v9025_v63 = vld [vmem:[#allocation117_spill] sm:$0xff]  ;;  %v9040_v56 = vld [vmem:[#allocation94_spill] sm:$0xff] }
 0x267   : > { %vm974_vm14 = vmpackc.low %vm8979_vm13, %vm8979_vm13  ;;  %v1005_v6 = vsel %vm973_vm0, 65537, %v5390_v18  ;;  %v3188_v31 = vcombine.low %v1003_v1, %v1004_v2  ;;  %vm1068_vm15 = vcmp.ne.s16.totalorder %v3187_v37, 0  ;;  %v8995_v38 = vmov %v8899_v53  ;;  %v9022_v2 = vld [vmem:[#allocation120_spill] sm:$0xff]  ;;  %v9023_v1 = vld [vmem:[#allocation119_spill] sm:$0xff]  ;;  %9041 = vst [vmem:[#allocation94_spill] sm:$0xff] %v9040_v56 }
 0x268   : > { %v1006_v35 = vsel %vm974_vm14, 65537, %v5390_v18  ;;  %v1084_v7 = vsel %vm1068_vm15, %v8980_v41, 0   ;;  %v8994_v41 = vmov %v8901_v60  ;;  %v8996_v37 = vmov %v8895_v52  ;;  %v9009_v18 = vld [vmem:[#allocation133_spill] sm:$0xff]  ;;  %v9036_v53 = vld [vmem:[#allocation92_spill] sm:$0xff]  ;;  %v9048_v60 = vld [vmem:[#allocation98_spill] sm:$0xff] }
 0x269   : > { %v3189_v39 = vcombine.low %v1005_v6, %v1006_v35  ;;  %vm1069_vm12 = vcmp.ne.s16.totalorder %v3188_v31, 0  ;;  %v8983_v31 = vmov %v1084_v7  ;;  %v8997_v36 = vmov %v6491_v61  ;;  %v9017_v7 = vld [vmem:[#allocation125_spill] sm:$0xff]  ;;  %v9018_v6 = vld [vmem:[#allocation124_spill] sm:$0xff]  ;;  %v9027_v61 = vld [vmem:[#allocation115_spill] sm:$0xff]  ;;  %9037 = vst [vmem:[#allocation92_spill] sm:$0xff] %v9036_v53 }
 0x26a   : > { %v1085_v35 = vsel %vm1069_vm12, %v8981_v42, 0   ;;  %v8993_v42 = vmov %v8905_v62  ;;  %v8998_v34 = vmov %v8890_v50  ;;  %v8999_v33 = vmov %v8888_v47  ;;  %v9026_v62 = vld [vmem:[#allocation116_spill] sm:$0xff]  ;;  %v9030_v47 = vld [vmem:[#allocation89_spill] sm:$0xff]  ;;  %v9034_v52 = vld [vmem:[#allocation91_spill] sm:$0xff]  ;;  %9049 = vst [vmem:[#allocation98_spill] sm:$0xff] %v9048_v60 }
 0x26b   : > { %vm1070_vm6 = vcmp.ne.s16.totalorder %v3189_v39, 0  ;;  %v9001_v29 = vmov %v8884_v9  ;;  %v9002_v28 = vmov %v8882_v8  ;;  %v9003_v27 = vmov %v8880_v55  ;;  %v9015_v9 = vld [vmem:[#allocation127_spill] sm:$0xff]  ;;  %v9016_v8 = vld [vmem:[#allocation126_spill] sm:$0xff]  ;;  %9031 = vst [vmem:[#allocation89_spill] sm:$0xff] %v9030_v47  ;;  %v9032_v50 = vld [vmem:[#allocation90_spill] sm:$0xff] }
 0x26c   : > { %v1086_v39 = vsel %vm1070_vm6, %v8982_v32, 0   ;;  %v9000_v32 = vmov %v8886_v46  ;;  %v9004_v25 = vmov %v8878_v59  ;;  %v9005_v24 = vmov %v8876_v58  ;;  %v9028_v46 = vld [vmem:[#allocation88_spill] sm:$0xff]  ;;  %9033 = vst [vmem:[#allocation90_spill] sm:$0xff] %v9032_v50  ;;  %9035 = vst [vmem:[#allocation91_spill] sm:$0xff] %v9034_v52  ;;  %v9038_v55 = vld [vmem:[#allocation93_spill] sm:$0xff] }
 0x26d   : > { %v9006_v23 = vmov %v8874_v4  ;;  %v9007_v20 = vmov %v8872_v3  ;;  %v9008_v19 = vmov %v8870_v57  ;;  %v9020_v4 = vld [vmem:[#allocation122_spill] sm:$0xff]  ;;  %v9021_v3 = vld [vmem:[#allocation121_spill] sm:$0xff]  ;;  %9029 = vst [vmem:[#allocation88_spill] sm:$0xff] %v9028_v46  ;;  %9039 = vst [vmem:[#allocation93_spill] sm:$0xff] %v9038_v55 }
 0x26e   : > { %v9042_v57 = vld [vmem:[#allocation95_spill] sm:$0xff]  ;;  %v9044_v58 = vld [vmem:[#allocation96_spill] sm:$0xff]  ;;  %v9046_v59 = vld [vmem:[#allocation97_spill] sm:$0xff] }
 0x26f   : > { %9043 = vst [vmem:[#allocation95_spill] sm:$0xff] %v9042_v57  ;;  %9045 = vst [vmem:[#allocation96_spill] sm:$0xff] %v9044_v58  ;;  %v9050_v46 = vld [vmem:[#allocation99_spill] sm:$0xff]  ;;  %v9052_v47 = vld [vmem:[#allocation100_spill] sm:$0xff] }
 0x270   : > { %9047 = vst [vmem:[#allocation97_spill] sm:$0xff] %v9046_v59  ;;  %9051 = vst [vmem:[#allocation99_spill] sm:$0xff] %v9050_v46  ;;  %v9054_v50 = vld [vmem:[#allocation101_spill] sm:$0xff]  ;;  %v9056_v52 = vld [vmem:[#allocation102_spill] sm:$0xff] }
 0x271   : > { %9053 = vst [vmem:[#allocation100_spill] sm:$0xff] %v9052_v47  ;;  %9055 = vst [vmem:[#allocation101_spill] sm:$0xff] %v9054_v50  ;;  %v9058_v53 = vld [vmem:[#allocation103_spill] sm:$0xff]  ;;  %v9062_v50 = vld [vmem:[#allocation112_spill] sm:$0xff] }
 0x272   : > { %9057 = vst [vmem:[#allocation102_spill] sm:$0xff] %v9056_v52  ;;  %9059 = vst [vmem:[#allocation103_spill] sm:$0xff] %v9058_v53  ;;  %v9060_v53 = vld [vmem:[#allocation114_spill] sm:$0xff]  ;;  %v9061_v52 = vld [vmem:[#allocation113_spill] sm:$0xff] }
 0x273   : > { %v9063_v47 = vld [vmem:[#allocation111_spill] sm:$0xff]  ;;  %v9064_v46 = vld [vmem:[#allocation110_spill] sm:$0xff]  ;;  %v9065_v60 = vld [vmem:[#allocation109_spill] sm:$0xff] }
 0x274   : > { %v9066_v59 = vld [vmem:[#allocation108_spill] sm:$0xff]  ;;  %v9067_v58 = vld [vmem:[#allocation107_spill] sm:$0xff]  ;;  %v9068_v57 = vld [vmem:[#allocation106_spill] sm:$0xff] }
 0x275   : > { %v9069_v56 = vld [vmem:[#allocation105_spill] sm:$0xff]  ;;  %v9070_v55 = vld [vmem:[#allocation104_spill] sm:$0xff] }
 0x276 PF: > { %9087 = vst [vmem:[#allocation134_spill] sm:$0xff] %v5067_v39  ;;  %9088 = vst [vmem:[#allocation135_spill] sm:$0xff] %v5071_v35  ;;  %s3359_s25 = scalar_select %p3172_p2, 1, 0  ;;  %vm2050_vm11 = vcmask 7168   ;;  %v5383_v55 = vphi %v6084_v55, %v9070_v55   ;;  %v5379_v56 = vphi %v6082_v56, %v9069_v56   ;;  %v5375_v57 = vphi %v6080_v57, %v9068_v57   ;;  %v5371_v58 = vphi %v6078_v58, %v9067_v58   ;;  %v5367_v59 = vphi %v6076_v59, %v9066_v59   ;;  %v5363_v60 = vphi %v6074_v60, %v9065_v60   ;;  %v5359_v46 = vphi %v6072_v46, %v9064_v46   ;;  %v5355_v47 = vphi %v6070_v47, %v9063_v47   ;;  %v5351_v50 = vphi %v6068_v50, %v9062_v50   ;;  %v5347_v52 = vphi %v6066_v52, %v9061_v52   ;;  %v5343_v53 = vphi %v6064_v53, %v9060_v53   ;;  %v5275_v61 = vphi %v6030_v61, %v9027_v61   ;;  %v5271_v62 = vphi %v6028_v62, %v9026_v62   ;;  %v5267_v63 = vphi %v6026_v63, %v9025_v63   ;;  %v5263_v0 = vphi %v6024_v0, %v9024_v0   ;;  %v5259_v1 = vphi %v6022_v1, %v9023_v1   ;;  %v5255_v2 = vphi %v6020_v2, %v9022_v2   ;;  %v5251_v3 = vphi %v6018_v3, %v9021_v3   ;;  %v5247_v4 = vphi %v6016_v4, %v9020_v4   ;;  %v5243_v5 = vphi %v6014_v5, %v9019_v5   ;;  %v5239_v6 = vphi %v6012_v6, %v9018_v6   ;;  %v5235_v7 = vphi %v6010_v7, %v9017_v7   ;;  %v5231_v8 = vphi %v6008_v8, %v9016_v8   ;;  %v5227_v9 = vphi %v6006_v9, %v9015_v9   ;;  %v5223_v10 = vphi %v6004_v10, %v9014_v10   ;;  %v5219_v11 = vphi %v6002_v11, %v9013_v11   ;;  %v5215_v14 = vphi %v6000_v14, %v9012_v14   ;;  %v5211_v15 = vphi %v5998_v15, %v9011_v15   ;;  %v5207_v16 = vphi %v5996_v16, %v9010_v16   ;;  %v5203_v18 = vphi %v5994_v18, %v9009_v18   ;;  %v5199_v19 = vphi %v5992_v19, %v9008_v19   ;;  %v5195_v20 = vphi %v5990_v20, %v9007_v20   ;;  %v5191_v23 = vphi %v5988_v23, %v9006_v23   ;;  %v5187_v24 = vphi %v5986_v24, %v9005_v24   ;;  %v5183_v25 = vphi %v5984_v25, %v9004_v25   ;;  %v5179_v27 = vphi %v5982_v27, %v9003_v27   ;;  %v5175_v28 = vphi %v5980_v28, %v9002_v28   ;;  %v5171_v29 = vphi %v5978_v29, %v9001_v29   ;;  %v5167_v32 = vphi %v5976_v32, %v9000_v32   ;;  %v5163_v33 = vphi %v5974_v33, %v8999_v33   ;;  %v5159_v34 = vphi %v5972_v34, %v8998_v34   ;;  %v5155_v36 = vphi %v5970_v36, %v8997_v36   ;;  %v5151_v37 = vphi %v5968_v37, %v8996_v37   ;;  %v5147_v38 = vphi %v5966_v38, %v8995_v38   ;;  %v5143_v41 = vphi %v5964_v41, %v8994_v41   ;;  %v5139_v42 = vphi %v5962_v42, %v8993_v42   ;;  %v5135_v43 = vphi %v5960_v43, %v8992_v43   ;;  %v5131_v45 = vphi %v5958_v45, %v8991_v45   ;;  %v5127_v54 = vphi %v5956_v54, %v8990_v54   ;;  %v5123_v51 = vphi %v5954_v51, %v8989_v51   ;;  %v5119_v49 = vphi %v5952_v49, %v8988_v49   ;;  %v5115_v48 = vphi %v5950_v48, %v8987_v48   ;;  %v5111_v44 = vphi %v5948_v44, %v8986_v44   ;;  %v5107_v40 = vphi %v5946_v40, %v8985_v40   ;;  %v5103_v12 = vphi %v5944_v12, %v8984_v12   ;;  %v5099_v13 = vphi %v5942_v13, %v1078_v13   ;;  %v5095_v17 = vphi %v5940_v17, %v1079_v17   ;;  %v5091_v21 = vphi %v5938_v21, %v1080_v21   ;;  %v5087_v22 = vphi %v5936_v22, %v1081_v22   ;;  %v5083_v26 = vphi %v5934_v26, %v1082_v26   ;;  %v5079_v30 = vphi %v5932_v30, %v1083_v30   ;;  %v5075_v31 = vphi %v5930_v31, %v8983_v31   ;;  %v5071_v35 = vphi %v5928_v35, %v1085_v35   ;;  %v5067_v39 = vphi %v5926_v39, %v1086_v39  }
 0x277   : > { %9089 = vst [vmem:[#allocation136_spill] sm:$0xff] %v5075_v31  ;;  %9090 = vst [vmem:[#allocation137_spill] sm:$0xff] %v5079_v30 }
 0x278   : > { %9091 = vst [vmem:[#allocation138_spill] sm:$0xff] %v5083_v26  ;;  %9092 = vst [vmem:[#allocation139_spill] sm:$0xff] %v5087_v22  ;;  %v9124_v22 = vld [vmem:[#allocation99_spill] sm:$0xff]  ;;  %v9126_v26 = vld [vmem:[#allocation101_spill] sm:$0xff] }
 0x279   : > { %9093 = vst [vmem:[#allocation140_spill] sm:$0xff] %v5091_v21  ;;  %9094 = vst [vmem:[#allocation141_spill] sm:$0xff] %v5095_v17  ;;  %v9120_v17 = vld [vmem:[#allocation95_spill] sm:$0xff]  ;;  %v9122_v21 = vld [vmem:[#allocation97_spill] sm:$0xff] }
 0x27a   : > { %9095 = vst [vmem:[#allocation142_spill] sm:$0xff] %v5099_v13  ;;  %9096 = vst [vmem:[#allocation143_spill] sm:$0xff] %v5103_v12  ;;  %v9128_v30 = vld [vmem:[#allocation103_spill] sm:$0xff]  ;;  %v9131_v12 = vld [vmem:[#allocation24_spill] sm:$0xff] }
 0x27b   : > { %9097 = vst [vmem:[#allocation144_spill] sm:$0xff] %v5107_v40  ;;  %9098 = vst [vmem:[#allocation145_spill] sm:$0xff] %v5111_v44  ;;  %v9127_v44 = vld [vmem:[#allocation102_spill] sm:$0xff]  ;;  %v3360_v40 = vstv %s3359_s25  ;;  %v9132_v13 = vld [vmem:[#allocation25_spill] sm:$0xff] }
 0x27c   : > { %9099 = vst [vmem:[#allocation146_spill] sm:$0xff] %v5115_v48  ;;  %9100 = vst [vmem:[#allocation147_spill] sm:$0xff] %v5119_v49  ;;  %v9123_v49 = vld [vmem:[#allocation98_spill] sm:$0xff]  ;;  %v9125_v48 = vld [vmem:[#allocation100_spill] sm:$0xff]  ;;  %vm7238_vm5 = vcmp.ne.s32.totalorder %v3360_v40, 0 }
 0x27d   : > { %9101 = vst [vmem:[#allocation148_spill] sm:$0xff] %v5123_v51  ;;  %9102 = vst [vmem:[#allocation149_spill] sm:$0xff] %v5127_v54  ;;  %v9119_v54 = vld [vmem:[#allocation94_spill] sm:$0xff]  ;;  %v9121_v51 = vld [vmem:[#allocation96_spill] sm:$0xff]  ;;  %v7245_v35 = vsel %vm7238_vm5, %v9131_v12, %v5383_v55  ;;  %v7250_v39 = vsel %vm7238_vm5, %v9132_v13, %v5379_v56 }
 0x27e   : > { %9103 = vst [vmem:[#allocation150_spill] sm:$0xff] %v5131_v45  ;;  %9104 = vst [vmem:[#allocation151_spill] sm:$0xff] %v5135_v43  ;;  %v9115_v45 = vld [vmem:[#allocation90_spill] sm:$0xff]  ;;  %v9116_v43 = vld [vmem:[#allocation91_spill] sm:$0xff] }
 0x27f   : > { %9105 = vst [vmem:[#allocation152_spill] sm:$0xff] %v5139_v42  ;;  %9106 = vst [vmem:[#allocation153_spill] sm:$0xff] %v5143_v41  ;;  %v9113_v42 = vld [vmem:[#allocation88_spill] sm:$0xff]  ;;  %v9114_v41 = vld [vmem:[#allocation89_spill] sm:$0xff] }
 0x280   : > { %9107 = vst [vmem:[#allocation154_spill] sm:$0xff] %v5147_v38  ;;  %9108 = vst [vmem:[#allocation155_spill] sm:$0xff] %v5151_v37  ;;  %v9134_v38 = vld [vmem:[#allocation28_spill] sm:$0xff]  ;;  %v9136_v55 = vld [vmem:[#allocation26_spill] sm:$0xff] }
 0x281   : > { %9109 = vst [vmem:[#allocation156_spill] sm:$0xff] %v5155_v36  ;;  %9110 = vst [vmem:[#allocation157_spill] sm:$0xff] %v5159_v34  ;;  %v9117_v36 = vld [vmem:[#allocation92_spill] sm:$0xff]  ;;  %v9118_v34 = vld [vmem:[#allocation93_spill] sm:$0xff]  ;;  %v7255_v37 = vsel %vm7238_vm5, %v9134_v38, %v5367_v59  ;;  %v7269_v13 = vsel %vm7238_vm5, %v9136_v55, %v5375_v57 }
 0x282   : > { %9111 = vst [vmem:[#allocation158_spill] sm:$0xff] %v5163_v33  ;;  %9112 = vst [vmem:[#allocation159_spill] sm:$0xff] %v5167_v32  ;;  %v9135_v33 = vld [vmem:[#allocation29_spill] sm:$0xff]  ;;  %v1282_v32 = vmax.f32 %v7245_v35, %v7250_v39  ;;  %v9137_v56 = vld [vmem:[#allocation27_spill] sm:$0xff] }
 0x283   : > { %9133 = vst [vmem:[#allocation88_spill] sm:$0xff] %v7250_v39  ;;  %v7260_v40 = vsel %vm7238_vm5, %v9135_v33, %v5363_v60  ;;  %v7274_v38 = vsel %vm7238_vm5, %v9137_v56, %v5371_v58  ;;  %v9138_v59 = vld [vmem:[#allocation30_spill] sm:$0xff]  ;;  %v9139_v60 = vld [vmem:[#allocation31_spill] sm:$0xff]  ;;  %v9140_v58 = vld [vmem:[#allocation32_spill] sm:$0xff] }
 0x284   : > { %v1288_v12 = vmax.f32 %v7255_v37, %v7260_v40  ;;  %v7279_v33 = vsel %vm7238_vm5, %v9138_v59, %v5359_v46  ;;  %v7284_v39 = vsel %vm7238_vm5, %v9139_v60, %v5355_v47  ;;  %1283 = vmax.xlane.f32.xlu0 %v1282_v32  ;;  %v1285_v57 = vmax.f32 %v7269_v13, %v7274_v38  ;;  %v9141_v46 = vld [vmem:[#allocation33_spill] sm:$0xff]  ;;  %v9142_v47 = vld [vmem:[#allocation34_spill] sm:$0xff] }
 0x285   : > { %v1291_v55 = vmax.f32 %v7279_v33, %v7284_v39  ;;  %v7293_v56 = vsel %vm7238_vm5, %v9140_v58, %v5351_v50  ;;  %v7298_v59 = vsel %vm7238_vm5, %v9141_v46, %v5347_v52  ;;  %v7303_v32 = vsel %vm7238_vm5, %v9142_v47, %v5343_v53  ;;  %v9144_v52 = vld [vmem:[#allocation36_spill] sm:$0xff]  ;;  %v9145_v53 = vld [vmem:[#allocation37_spill] sm:$0xff] }
 0x286   : > { %1289 = vmax.xlane.f32.xlu1 %v1288_v12  ;;  %v9143_v12 = vld [vmem:[#allocation35_spill] sm:$0xff]  ;;  %v1294_v50 = vmax.f32 %v7293_v56, %v7298_v59  ;;  %v7317_v46 = vsel %vm7238_vm5, %v9144_v52, %v9127_v44  ;;  %v7322_v47 = vsel %vm7238_vm5, %v9145_v53, %v9126_v26  ;;  %v9148_v26 = vld [vmem:[#allocation40_spill] sm:$0xff] }
 0x287   : > { %v7308_v60 = vsel %vm7238_vm5, %v9143_v12, %v9128_v30  ;;  %v9146_v30 = vld [vmem:[#allocation38_spill] sm:$0xff]  ;;  %v1300_v44 = vmax.f32 %v7317_v46, %v7322_v47  ;;  %v7341_v53 = vsel %vm7238_vm5, %v9148_v26, %v9123_v49 }
 0x288   : > { %1286 = vmax.xlane.f32.xlu0 %v1285_v57  ;;  %v1297_v58 = vmax.f32 %v7303_v32, %v7308_v60  ;;  %v7327_v57 = vsel %vm7238_vm5, %v9146_v30, %v9125_v48  ;;  %v9149_v48 = vld [vmem:[#allocation41_spill] sm:$0xff] }
 0x289   : > { %v7346_v30 = vsel %vm7238_vm5, %v9149_v48, %v9122_v21  ;;  %v9152_v21 = vld [vmem:[#allocation44_spill] sm:$0xff] }
 0x28a   : > { %1292 = vmax.xlane.f32.xlu1 %v1291_v55  ;;  %v9147_v55 = vld [vmem:[#allocation39_spill] sm:$0xff]  ;;  %v1306_v49 = vmax.f32 %v7341_v53, %v7346_v30  ;;  %v7366_v48 = vsel %vm7238_vm5, %v9152_v21, %v9119_v54  ;;  %v5391_v54 = vmov 0  }
 0x28b   : > { %v7332_v12 = vsel %vm7238_vm5, %v9147_v55, %v9124_v22  ;;  %v9150_v22 = vld [vmem:[#allocation42_spill] sm:$0xff]  ;;  %4391 = vset.pattern.permute.xlu0 %v5391_v54  ;;  %4392 = vset.pattern.permute.xlu1 %v5391_v54 }
 0x28c   : > { %1295 = vmax.xlane.f32.xlu0 %v1294_v50  ;;  %v1303_v52 = vmax.f32 %v7327_v57, %v7332_v12  ;;  %v7351_v50 = vsel %vm7238_vm5, %v9150_v22, %v9121_v51  ;;  %v9153_v51 = vld [vmem:[#allocation45_spill] sm:$0xff]  ;;  %v9155_v22 = vld [vmem:[#allocation47_spill] sm:$0xff] }
 0x28e   : > { %1298 = vmax.xlane.f32.xlu1 %v1297_v58  ;;  %v9151_v58 = vld [vmem:[#allocation43_spill] sm:$0xff] }
 0x28f   : > { %v7356_v55 = vsel %vm7238_vm5, %v9151_v58, %v9120_v17  ;;  %v7372_v17 = vsel %vm7238_vm5, %v9153_v51, %v9118_v34  ;;  %v7384_v58 = vsel %vm7238_vm5, %v9155_v22, %v9116_v43  ;;  %v9157_v43 = vld [vmem:[#allocation51_spill] sm:$0xff]  ;;  %v9159_v22 = vld [vmem:[#allocation49_spill] sm:$0xff] }
 0x290   : > { %1301 = vmax.xlane.f32.xlu0 %v1300_v44  ;;  %v1309_v26 = vmax.f32 %v7351_v50, %v7356_v55  ;;  %v9154_v44 = vld [vmem:[#allocation46_spill] sm:$0xff]  ;;  %v1312_v34 = vmax.f32 %v7366_v48, %v7372_v17  ;;  %v7412_v54 = vsel %vm7238_vm5, %v9159_v22, %v9114_v41 }
 0x292   : > { %1304 = vmax.xlane.f32.xlu1 %v1303_v52  ;;  %v7378_v52 = vsel %vm7238_vm5, %v9154_v44, %v9117_v36  ;;  %v9156_v36 = vld [vmem:[#allocation50_spill] sm:$0xff]  ;;  %v7400_v44 = vsel %vm7238_vm5, %v9157_v43, %v5275_v61  ;;  %v9161_v43 = vld [vmem:[#allocation55_spill] sm:$0xff] }
 0x293   : > { %v1315_v21 = vmax.f32 %v7378_v52, %v7384_v58  ;;  %v7394_v51 = vsel %vm7238_vm5, %v9156_v36, %v9113_v42  ;;  %v9160_v36 = vld [vmem:[#allocation54_spill] sm:$0xff]  ;;  %v7428_v41 = vsel %vm7238_vm5, %v9161_v43, %v5259_v1  ;;  %v9165_v43 = vld [vmem:[#allocation59_spill] sm:$0xff] }
 0x294   : > { %1307 = vmax.xlane.f32.xlu0 %v1306_v49  ;;  %v9158_v49 = vld [vmem:[#allocation48_spill] sm:$0xff]  ;;  %v1321_v42 = vmax.f32 %v7394_v51, %v7400_v44 }
 0x296   : > { %1310 = vmax.xlane.f32.xlu1 %v1309_v26  ;;  %v7406_v26 = vsel %vm7238_vm5, %v9158_v49, %v9115_v45  ;;  %v7422_v45 = vsel %vm7238_vm5, %v9160_v36, %v5263_v0  ;;  %v9163_v49 = vld [vmem:[#allocation53_spill] sm:$0xff]  ;;  %v9164_v36 = vld [vmem:[#allocation58_spill] sm:$0xff] }
 0x297   : > { %v1318_v61 = vmax.f32 %v7406_v26, %v7412_v54  ;;  %v7440_v22 = vsel %vm7238_vm5, %v9163_v49, %v5267_v63  ;;  %v1327_v0 = vmax.f32 %v7422_v45, %v7428_v41  ;;  %v7456_v63 = vsel %vm7238_vm5, %v9165_v43, %v5243_v5  ;;  %v9170_v43 = vld [vmem:[#allocation63_spill] sm:$0xff] }
 0x298   : > { %1313 = vmax.xlane.f32.xlu0 %v1312_v34  ;;  %v9162_v34 = vld [vmem:[#allocation52_spill] sm:$0xff] }
 0x29a   : > { %1316 = vmax.xlane.f32.xlu1 %v1315_v21  ;;  %v7434_v21 = vsel %vm7238_vm5, %v9162_v34, %v5271_v62  ;;  %v7450_v62 = vsel %vm7238_vm5, %v9164_v36, %v5247_v4  ;;  %v9167_v34 = vld [vmem:[#allocation57_spill] sm:$0xff]  ;;  %v9168_v36 = vld [vmem:[#allocation62_spill] sm:$0xff] }
 0x29b   : > { %v1324_v1 = vmax.f32 %v7434_v21, %v7440_v22  ;;  %v7468_v49 = vsel %vm7238_vm5, %v9167_v34, %v5251_v3  ;;  %v1333_v4 = vmax.f32 %v7450_v62, %v7456_v63  ;;  %v7484_v3 = vsel %vm7238_vm5, %v9170_v43, %v5227_v9  ;;  %v9178_v43 = vld [vmem:[#allocation65_spill] sm:$0xff] }
 0x29c   : > { %1319 = vmax.xlane.f32.xlu0 %v1318_v61  ;;  %9171 = vst [vmem:[#allocation90_spill] sm:$0xff] %v7484_v3 }
 0x29e   : > { %1322 = vmax.xlane.f32.xlu1 %v1321_v42  ;;  %v9166_v42 = vld [vmem:[#allocation56_spill] sm:$0xff] }
 0x29f   : > { %v7462_v61 = vsel %vm7238_vm5, %v9166_v42, %v5255_v2  ;;  %v7478_v2 = vsel %vm7238_vm5, %v9168_v36, %v5231_v8  ;;  %v9174_v42 = vld [vmem:[#allocation61_spill] sm:$0xff]  ;;  %v9176_v36 = vld [vmem:[#allocation64_spill] sm:$0xff] }
 0x2a0   : > { %1325 = vmax.xlane.f32.xlu0 %v1324_v1  ;;  %v1330_v5 = vmax.f32 %v7462_v61, %v7468_v49  ;;  %9169 = vst [vmem:[#allocation89_spill] sm:$0xff] %v7478_v2  ;;  %v7496_v34 = vsel %vm7238_vm5, %v9174_v42, %v5235_v7  ;;  %v1339_v8 = vmax.f32 %v7478_v2, %v7484_v3  ;;  %v9296_v3 = vld [vmem:[#allocation151_spill] sm:$0xff]  ;;  %v9299_v2 = vld [vmem:[#allocation150_spill] sm:$0xff] }
 0x2a1   : > { %9175 = vst [vmem:[#allocation92_spill] sm:$0xff] %v7496_v34  ;;  %v7512_v7 = vsel %vm7238_vm5, %v9178_v43, %v5219_v11  ;;  %v9186_v43 = vld [vmem:[#allocation69_spill] sm:$0xff] }
 0x2a2   : > { %1328 = vmax.xlane.f32.xlu1 %v1327_v0  ;;  %v9172_v0 = vld [vmem:[#allocation60_spill] sm:$0xff]  ;;  %9179 = vst [vmem:[#allocation94_spill] sm:$0xff] %v7512_v7 }
 0x2a3   : > { %v7490_v1 = vsel %vm7238_vm5, %v9172_v0, %v5239_v6  ;;  %v7506_v6 = vsel %vm7238_vm5, %v9176_v36, %v5223_v10  ;;  %v9182_v0 = vld [vmem:[#allocation67_spill] sm:$0xff]  ;;  %v9184_v36 = vld [vmem:[#allocation68_spill] sm:$0xff] }
 0x2a4   : > { %9173 = vst [vmem:[#allocation91_spill] sm:$0xff] %v7490_v1  ;;  %1331 = vmax.xlane.f32.xlu0 %v1330_v5  ;;  %v1336_v9 = vmax.f32 %v7490_v1, %v7496_v34  ;;  %9177 = vst [vmem:[#allocation93_spill] sm:$0xff] %v7506_v6  ;;  %v7524_v42 = vsel %vm7238_vm5, %v9182_v0, %v5211_v15  ;;  %v1342_v10 = vmax.f32 %v7506_v6, %v7512_v7  ;;  %v9289_v6 = vld [vmem:[#allocation80_spill] sm:$0xff]  ;;  %v9291_v7 = vld [vmem:[#allocation81_spill] sm:$0xff] }
 0x2a5   : > { %9183 = vst [vmem:[#allocation96_spill] sm:$0xff] %v7524_v42  ;;  %v7540_v15 = vsel %vm7238_vm5, %v9186_v43, %v5203_v18  ;;  %v9194_v43 = vld [vmem:[#allocation75_spill] sm:$0xff] }
 0x2a6   : > { %1334 = vmax.xlane.f32.xlu1 %v1333_v4  ;;  %v9180_v4 = vld [vmem:[#allocation66_spill] sm:$0xff]  ;;  %9187 = vst [vmem:[#allocation98_spill] sm:$0xff] %v7540_v15  ;;  %v7940_v1 = vld [vmem:[#allocation2 + $0xd8] sm:$0xff] }
 0x2a7   : > { %v7518_v5 = vsel %vm7238_vm5, %v9180_v4, %v5215_v14  ;;  %v7534_v14 = vsel %vm7238_vm5, %v9184_v36, %v5207_v16  ;;  %v9190_v4 = vld [vmem:[#allocation71_spill] sm:$0xff]  ;;  %v9192_v36 = vld [vmem:[#allocation74_spill] sm:$0xff] }
 0x2a8   : > { %9181 = vst [vmem:[#allocation95_spill] sm:$0xff] %v7518_v5  ;;  %1337 = vmax.xlane.f32.xlu0 %v1336_v9  ;;  %v1345_v11 = vmax.f32 %v7518_v5, %v7524_v42  ;;  %9185 = vst [vmem:[#allocation97_spill] sm:$0xff] %v7534_v14  ;;  %v7552_v0 = vsel %vm7238_vm5, %v9190_v4, %v5195_v20  ;;  %v1348_v16 = vmax.f32 %v7534_v14, %v7540_v15  ;;  %v7894_v14 = vld [vmem:[#allocation2 + $0xb8] sm:$0xff]  ;;  %v7910_v5 = vld [vmem:[#allocation2 + $0xc0] sm:$0xff] }
 0x2a9   : > { %9191 = vst [vmem:[#allocation100_spill] sm:$0xff] %v7552_v0  ;;  %v7568_v20 = vsel %vm7238_vm5, %v9194_v43, %v5179_v27  ;;  %v9202_v43 = vld [vmem:[#allocation77_spill] sm:$0xff]  ;;  %9284 = vst [vmem:[#allocation67_spill] sm:$0xff] %v7894_v14  ;;  %v9288_v15 = vld [vmem:[#allocation157_spill] sm:$0xff] }
 0x2aa   : > { %1340 = vmax.xlane.f32.xlu1 %v1339_v8  ;;  %v9188_v8 = vld [vmem:[#allocation70_spill] sm:$0xff]  ;;  %9195 = vst [vmem:[#allocation102_spill] sm:$0xff] %v7568_v20  ;;  %v9300_v34 = vld [vmem:[#allocation87_spill] sm:$0xff] }
 0x2ab   : > { %v7546_v9 = vsel %vm7238_vm5, %v9188_v8, %v5199_v19  ;;  %v7562_v19 = vsel %vm7238_vm5, %v9192_v36, %v5183_v25  ;;  %v9198_v8 = vld [vmem:[#allocation73_spill] sm:$0xff]  ;;  %v9200_v36 = vld [vmem:[#allocation76_spill] sm:$0xff]  ;;  %9287 = vst [vmem:[#allocation70_spill] sm:$0xff] %v7910_v5 }
 0x2ac   : > { %9189 = vst [vmem:[#allocation99_spill] sm:$0xff] %v7546_v9  ;;  %1346 = vmax.xlane.f32.xlu0 %v1345_v11  ;;  %v1351_v18 = vmax.f32 %v7546_v9, %v7552_v0  ;;  %9193 = vst [vmem:[#allocation101_spill] sm:$0xff] %v7562_v19  ;;  %v7580_v4 = vsel %vm7238_vm5, %v9198_v8, %v5187_v24  ;;  %v1357_v25 = vmax.f32 %v7562_v19, %v7568_v20  ;;  %v9207_v8 = vld [vmem:[#allocation158_spill] sm:$0xff]  ;;  %v9208_v19 = vld [vmem:[#allocation79_spill] sm:$0xff] }
 0x2ad   : > { %9199 = vst [vmem:[#allocation24_spill] sm:$0xff] %v7580_v4  ;;  %v7596_v24 = vsel %vm7238_vm5, %v9202_v43, %v5171_v29  ;;  %v9211_v43 = vld [vmem:[#allocation82_spill] sm:$0xff]  ;;  %v9214_v20 = vld [vmem:[#allocation83_spill] sm:$0xff] }
 0x2ae   : > { %1343 = vmax.xlane.f32.xlu1 %v1342_v10  ;;  %v9196_v10 = vld [vmem:[#allocation72_spill] sm:$0xff]  ;;  %9203 = vst [vmem:[#allocation28_spill] sm:$0xff] %v7596_v24 }
 0x2af   : > { %v7574_v11 = vsel %vm7238_vm5, %v9196_v10, %v5191_v23  ;;  %v7590_v23 = vsel %vm7238_vm5, %v9200_v36, %v5175_v28  ;;  %v9210_v36 = vld [vmem:[#allocation155_spill] sm:$0xff]  ;;  %9295 = vst [vmem:[#allocation72_spill] sm:$0xff] %v7940_v1 }
 0x2b0   : > { %9197 = vst [vmem:[#allocation103_spill] sm:$0xff] %v7574_v11  ;;  %1352 = vmax.xlane.f32.xlu0 %v1351_v18  ;;  %v1354_v27 = vmax.f32 %v7574_v11, %v7580_v4  ;;  %9201 = vst [vmem:[#allocation25_spill] sm:$0xff] %v7590_v23  ;;  %v9205_v18 = vld [vmem:[#allocation78_spill] sm:$0xff]  ;;  %v7608_v11 = vsel %vm7238_vm5, %v9208_v19, %v9207_v8  ;;  %v1360_v28 = vmax.f32 %v7590_v23, %v7596_v24  ;;  %v9217_v8 = vld [vmem:[#allocation23_spill] sm:$0xff] }
 0x2b1   : > { %9209 = vst [vmem:[#allocation26_spill] sm:$0xff] %v7608_v11  ;;  %v9254_v4 = vld [vmem:[#allocation139_spill] sm:$0xff] }
 0x2b2   : > { %1349 = vmax.xlane.f32.xlu1 %v1348_v16  ;;  %v9204_v16 = vld [vmem:[#allocation159_spill] sm:$0xff] }
 0x2b3   : > { %v7602_v10 = vsel %vm7238_vm5, %v9205_v18, %v9204_v16  ;;  %v7618_v16 = vsel %vm7238_vm5, %v9211_v43, %v9210_v36  ;;  %v9213_v18 = vld [vmem:[#allocation154_spill] sm:$0xff]  ;;  %v9219_v43 = vld [vmem:[#allocation15_spill] sm:$0xff] }
 0x2b4   : > { %9206 = vst [vmem:[#allocation29_spill] sm:$0xff] %v7602_v10  ;;  %1355 = vmax.xlane.f32.xlu0 %v1354_v27  ;;  %v1363_v29 = vmax.f32 %v7602_v10, %v7608_v11  ;;  %9212 = vst [vmem:[#allocation27_spill] sm:$0xff] %v7618_v16  ;;  %v7624_v19 = vsel %vm7238_vm5, %v9214_v20, %v9213_v18  ;;  %v9216_v27 = vld [vmem:[#allocation134_spill] sm:$0xff]  ;;  %v9220_v11 = vld [vmem:[#allocation135_spill] sm:$0xff] }
 0x2b5   : > { %9215 = vst [vmem:[#allocation30_spill] sm:$0xff] %v7624_v19  ;;  %v3678_v10 = vsel %vm7238_vm5, %v9217_v8, %v9216_v27  ;;  %v9218_v36 = vld [vmem:[#allocation142_spill] sm:$0xff]  ;;  %v9221_v20 = vld [vmem:[#allocation22_spill] sm:$0xff] }
 0x2b6   : > { %1358 = vmax.xlane.f32.xlu1 %v1357_v25  ;;  %v1369_v25 = vmax.f32 %v7618_v16, %v7624_v19  ;;  %3243 = vmatprep.subr.bf16.mxu1 %v3678_v10  ;;  %v3646_v23 = vsel %vm7238_vm5, %v9219_v43, %v9218_v36  ;;  %v9223_v18 = vld [vmem:[#allocation14_spill] sm:$0xff]  ;;  %v7644_v27 = vld [vmem:[#allocation2] sm:$0xff]  ;;  %v9227_v19 = vld [vmem:[#allocation21_spill] sm:$0xff] }
 0x2b7   : > { %3244 = vmatpush3.bf16.msra.mxu1 %v3646_v23  ;;  %9224 = vst [vmem:[#allocation31_spill] sm:$0xff] %v7644_v27  ;;  %v7646_v10 = vld [vmem:[#allocation2 + $0x10] sm:$0xff]  ;;  %v7664_v16 = vld [vmem:[#allocation2 + $0x18] sm:$0xff] }
 0x2b8   : > { %1364 = vmax.xlane.f32.xlu0 %v1363_v29  ;;  %v9222_v29 = vld [vmem:[#allocation143_spill] sm:$0xff]  ;;  %9225 = vst [vmem:[#allocation32_spill] sm:$0xff] %v7646_v10  ;;  %v9226_v43 = vld [vmem:[#allocation136_spill] sm:$0xff]  ;;  %9233 = vst [vmem:[#allocation36_spill] sm:$0xff] %v7664_v16 }
 0x2ba   : > { %1361 = vmax.xlane.f32.xlu1 %v1360_v28  ;;  %v3674_v28 = vsel %vm7238_vm5, %v9221_v20, %v9220_v11  ;;  %v3670_v11 = vsel %vm7238_vm5, %v9227_v19, %v9226_v43 }
 0x2bb   : > { %3245 = vmatprep.subr.bf16.mxu1 %v3674_v28  ;;  %v9230_v28 = vld [vmem:[#allocation144_spill] sm:$0xff] }
 0x2be   : > { %1370 = vmax.xlane.f32.xlu1 %v1369_v25  ;;  %v3642_v25 = vsel %vm7238_vm5, %v9223_v18, %v9222_v29  ;;  %v9231_v29 = vld [vmem:[#allocation13_spill] sm:$0xff] }
 0x2bf   : > { %3246 = vmatpush3.bf16.msra.mxu1 %v3642_v25  ;;  %v3638_v18 = vsel %vm7238_vm5, %v9231_v29, %v9230_v28  ;;  %v7662_v25 = vld [vmem:[#allocation2 + $0x8] sm:$0xff]  ;;  %v9235_v28 = vld [vmem:[#allocation20_spill] sm:$0xff] }
 0x2c0   : > { %3247 = vmatprep.subr.bf16.mxu1 %v3670_v11  ;;  %9232 = vst [vmem:[#allocation35_spill] sm:$0xff] %v7662_v25  ;;  %v9234_v11 = vld [vmem:[#allocation137_spill] sm:$0xff] }
 0x2c1   : > { %v3666_v29 = vsel %vm7238_vm5, %v9235_v28, %v9234_v11  ;;  %v9242_v28 = vld [vmem:[#allocation138_spill] sm:$0xff] }
 0x2c3   : > { %3248 = vmatpush3.bf16.msra.mxu1 %v3638_v18 }
 0x2c4   : > { %3249 = vmatprep.subr.bf16.mxu1 %v3666_v29  ;;  %v9243_v29 = vld [vmem:[#allocation19_spill] sm:$0xff] }
 0x30d   : > { %v1284_v8 = vpop.xlane.xlu0 %1283 }
 0x30e   : > { %v7653_v23 = vmax.f32 %v7644_v27, %v1284_v8  ;;  %v7687_v8 = vld [vmem:[#allocation2 + $0x28] sm:$0xff]  ;;  %v9241_v27 = vld [vmem:[#allocation12_spill] sm:$0xff] }
 0x30f   : > { %v1290_v36 = vpop.xlane.xlu1 %1289  ;;  %9239 = vst [vmem:[#allocation40_spill] sm:$0xff] %v7687_v8 }
 0x310   : > { %9228 = vst [vmem:[#allocation33_spill] sm:$0xff] %v7653_v23  ;;  %v7656_v20 = vmax.f32 %v7646_v10, %v1290_v36  ;;  %2564 = vst.msk [vmem:[#allocation2] sm:$0xff] %vm2050_vm11, %v7653_v23  ;;  %1508 = vperm.xlu0 %4391, %v7653_v23   ;;  %v7685_v23 = vld [vmem:[#allocation2 + $0x20] sm:$0xff]  ;;  %v9240_v10 = vld [vmem:[#allocation145_spill] sm:$0xff] }
 0x311   : > { %v1287_v36 = vpop.xlane.xlu0 %1286  ;;  %9238 = vst [vmem:[#allocation39_spill] sm:$0xff] %v7685_v23  ;;  %v3634_v24 = vsel %vm7238_vm5, %v9241_v27, %v9240_v10  ;;  %v3662_v27 = vsel %vm7238_vm5, %v9243_v29, %v9242_v28 }
 0x312   : > { %9229 = vst [vmem:[#allocation34_spill] sm:$0xff] %v7656_v20  ;;  %2566 = vst.msk [vmem:[#allocation2 + $0x10] sm:$0xff] %vm2050_vm11, %v7656_v20  ;;  %v7680_v18 = vmax.f32 %v7662_v25, %v1287_v36  ;;  %3250 = vmatpush3.bf16.msra.mxu1 %v3634_v24  ;;  %v7714_v36 = vld [vmem:[#allocation2 + $0x38] sm:$0xff] }
 0x313   : > { %v1293_v43 = vpop.xlane.xlu1 %1292  ;;  %3251 = vmatprep.subr.bf16.mxu1 %v3662_v27  ;;  %9247 = vst [vmem:[#allocation44_spill] sm:$0xff] %v7714_v36  ;;  %v9249_v24 = vld [vmem:[#allocation11_spill] sm:$0xff]  ;;  %v7736_v27 = vld [vmem:[#allocation2 + $0x40] sm:$0xff] }
 0x314   : > { %9236 = vst [vmem:[#allocation37_spill] sm:$0xff] %v7680_v18  ;;  %v7683_v19 = vmax.f32 %v7664_v16, %v1293_v43  ;;  %2565 = vst.msk [vmem:[#allocation2 + $0x8] sm:$0xff] %vm2050_vm11, %v7680_v18  ;;  %1513 = vperm.xlu1 %4392, %v7680_v18   ;;  %v7712_v18 = vld [vmem:[#allocation2 + $0x30] sm:$0xff]  ;;  %v9248_v16 = vld [vmem:[#allocation146_spill] sm:$0xff] }
 0x315   : > { %v1296_v43 = vpop.xlane.xlu0 %1295  ;;  %9246 = vst [vmem:[#allocation43_spill] sm:$0xff] %v7712_v18  ;;  %v3630_v25 = vsel %vm7238_vm5, %v9249_v24, %v9248_v16  ;;  %9252 = vst [vmem:[#allocation47_spill] sm:$0xff] %v7736_v27  ;;  %v7738_v24 = vld [vmem:[#allocation2 + $0x48] sm:$0xff] }
 0x316   : > { %9237 = vst [vmem:[#allocation38_spill] sm:$0xff] %v7683_v19  ;;  %2567 = vst.msk [vmem:[#allocation2 + $0x18] sm:$0xff] %vm2050_vm11, %v7683_v19  ;;  %v7707_v10 = vmax.f32 %v7685_v23, %v1296_v43  ;;  %3252 = vmatpush3.bf16.msra.mxu1 %v3630_v25  ;;  %v7766_v25 = vld [vmem:[#allocation2 + $0x58] sm:$0xff] }
 0x317   : > { %v1299_v11 = vpop.xlane.xlu1 %1298  ;;  %9253 = vst [vmem:[#allocation50_spill] sm:$0xff] %v7738_v24  ;;  %9261 = vst [vmem:[#allocation54_spill] sm:$0xff] %v7766_v25 }
 0x318   : > { %9244 = vst [vmem:[#allocation41_spill] sm:$0xff] %v7707_v10  ;;  %v7710_v9 = vmax.f32 %v7687_v8, %v1299_v11  ;;  %2568 = vst.msk [vmem:[#allocation2 + $0x20] sm:$0xff] %vm2050_vm11, %v7707_v10  ;;  %1518 = vperm.xlu1 %4392, %v7656_v20   ;;  %1528 = vperm.xlu0 %4391, %v7707_v10   ;;  %v9255_v20 = vld [vmem:[#allocation18_spill] sm:$0xff]  ;;  %v9263_v10 = vld [vmem:[#allocation17_spill] sm:$0xff] }
 0x319   : > { %v1302_v11 = vpop.xlane.xlu0 %1301  ;;  %v3658_v43 = vsel %vm7238_vm5, %v9255_v20, %v9254_v4 }
 0x31a   : > { %9245 = vst [vmem:[#allocation42_spill] sm:$0xff] %v7710_v9  ;;  %2569 = vst.msk [vmem:[#allocation2 + $0x28] sm:$0xff] %vm2050_vm11, %v7710_v9  ;;  %v7731_v16 = vmax.f32 %v7712_v18, %v1302_v11  ;;  %v9256_v11 = vld [vmem:[#allocation147_spill] sm:$0xff]  ;;  %3253 = vmatprep.subr.bf16.mxu1 %v3658_v43  ;;  %v9264_v43 = vld [vmem:[#allocation148_spill] sm:$0xff] }
 0x31b   : > { %v1305_v28 = vpop.xlane.xlu1 %1304 }
 0x31c   : > { %9250 = vst [vmem:[#allocation45_spill] sm:$0xff] %v7731_v16  ;;  %v7734_v29 = vmax.f32 %v7714_v36, %v1305_v28  ;;  %2570 = vst.msk [vmem:[#allocation2 + $0x30] sm:$0xff] %vm2050_vm11, %v7731_v16  ;;  %1523 = vperm.xlu1 %4392, %v7683_v19   ;;  %1533 = vperm.xlu0 %4391, %v7710_v9   ;;  %v9257_v28 = vld [vmem:[#allocation10_spill] sm:$0xff] }
 0x31d   : > { %v3626_v4 = vsel %vm7238_vm5, %v9257_v28, %v9256_v11  ;;  %v1308_v20 = vpop.xlane.xlu0 %1307  ;;  %v7764_v9 = vld [vmem:[#allocation2 + $0x50] sm:$0xff]  ;;  %v9265_v28 = vld [vmem:[#allocation9_spill] sm:$0xff] }
 0x31e   : > { %9251 = vst [vmem:[#allocation46_spill] sm:$0xff] %v7734_v29  ;;  %2571 = vst.msk [vmem:[#allocation2 + $0x38] sm:$0xff] %vm2050_vm11, %v7734_v29  ;;  %v7759_v18 = vmax.f32 %v7736_v27, %v1308_v20  ;;  %3254 = vmatpush3.bf16.msra.mxu1 %v3626_v4  ;;  %v9262_v36 = vld [vmem:[#allocation140_spill] sm:$0xff]  ;;  %v9271_v27 = vld [vmem:[#allocation16_spill] sm:$0xff] }
 0x31f   : > { %v1311_v8 = vpop.xlane.xlu1 %1310  ;;  %9260 = vst [vmem:[#allocation49_spill] sm:$0xff] %v7764_v9  ;;  %v3654_v23 = vsel %vm7238_vm5, %v9263_v10, %v9262_v36  ;;  %v3622_v36 = vsel %vm7238_vm5, %v9265_v28, %v9264_v43  ;;  %v9272_v28 = vld [vmem:[#allocation149_spill] sm:$0xff]  ;;  %v7822_v43 = vld [vmem:[#allocation2 + $0x70] sm:$0xff] }
 0x320   : > { %9258 = vst [vmem:[#allocation51_spill] sm:$0xff] %v7759_v18  ;;  %v7762_v19 = vmax.f32 %v7738_v24, %v1311_v8  ;;  %2572 = vst.msk [vmem:[#allocation2 + $0x40] sm:$0xff] %vm2050_vm11, %v7759_v18  ;;  %1538 = vperm.xlu1 %4392, %v7731_v16   ;;  %1548 = vperm.xlu0 %4391, %v7759_v18   ;;  %v7792_v18 = vld [vmem:[#allocation2 + $0x68] sm:$0xff]  ;;  %v7794_v8 = vld [vmem:[#allocation2 + $0x60] sm:$0xff] }
 0x321   : > { %v1314_v10 = vpop.xlane.xlu0 %1313  ;;  %3255 = vmatprep.subr.bf16.mxu1 %v3654_v23  ;;  %9268 = vst [vmem:[#allocation53_spill] sm:$0xff] %v7792_v18  ;;  %9269 = vst [vmem:[#allocation58_spill] sm:$0xff] %v7794_v8  ;;  %v9270_v24 = vld [vmem:[#allocation141_spill] sm:$0xff] }
 0x322   : > { %9259 = vst [vmem:[#allocation48_spill] sm:$0xff] %v7762_v19  ;;  %2573 = vst.msk [vmem:[#allocation2 + $0x48] sm:$0xff] %vm2050_vm11, %v7762_v19  ;;  %v7787_v20 = vmax.f32 %v7764_v9, %v1314_v10  ;;  %3256 = vmatpush3.bf16.msra.mxu1 %v3622_v36  ;;  %v3650_v16 = vsel %vm7238_vm5, %v9271_v27, %v9270_v24  ;;  %v9273_v36 = vld [vmem:[#allocation8_spill] sm:$0xff] }
 0x323   : > { %v1317_v4 = vpop.xlane.xlu1 %1316  ;;  %v3618_v27 = vsel %vm7238_vm5, %v9273_v36, %v9272_v28  ;;  %3257 = vmatprep.subr.bf16.mxu1 %v3650_v16  ;;  %9275 = vst [vmem:[#allocation56_spill] sm:$0xff] %v7822_v43  ;;  %v7860_v16 = vld [vmem:[#allocation2 + $0x90] sm:$0xff]  ;;  %v7876_v9 = vld [vmem:[#allocation2 + $0xa0] sm:$0xff] }
 0x324   : > { %9266 = vst [vmem:[#allocation55_spill] sm:$0xff] %v7787_v20  ;;  %v7790_v11 = vmax.f32 %v7766_v25, %v1317_v4  ;;  %1543 = vperm.xlu1 %4392, %v7734_v29   ;;  %1553 = vperm.xlu0 %4391, %v7762_v19   ;;  %2574 = vst.msk [vmem:[#allocation2 + $0x50] sm:$0xff] %vm2050_vm11, %v7787_v20  ;;  %v7820_v19 = vld [vmem:[#allocation2 + $0x78] sm:$0xff]  ;;  %v7841_v25 = vld [vmem:[#allocation2 + $0x80] sm:$0xff] }
 0x325   : > { %v1320_v10 = vpop.xlane.xlu0 %1319  ;;  %9274 = vst [vmem:[#allocation59_spill] sm:$0xff] %v7820_v19  ;;  %9277 = vst [vmem:[#allocation62_spill] sm:$0xff] %v7841_v25 }
 0x326   : > { %9267 = vst [vmem:[#allocation52_spill] sm:$0xff] %v7790_v11  ;;  %2575 = vst.msk [vmem:[#allocation2 + $0x58] sm:$0xff] %vm2050_vm11, %v7790_v11  ;;  %v7818_v23 = vmax.f32 %v7794_v8, %v1320_v10  ;;  %3258 = vmatpush3.bf16.msra.mxu1 %v3618_v27  ;;  %v7839_v10 = vld [vmem:[#allocation2 + $0x88] sm:$0xff] }
 0x327   : > { %v1323_v24 = vpop.xlane.xlu1 %1322  ;;  %9276 = vst [vmem:[#allocation57_spill] sm:$0xff] %v7839_v10  ;;  %9279 = vst [vmem:[#allocation60_spill] sm:$0xff] %v7860_v16 }
 0x328   : > { %v7815_v4 = vmax.f32 %v7792_v18, %v1323_v24  ;;  %1558 = vperm.xlu1 %4392, %v7787_v20   ;;  %2576 = vst.msk [vmem:[#allocation2 + $0x60] sm:$0xff] %vm2050_vm11, %v7818_v23  ;;  %9280 = vst [vmem:[#allocation61_spill] sm:$0xff] %v7876_v9  ;;  %v7916_v18 = vsel %vm7238_vm5, %v9289_v6, %v9288_v15 }
 0x329   : > { %v1326_v36 = vpop.xlane.xlu0 %1325 }
 0x32a   : > { %2577 = vst.msk [vmem:[#allocation2 + $0x68] sm:$0xff] %vm2050_vm11, %v7815_v4  ;;  %v7837_v24 = vmax.f32 %v7822_v43, %v1326_v36 }
 0x32b   : > { %v1329_v28 = vpop.xlane.xlu1 %1328 }
 0x32c   : > { %v7834_v27 = vmax.f32 %v7820_v19, %v1329_v28  ;;  %1563 = vperm.xlu1 %4392, %v7790_v11   ;;  %2578 = vst.msk [vmem:[#allocation2 + $0x70] sm:$0xff] %vm2050_vm11, %v7837_v24  ;;  %v7858_v11 = vld [vmem:[#allocation2 + $0x98] sm:$0xff]  ;;  %v7878_v19 = vld [vmem:[#allocation2 + $0xa8] sm:$0xff] }
 0x32d   : > { %v1332_v36 = vpop.xlane.xlu0 %1331  ;;  %9278 = vst [vmem:[#allocation63_spill] sm:$0xff] %v7858_v11  ;;  %9281 = vst [vmem:[#allocation64_spill] sm:$0xff] %v7878_v19 }
 0x32e   : > { %2579 = vst.msk [vmem:[#allocation2 + $0x78] sm:$0xff] %vm2050_vm11, %v7834_v27  ;;  %v7856_v29 = vmax.f32 %v7841_v25, %v1332_v36 }
 0x32f   : > { %v1335_v28 = vpop.xlane.xlu1 %1334 }
 0x330   : > { %v7853_v8 = vmax.f32 %v7839_v10, %v1335_v28  ;;  %2580 = vst.msk [vmem:[#allocation2 + $0x80] sm:$0xff] %vm2050_vm11, %v7856_v29 }
 0x331   : > { %v1338_v43 = vpop.xlane.xlu0 %1337 }
 0x332   : > { %2581 = vst.msk [vmem:[#allocation2 + $0x88] sm:$0xff] %vm2050_vm11, %v7853_v8  ;;  %v7874_v20 = vmax.f32 %v7860_v16, %v1338_v43 }
 0x333   : > { %v1341_v28 = vpop.xlane.xlu1 %1340 }
 0x334   : > { %v7871_v36 = vmax.f32 %v7858_v11, %v1341_v28  ;;  %2582 = vst.msk [vmem:[#allocation2 + $0x90] sm:$0xff] %vm2050_vm11, %v7874_v20  ;;  %v7892_v11 = vld [vmem:[#allocation2 + $0xb0] sm:$0xff] }
 0x335   : > { %v1347_v25 = vpop.xlane.xlu0 %1346  ;;  %9283 = vst [vmem:[#allocation66_spill] sm:$0xff] %v7892_v11 }
 0x336   : > { %2583 = vst.msk [vmem:[#allocation2 + $0x98] sm:$0xff] %vm2050_vm11, %v7871_v36  ;;  %v7890_v43 = vmax.f32 %v7878_v19, %v1347_v25  ;;  %v9290_v19 = vld [vmem:[#allocation156_spill] sm:$0xff] }
 0x337   : > { %v1344_v10 = vpop.xlane.xlu1 %1343  ;;  %v7922_v42 = vsel %vm7238_vm5, %v9291_v7, %v9290_v19  ;;  %v7938_v19 = vld [vmem:[#allocation2 + $0xd0] sm:$0xff] }
 0x338   : > { %v7887_v28 = vmax.f32 %v7876_v9, %v1344_v10  ;;  %9282 = vst [vmem:[#allocation65_spill] sm:$0xff] %v7890_v43  ;;  %2585 = vst.msk [vmem:[#allocation2 + $0xa8] sm:$0xff] %vm2050_vm11, %v7890_v43  ;;  %v7908_v9 = vld [vmem:[#allocation2 + $0xc8] sm:$0xff]  ;;  %v1366_v7 = vmax.f32 %v7916_v18, %v7922_v42 }
 0x339   : > { %v1353_v0 = vpop.xlane.xlu0 %1352  ;;  %9286 = vst [vmem:[#allocation69_spill] sm:$0xff] %v7908_v9  ;;  %9292 = vst [vmem:[#allocation71_spill] sm:$0xff] %v7922_v42 }
 0x33a   : > { %2584 = vst.msk [vmem:[#allocation2 + $0xa0] sm:$0xff] %vm2050_vm11, %v7887_v28  ;;  %v7906_v25 = vmax.f32 %v7894_v14, %v1353_v0  ;;  %9294 = vst [vmem:[#allocation75_spill] sm:$0xff] %v7938_v19  ;;  %v9297_v0 = vld [vmem:[#allocation86_spill] sm:$0xff] }
 0x33b   : > { %v1350_v16 = vpop.xlane.xlu1 %1349  ;;  %v7946_v14 = vsel %vm7238_vm5, %v9297_v0, %v9296_v3 }
 0x33c   : > { %v7903_v10 = vmax.f32 %v7892_v11, %v1350_v16  ;;  %9285 = vst [vmem:[#allocation68_spill] sm:$0xff] %v7906_v25  ;;  %2587 = vst.msk [vmem:[#allocation2 + $0xb8] sm:$0xff] %vm2050_vm11, %v7906_v25 }
 0x33d   : > { %v1356_v11 = vpop.xlane.xlu0 %1355  ;;  %9298 = vst [vmem:[#allocation73_spill] sm:$0xff] %v7946_v14 }
 0x33e   : > { %2586 = vst.msk [vmem:[#allocation2 + $0xb0] sm:$0xff] %vm2050_vm11, %v7903_v10  ;;  %v7934_v15 = vmax.f32 %v7910_v5, %v1356_v11  ;;  %v9307_v11 = vld [vmem:[#allocation152_spill] sm:$0xff] }
 0x33f   : > { %v1359_v16 = vpop.xlane.xlu1 %1358 }
 0x340   : > { %v7931_v6 = vmax.f32 %v7908_v9, %v1359_v16  ;;  %v7952_v16 = vsel %vm7238_vm5, %v9300_v34, %v9299_v2  ;;  %2588 = vst.msk [vmem:[#allocation2 + $0xc0] sm:$0xff] %vm2050_vm11, %v7934_v15  ;;  %v7968_v34 = vld [vmem:[#allocation2 + $0xe8] sm:$0xff] }
 0x341   : > { %9301 = vst [vmem:[#allocation76_spill] sm:$0xff] %v7952_v16  ;;  %v1365_v42 = vpop.xlane.xlu0 %1364  ;;  %v1375_v2 = vmax.f32 %v7946_v14, %v7952_v16  ;;  %9303 = vst [vmem:[#allocation159_spill] sm:$0xff] %v7968_v34 }
 0x342   : > { %9293 = vst [vmem:[#allocation74_spill] sm:$0xff] %v7931_v6  ;;  %2589 = vst.msk [vmem:[#allocation2 + $0xc8] sm:$0xff] %vm2050_vm11, %v7931_v6  ;;  %v7964_v0 = vmax.f32 %v7940_v1, %v1365_v42  ;;  %v9308_v1 = vld [vmem:[#allocation85_spill] sm:$0xff] }
 0x343   : > { %v1362_v5 = vpop.xlane.xlu1 %1361  ;;  %1367 = vmax.xlane.f32.xlu0 %v1366_v7  ;;  %v9305_v7 = vld [vmem:[#allocation153_spill] sm:$0xff]  ;;  %v7993_v14 = vsel %vm7238_vm5, %v9308_v1, %v9307_v11 }
 0x344   : > { %v7961_v3 = vmax.f32 %v7938_v19, %v1362_v5  ;;  %9302 = vst [vmem:[#allocation77_spill] sm:$0xff] %v7964_v0  ;;  %2591 = vst.msk [vmem:[#allocation2 + $0xd8] sm:$0xff] %vm2050_vm11, %v7964_v0  ;;  %v9306_v19 = vld [vmem:[#allocation84_spill] sm:$0xff] }
 0x345   : > { %v7987_v16 = vsel %vm7238_vm5, %v9306_v19, %v9305_v7  ;;  %v9309_v19 = vld [vmem:[#allocation88_spill] sm:$0xff] }
 0x346   : > { %2590 = vst.msk [vmem:[#allocation2 + $0xd0] sm:$0xff] %vm2050_vm11, %v7961_v3 }
 0x347   : > { %v1371_v5 = vpop.xlane.xlu1 %1370  ;;  %1376 = vmax.xlane.f32.xlu0 %v1375_v2  ;;  %v1372_v2 = vmax.f32 %v7987_v16, %v7993_v14 }
 0x348   : > { %v7977_v9 = vmax.f32 %v7968_v34, %v1371_v5 }
 0x34a   : > { %9304 = vst [vmem:[#allocation78_spill] sm:$0xff] %v7977_v9  ;;  %2593 = vst.msk [vmem:[#allocation2 + $0xe8] sm:$0xff] %vm2050_vm11, %v7977_v9 }
 0x350   : > { %1373 = vmax.xlane.f32.xlu1 %v1372_v2 }
 0x35d   : > { %1568 = vperm.xlu0 %4391, %v7818_v23  }
 0x361   : > { %1573 = vperm.xlu0 %4391, %v7815_v4   ;;  %1588 = vperm.xlu1 %4392, %v7856_v29  }
 0x365   : > { %1578 = vperm.xlu0 %4391, %v7837_v24   ;;  %1613 = vperm.xlu1 %4392, %v7890_v43  }
 0x369   : > { %1583 = vperm.xlu0 %4391, %v7834_v27   ;;  %1623 = vperm.xlu1 %4392, %v7906_v25  }
 0x36d   : > { %1593 = vperm.xlu0 %4391, %v7853_v8   ;;  %1633 = vperm.xlu1 %4392, %v7931_v6  }
 0x371   : > { %1598 = vperm.xlu0 %4391, %v7874_v20   ;;  %1643 = vperm.xlu1 %4392, %v7964_v0  }
 0x375   : > { %1603 = vperm.xlu0 %4391, %v7871_v36   ;;  %1653 = vperm.xlu1 %4392, %v7977_v9  }
 0x379   : > { %1608 = vperm.xlu0 %4391, %v7887_v28  }
 0x37d   : > { %1618 = vperm.xlu0 %4391, %v7903_v10  }
 0x381   : > { %1628 = vperm.xlu0 %4391, %v7934_v15  }
 0x385   : > { %1638 = vperm.xlu0 %4391, %v7961_v3  }
 0x38b   : > { %v1509_v31 = vpop.permute.xlu0 %1508 }
 0x38c   : > { %v1666_v1 = vsub.f32 %v7245_v35, %v1509_v31  ;;  %v1667_v11 = vsub.f32 %v9309_v19, %v1509_v31 }
 0x38e   : > { %v1730_v5 = vmul.f32 1.442695, %v1666_v1  ;;  %v1732_v7 = vmul.f32 1.442695, %v1667_v11 }
 0x38f   : > { %v1514_v2 = vpop.permute.xlu1 %1513 }
 0x390   : > { %4393 = vpow2.f32 %v1730_v5  ;;  %v1668_v42 = vsub.f32 %v7269_v13, %v1514_v2  ;;  %v1669_v9 = vsub.f32 %v7274_v38, %v1514_v2 }
 0x391   : > { %4395 = vpow2.f32 %v1732_v7 }
 0x392   : > { %v1734_v34 = vmul.f32 1.442695, %v1668_v42  ;;  %v1736_v0 = vmul.f32 1.442695, %v1669_v9 }
 0x393   : > { %v1519_v6 = vpop.permute.xlu1 %1518  ;;  %v1529_v25 = vpop.permute.xlu0 %1528 }
 0x394   : > { %4397 = vpow2.f32 %v1734_v34  ;;  %v1670_v43 = vsub.f32 %v7255_v37, %v1519_v6  ;;  %v1671_v35 = vsub.f32 %v7260_v40, %v1519_v6  ;;  %v1674_v31 = vsub.f32 %v7293_v56, %v1529_v25 }
 0x395   : > { %4399 = vpow2.f32 %v1736_v0  ;;  %v1675_v1 = vsub.f32 %v7298_v59, %v1529_v25 }
 0x396   : > { %v1738_v19 = vmul.f32 1.442695, %v1670_v43  ;;  %v1740_v11 = vmul.f32 1.442695, %v1671_v35  ;;  %v1746_v13 = vmul.f32 1.442695, %v1674_v31 }
 0x397   : > { %v1748_v5 = vmul.f32 1.442695, %v1675_v1  ;;  %v1524_v38 = vpop.permute.xlu1 %1523  ;;  %v1534_v7 = vpop.permute.xlu0 %1533 }
 0x398   : > { %4401 = vpow2.f32 %v1738_v19  ;;  %v1672_v9 = vsub.f32 %v7279_v33, %v1524_v38  ;;  %v1673_v34 = vsub.f32 %v7284_v39, %v1524_v38  ;;  %v1676_v37 = vsub.f32 %v7303_v32, %v1534_v7 }
 0x399   : > { %4403 = vpow2.f32 %v1740_v11  ;;  %v1677_v40 = vsub.f32 %v7308_v60, %v1534_v7 }
 0x39a   : > { %4405 = vpow2.f32 %v1746_v13  ;;  %v1742_v56 = vmul.f32 1.442695, %v1672_v9  ;;  %v1744_v6 = vmul.f32 1.442695, %v1673_v34  ;;  %v1750_v59 = vmul.f32 1.442695, %v1676_v37 }
 0x39b   : > { %4407 = vpow2.f32 %v1748_v5  ;;  %v1752_v43 = vmul.f32 1.442695, %v1677_v40  ;;  %v1539_v25 = vpop.permute.xlu1 %1538  ;;  %v1549_v0 = vpop.permute.xlu0 %1548 }
 0x39c   : > { %4409 = vpow2.f32 %v1742_v56  ;;  %v1678_v42 = vsub.f32 %v7317_v46, %v1539_v25  ;;  %v1679_v33 = vsub.f32 %v7322_v47, %v1539_v25  ;;  %v1682_v39 = vsub.f32 %v7341_v53, %v1549_v0 }
 0x39d   : > { %v4394_v2 = vpop.eup %4393  ;;  %4411 = vpow2.f32 %v1744_v6  ;;  %v1683_v32 = vsub.f32 %v7346_v30, %v1549_v0 }
 0x39e   : > { %v4396_v60 = vpop.eup %4395  ;;  %4413 = vpow2.f32 %v1750_v59  ;;  %v1754_v35 = vmul.f32 1.442695, %v1678_v42  ;;  %v1756_v31 = vmul.f32 1.442695, %v1679_v33  ;;  %v1762_v1 = vmul.f32 1.442695, %v1682_v39 }
 0x39f   : > { %4415 = vpow2.f32 %v1752_v43  ;;  %v1764_v19 = vmul.f32 1.442695, %v1683_v32  ;;  %v1544_v11 = vpop.permute.xlu1 %1543  ;;  %v1554_v13 = vpop.permute.xlu0 %1553  ;;  %v8030_v5 = vadd.f32 %v4396_v60, %v4394_v2 }
 0x3a0   : > { %4417 = vpow2.f32 %v1754_v35  ;;  %v1680_v46 = vsub.f32 %v7327_v57, %v1544_v11  ;;  %v1681_v47 = vsub.f32 %v7332_v12, %v1544_v11  ;;  %v1684_v53 = vsub.f32 %v7351_v50, %v1554_v13 }
 0x3a1   : > { %v4398_v38 = vpop.eup %4397  ;;  %4419 = vpow2.f32 %v1756_v31  ;;  %v1685_v30 = vsub.f32 %v7356_v55, %v1554_v13 }
 0x3a2   : > { %v4400_v7 = vpop.eup %4399  ;;  %4421 = vpow2.f32 %v1762_v1  ;;  %v1758_v9 = vmul.f32 1.442695, %v1680_v46  ;;  %v1760_v34 = vmul.f32 1.442695, %v1681_v47  ;;  %v1766_v37 = vmul.f32 1.442695, %v1684_v53 }
 0x3a3   : > { %4423 = vpow2.f32 %v1764_v19  ;;  %v1768_v40 = vmul.f32 1.442695, %v1685_v30  ;;  %v1559_v56 = vpop.permute.xlu1 %1558  ;;  %v2308_v6 = vpack.c.bf16 %v4400_v7, %v4396_v60  ;;  %v2307_v59 = vpack.c.bf16 %v4398_v38, %v4394_v2 }
 0x3a4   : > { %4425 = vpow2.f32 %v1758_v9  ;;  %v1686_v57 = vsub.f32 %v7366_v48, %v1559_v56  ;;  %v1687_v12 = vsub.f32 %v7372_v17, %v1559_v56  ;;  %v8038_v50 = vadd.f32 %v4400_v7, %v4398_v38 }
 0x3a5   : > { %v4402_v43 = vpop.eup %4401  ;;  %4427 = vpow2.f32 %v1760_v34  ;;  %2371 = vmatprep.mubr.bf16.mxu1 %v2308_v6 }
 0x3a6   : > { %v4404_v55 = vpop.eup %4403  ;;  %4429 = vpow2.f32 %v1766_v37  ;;  %v1770_v25 = vmul.f32 1.442695, %v1686_v57  ;;  %v1772_v0 = vmul.f32 1.442695, %v1687_v12  ;;  %2372 = vmatmul.mubr.bf16.vlgmr.msra.gmra.mxu1 %v2307_v59 }
 0x3a7   : > { %v4406_v42 = vpop.eup %4405  ;;  %4431 = vpow2.f32 %v1768_v40  ;;  %v1564_v33 = vpop.permute.xlu1 %1563  ;;  %v8040_v39 = vadd.f32 %v4404_v55, %v4402_v43 }
 0x3a8   : > { %v4408_v2 = vpop.eup %4407  ;;  %4433 = vpow2.f32 %v1770_v25  ;;  %v1688_v48 = vsub.f32 %v7378_v52, %v1564_v33  ;;  %v1689_v17 = vsub.f32 %v7384_v58, %v1564_v33 }
 0x3a9   : > { %v4410_v32 = vpop.eup %4409  ;;  %4435 = vpow2.f32 %v1772_v0  ;;  %v8044_v60 = vadd.f32 %v4408_v2, %v4406_v42 }
 0x3aa   : > { %v4412_v35 = vpop.eup %4411  ;;  %v1774_v31 = vmul.f32 1.442695, %v1688_v48  ;;  %v1776_v1 = vmul.f32 1.442695, %v1689_v17  ;;  %v2309_v19 = vpack.c.bf16 %v4410_v32, %v4402_v43 }
 0x3ab   : > { %v4414_v11 = vpop.eup %4413  ;;  %v2310_v13 = vpack.c.bf16 %v4412_v35, %v4404_v55  ;;  %v8046_v46 = vadd.f32 %v4412_v35, %v4410_v32 }
 0x3ac   : > { %v4416_v47 = vpop.eup %4415  ;;  %4437 = vpow2.f32 %v1774_v31  ;;  %v2311_v57 = vpack.c.bf16 %v4414_v11, %v4406_v42  ;;  %v8062_v42 = vld [vmem:[#allocation2 + $0xe0] sm:$0xff] }
 0x3ad   : > { %v4418_v53 = vpop.eup %4417  ;;  %4439 = vpow2.f32 %v1776_v1  ;;  %2379 = vmatprep.mubr.bf16.mxu1 %v2310_v13  ;;  %v2312_v52 = vpack.c.bf16 %v4416_v47, %v4408_v2  ;;  %v8048_v38 = vadd.f32 %v4416_v47, %v4414_v11  ;;  %v8067_v13 = vld [vmem:[#allocation2 + $0xf8] sm:$0xff] }
 0x3ae   : > { %v4420_v58 = vpop.eup %4419  ;;  %2380 = vmatmul.mubr.bf16.gmra.mxu1 %v2309_v19 }
 0x3af   : > { %v4422_v30 = vpop.eup %4421  ;;  %2387 = vmatprep.mubr.bf16.mxu1 %v2312_v52  ;;  %v8050_v7 = vadd.f32 %v4420_v58, %v4418_v53 }
 0x3b0   : > { %v4424_v9 = vpop.eup %4423 }
 0x3b1   : > { %v4426_v34 = vpop.eup %4425  ;;  %v8052_v37 = vadd.f32 %v4424_v9, %v4422_v30 }
 0x3b2   : > { %v4428_v40 = vpop.eup %4427  ;;  %v2313_v17 = vpack.c.bf16 %v4426_v34, %v4418_v53 }
 0x3b3   : > { %v4430_v56 = vpop.eup %4429  ;;  %v8054_v6 = vadd.f32 %v4428_v40, %v4426_v34  ;;  %v2314_v43 = vpack.c.bf16 %v4428_v40, %v4420_v58 }
 0x3b4   : > { %v4432_v59 = vpop.eup %4431  ;;  %v2315_v35 = vpack.c.bf16 %v4430_v56, %v4422_v30  ;;  %v8082_v30 = vld [vmem:[#allocation2 + $0xf0] sm:$0xff] }
 0x3b5   : > { %v4434_v12 = vpop.eup %4433  ;;  %v8056_v55 = vadd.f32 %v4432_v59, %v4430_v56  ;;  %v2316_v32 = vpack.c.bf16 %v4432_v59, %v4424_v9 }
 0x3b6   : > { %v4436_v25 = vpop.eup %4435  ;;  %2388 = vmatmul.mubr.bf16.gmra.mxu1 %v2311_v57 }
 0x3b7   : > { %2395 = vmatprep.mubr.bf16.mxu1 %v2314_v43  ;;  %v8058_v0 = vadd.f32 %v4436_v25, %v4434_v12 }
 0x3b9   : > { %v4438_v33 = vpop.eup %4437 }
 0x3ba   : > { %v4440_v2 = vpop.eup %4439  ;;  %v2317_v19 = vpack.c.bf16 %v4438_v33, %v4434_v12 }
 0x3bb   : > { %v8060_v48 = vadd.f32 %v4440_v2, %v4438_v33  ;;  %v2318_v31 = vpack.c.bf16 %v4440_v2, %v4436_v25 }
 0x3be   : > { %2396 = vmatmul.mubr.bf16.gmra.mxu1 %v2313_v17 }
 0x3bf   : > { %2403 = vmatprep.mubr.bf16.mxu1 %v2316_v32 }
 0x3c6   : > { %2404 = vmatmul.mubr.bf16.gmra.mxu1 %v2315_v35 }
 0x3c7   : > { %2411 = vmatprep.mubr.bf16.mxu1 %v2318_v31 }
 0x3cc   : > { %v1368_v1 = vpop.xlane.xlu0 %1367 }
 0x3cd   : > { %v8065_v11 = vmax.f32 %v8062_v42, %v1368_v1 }
 0x3ce   : > { %2412 = vmatmul.mubr.bf16.gmra.mxu1 %v2317_v19 }
 0x3cf   : > { %v1438_v47 = vsub.f32 %v8062_v42, %v8065_v11  ;;  %2592 = vst.msk [vmem:[#allocation2 + $0xe0] sm:$0xff] %vm2050_vm11, %v8065_v11  ;;  %1648 = vperm.xlu0 %4391, %v8065_v11  }
 0x3d0   : > { %v1377_v53 = vpop.xlane.xlu0 %1376 }
 0x3d1   : > { %v8075_v52 = vmax.f32 %v8067_v13, %v1377_v53 }
 0x3d3   : > { %v1441_v58 = vsub.f32 %v8067_v13, %v8075_v52  ;;  %2595 = vst.msk [vmem:[#allocation2 + $0xf8] sm:$0xff] %vm2050_vm11, %v8075_v52  ;;  %1663 = vperm.xlu1 %4392, %v8075_v52  }
 0x3d8   : > { %v1569_v9 = vpop.permute.xlu0 %1568 }
 0x3d9   : > { %v1690_v34 = vsub.f32 %v7406_v26, %v1569_v9  ;;  %v1691_v40 = vsub.f32 %v7412_v54, %v1569_v9  ;;  %v1374_v56 = vpop.xlane.xlu1 %1373 }
 0x3da   : > { %v8087_v59 = vmax.f32 %v8082_v30, %v1374_v56 }
 0x3db   : > { %v1778_v57 = vmul.f32 1.442695, %v1690_v34  ;;  %v1780_v12 = vmul.f32 1.442695, %v1691_v40 }
 0x3dc   : > { %v1440_v43 = vsub.f32 %v8082_v30, %v8087_v59  ;;  %2594 = vst.msk [vmem:[#allocation2 + $0xf0] sm:$0xff] %vm2050_vm11, %v8087_v59  ;;  %1658 = vperm.xlu0 %4391, %v8087_v59   ;;  %v1574_v25 = vpop.permute.xlu0 %1573  ;;  %v9399_v59 = vld [vmem:[#allocation72_spill] sm:$0xff] }
 0x3dd   : > { %v1692_v33 = vsub.f32 %v7394_v51, %v1574_v25  ;;  %v1693_v26 = vsub.f32 %v7400_v44, %v1574_v25  ;;  %4441 = vpow2.f32 %v1778_v57  ;;  %v1589_v31 = vpop.permute.xlu1 %1588 }
 0x3de   : > { %4443 = vpow2.f32 %v1780_v12  ;;  %v1699_v9 = vsub.f32 %v7468_v49, %v1589_v31  ;;  %v1698_v12 = vsub.f32 %v7462_v61, %v1589_v31 }
 0x3df   : > { %v1782_v54 = vmul.f32 1.442695, %v1692_v33  ;;  %v1784_v2 = vmul.f32 1.442695, %v1693_v26  ;;  %v9310_v26 = vld [vmem:[#allocation92_spill] sm:$0xff] }
 0x3e0   : > { %v1579_v17 = vpop.permute.xlu0 %1578  ;;  %v1796_v57 = vmul.f32 1.442695, %v1699_v9 }
 0x3e1   : > { %4445 = vpow2.f32 %v1782_v54  ;;  %v1694_v32 = vsub.f32 %v7434_v21, %v1579_v17  ;;  %v1695_v35 = vsub.f32 %v7440_v22, %v1579_v17 }
 0x3e2   : > { %4447 = vpow2.f32 %v1784_v2 }
 0x3e3   : > { %v1786_v1 = vmul.f32 1.442695, %v1694_v32  ;;  %v1788_v19 = vmul.f32 1.442695, %v1695_v35  ;;  %v1614_v35 = vpop.permute.xlu1 %1613 }
 0x3e4   : > { %v1584_v53 = vpop.permute.xlu0 %1583 }
 0x3e5   : > { %v1696_v51 = vsub.f32 %v7422_v45, %v1584_v53  ;;  %v1697_v44 = vsub.f32 %v7428_v41, %v1584_v53  ;;  %4449 = vpow2.f32 %v1786_v1  ;;  %v9311_v1 = vld [vmem:[#allocation89_spill] sm:$0xff]  ;;  %v9312_v53 = vld [vmem:[#allocation90_spill] sm:$0xff] }
 0x3e6   : > { %4451 = vpow2.f32 %v1788_v19 }
 0x3e7   : > { %v1790_v34 = vmul.f32 1.442695, %v1696_v51  ;;  %v1792_v40 = vmul.f32 1.442695, %v1697_v44  ;;  %v9313_v51 = vld [vmem:[#allocation91_spill] sm:$0xff] }
 0x3e8   : > { %v1594_v56 = vpop.permute.xlu0 %1593 }
 0x3e9   : > { %4453 = vpow2.f32 %v1790_v34  ;;  %v1700_v21 = vsub.f32 %v7450_v62, %v1594_v56  ;;  %v1701_v22 = vsub.f32 %v7456_v63, %v1594_v56  ;;  %v1794_v62 = vmul.f32 1.442695, %v1698_v12  ;;  %v9314_v56 = vld [vmem:[#allocation96_spill] sm:$0xff] }
 0x3ea   : > { %4455 = vpow2.f32 %v1792_v40  ;;  %v8104_v49 = vpop.eup %4441 }
 0x3eb   : > { %v1800_v25 = vmul.f32 1.442695, %v1701_v22  ;;  %v8106_v33 = vpop.eup %4443  ;;  %4457 = vpow2.f32 %v1796_v57  ;;  %v1798_v41 = vmul.f32 1.442695, %v1700_v21  ;;  %v1709_v57 = vsub.f32 %v9314_v56, %v1614_v35 }
 0x3ec   : > { %v1599_v45 = vpop.permute.xlu0 %1598 }
 0x3ed   : > { %v1703_v54 = vsub.f32 %v9310_v26, %v1599_v45  ;;  %4459 = vpow2.f32 %v1800_v25  ;;  %v1702_v44 = vsub.f32 %v9313_v51, %v1599_v45  ;;  %v9315_v25 = vld [vmem:[#allocation94_spill] sm:$0xff] }
 0x3ee   : > { %v8109_v2 = vpop.eup %4445  ;;  %4461 = vpow2.f32 %v1798_v41  ;;  %v9317_v51 = vld [vmem:[#allocation98_spill] sm:$0xff] }
 0x3ef   : > { %v8111_v17 = vpop.eup %4447  ;;  %v2319_v63 = vpack.c.bf16 %v8109_v2, %v8104_v49  ;;  %v1804_v31 = vmul.f32 1.442695, %v1703_v54  ;;  %4463 = vpow2.f32 %v1794_v62  ;;  %v1802_v62 = vmul.f32 1.442695, %v1702_v44 }
 0x3f0   : > { %v1604_v61 = vpop.permute.xlu0 %1603  ;;  %v2320_v32 = vpack.c.bf16 %v8111_v17, %v8106_v33 }
 0x3f1   : > { %v1704_v19 = vsub.f32 %v9311_v1, %v1604_v61  ;;  %v1705_v9 = vsub.f32 %v9312_v53, %v1604_v61  ;;  %4465 = vpow2.f32 %v1804_v31  ;;  %v1816_v61 = vmul.f32 1.442695, %v1709_v57  ;;  %v1624_v1 = vpop.permute.xlu1 %1623  ;;  %v9319_v57 = vld [vmem:[#allocation100_spill] sm:$0xff] }
 0x3f2   : > { %2419 = vmatprep.mubr.bf16.mxu1 %v2320_v32  ;;  %v8120_v40 = vpop.eup %4449 }
 0x3f3   : > { %v1808_v34 = vmul.f32 1.442695, %v1705_v9  ;;  %2420 = vmatmul.mubr.bf16.gmra.mxu1 %v2319_v63  ;;  %v8123_v22 = vpop.eup %4451  ;;  %v1806_v12 = vmul.f32 1.442695, %v1704_v19  ;;  %v9316_v19 = vld [vmem:[#allocation93_spill] sm:$0xff] }
 0x3f4   : > { %v1609_v21 = vpop.permute.xlu0 %1608 }
 0x3f5   : > { %v1707_v41 = vsub.f32 %v9315_v25, %v1609_v21  ;;  %4467 = vpow2.f32 %v1808_v34  ;;  %v1706_v53 = vsub.f32 %v9316_v19, %v1609_v21  ;;  %v1713_v25 = vsub.f32 %v9319_v57, %v1624_v1 }
 0x3f6   : > { %v8126_v26 = vpop.eup %4453  ;;  %4469 = vpow2.f32 %v1806_v12 }
 0x3f7   : > { %v8128_v54 = vpop.eup %4455  ;;  %v1812_v45 = vmul.f32 1.442695, %v1707_v41  ;;  %1926 = vadd.xlane.f32.xlu1 %v8038_v50  ;;  %v2321_v63 = vpack.c.bf16 %v8126_v26, %v8120_v40  ;;  %v9318_v50 = vld [vmem:[#allocation95_spill] sm:$0xff]  ;;  %v1810_v12 = vmul.f32 1.442695, %v1706_v53 }
 0x3f8   : > { %v1619_v32 = vpop.permute.xlu0 %1618  ;;  %v2322_v31 = vpack.c.bf16 %v8128_v54, %v8123_v22  ;;  %v8136_v9 = vpop.eup %4457  ;;  %v1708_v56 = vsub.f32 %v9318_v50, %v1614_v35 }
 0x3f9   : > { %4471 = vpow2.f32 %v1812_v45  ;;  %v1711_v44 = vsub.f32 %v9317_v51, %v1619_v32  ;;  %v9321_v51 = vld [vmem:[#allocation24_spill] sm:$0xff] }
 0x3fa   : > { %2427 = vmatprep.mubr.bf16.mxu1 %v2322_v31  ;;  %v8139_v34 = vpop.eup %4459  ;;  %4473 = vpow2.f32 %v1802_v62  ;;  %v1814_v31 = vmul.f32 1.442695, %v1708_v56  ;;  %v1634_v62 = vpop.permute.xlu1 %1633 }
 0x3fb   : > { %2428 = vmatmul.mubr.bf16.gmra.mxu1 %v2321_v63  ;;  %1923 = vadd.xlane.f32.xlu0 %v8030_v5  ;;  %4475 = vpow2.f32 %v1816_v61  ;;  %v2324_v21 = vpack.c.bf16 %v8139_v34, %v8136_v9  ;;  %v8147_v41 = vpop.eup %4461  ;;  %v1820_v45 = vmul.f32 1.442695, %v1711_v44  ;;  %v1824_v5 = vmul.f32 1.442695, %v1713_v25 }
 0x3fc   : > { %1935 = vadd.xlane.f32.xlu1 %v8044_v60  ;;  %v1629_v19 = vpop.permute.xlu0 %1628  ;;  %v8150_v35 = vpop.eup %4463  ;;  %4477 = vpow2.f32 %v1810_v12  ;;  %v9320_v60 = vld [vmem:[#allocation97_spill] sm:$0xff] }
 0x3fd   : > { %2435 = vmatprep.mubr.bf16.mxu1 %v2324_v21  ;;  %v1710_v63 = vsub.f32 %v9320_v60, %v1619_v32  ;;  %v2323_v61 = vpack.c.bf16 %v8147_v41, %v8150_v35  ;;  %4479 = vpow2.f32 %v1820_v45  ;;  %v1715_v44 = vsub.f32 %v9321_v51, %v1629_v19 }
 0x3fe   : > { %v8156_v53 = vpop.eup %4465  ;;  %4481 = vpow2.f32 %v1814_v31 }
 0x3ff   : > { %1929 = vadd.xlane.f32.xlu0 %v8040_v39  ;;  %v9322_v39 = vld [vmem:[#allocation99_spill] sm:$0xff]  ;;  %4483 = vpow2.f32 %v1824_v5  ;;  %v1818_v25 = vmul.f32 1.442695, %v1710_v63  ;;  %v1828_v12 = vmul.f32 1.442695, %v1715_v44  ;;  %v9325_v44 = vld [vmem:[#allocation28_spill] sm:$0xff] }
 0x400   : > { %1941 = vadd.xlane.f32.xlu1 %v8050_v7  ;;  %v1712_v56 = vsub.f32 %v9322_v39, %v1624_v1  ;;  %v9323_v7 = vld [vmem:[#allocation102_spill] sm:$0xff]  ;;  %v1639_v60 = vpop.permute.xlu0 %1638 }
 0x401   : > { %v1717_v57 = vsub.f32 %v9323_v7, %v1634_v62  ;;  %4485 = vpow2.f32 %v1818_v25  ;;  %v1719_v39 = vsub.f32 %v9325_v44, %v1639_v60  ;;  %v9326_v7 = vld [vmem:[#allocation101_spill] sm:$0xff] }
 0x402   : > { %v8159_v50 = vpop.eup %4467  ;;  %v1822_v31 = vmul.f32 1.442695, %v1712_v56  ;;  %4487 = vpow2.f32 %v1828_v12  ;;  %v1958_v56 = vadd.f32 %v8106_v33, %v8104_v49  ;;  %v9328_v12 = vld [vmem:[#allocation25_spill] sm:$0xff]  ;;  %v1964_v49 = vadd.f32 %v8123_v22, %v8120_v40 }
 0x403   : > { %2436 = vmatmul.mubr.bf16.gmra.mxu1 %v2323_v61  ;;  %1932 = vadd.xlane.f32.xlu0 %v8046_v46  ;;  %v2326_v32 = vpack.c.bf16 %v8159_v50, %v8156_v53  ;;  %v8167_v21 = vpop.eup %4469  ;;  %v1832_v46 = vmul.f32 1.442695, %v1717_v57  ;;  %v9324_v61 = vld [vmem:[#allocation103_spill] sm:$0xff]  ;;  %v1716_v57 = vsub.f32 %v9326_v7, %v1634_v62  ;;  %v1836_v44 = vmul.f32 1.442695, %v1719_v39  ;;  %v9329_v40 = vld [vmem:[#allocation29_spill] sm:$0xff] }
 0x404   : > { %1947 = vadd.xlane.f32.xlu1 %v8052_v37  ;;  %v1644_v37 = vpop.permute.xlu1 %1643  ;;  %v1714_v51 = vsub.f32 %v9324_v61, %v1629_v19  ;;  %4489 = vpow2.f32 %v1822_v31  ;;  %v1718_v61 = vsub.f32 %v9328_v12, %v1639_v60  ;;  %v1970_v60 = vadd.f32 %v8150_v35, %v8136_v9 }
 0x405   : > { %2443 = vmatprep.mubr.bf16.mxu1 %v2326_v32  ;;  %4491 = vpow2.f32 %v1832_v46  ;;  %v1830_v31 = vmul.f32 1.442695, %v1716_v57  ;;  %v1720_v22 = vsub.f32 %v9329_v40, %v1644_v37  ;;  %v1973_v12 = vadd.f32 %v8147_v41, %v8139_v34 }
 0x406   : > { %v4472_v45 = vpop.eup %4471  ;;  %v1826_v19 = vmul.f32 1.442695, %v1714_v51 }
 0x407   : > { %1938 = vadd.xlane.f32.xlu0 %v8048_v38  ;;  %v4474_v1 = vpop.eup %4473  ;;  %v1838_v9 = vmul.f32 1.442695, %v1720_v22 }
 0x408   : > { %1953 = vadd.xlane.f32.xlu1 %v8058_v0  ;;  %v8171_v5 = vpop.eup %4475  ;;  %v2325_v63 = vpack.c.bf16 %v8167_v21, %v4474_v1  ;;  %v9327_v0 = vld [vmem:[#allocation26_spill] sm:$0xff]  ;;  %4493 = vpow2.f32 %v1826_v19 }
 0x409   : > { %v2328_v38 = vpack.c.bf16 %v8171_v5, %v4472_v45  ;;  %v1721_v32 = vsub.f32 %v9327_v0, %v1644_v37  ;;  %v4478_v25 = vpop.eup %4477  ;;  %4495 = vpow2.f32 %v1836_v44  ;;  %v1654_v37 = vpop.permute.xlu1 %1653 }
 0x40a   : > { %v4480_v33 = vpop.eup %4479  ;;  %4497 = vpow2.f32 %v1830_v31 }
 0x40b   : > { %2444 = vmatmul.mubr.bf16.gmra.mxu1 %v2325_v63  ;;  %1944 = vadd.xlane.f32.xlu0 %v8054_v6  ;;  %v4482_v62 = vpop.eup %4481  ;;  %v1840_v63 = vmul.f32 1.442695, %v1721_v32  ;;  %v1982_v32 = vadd.f32 %v4478_v25, %v4472_v45 }
 0x40c   : > { %1959 = vadd.xlane.f32.xlu1 %v1958_v56  ;;  %2451 = vmatprep.mubr.bf16.mxu1 %v2328_v38  ;;  %v8186_v6 = vpop.eup %4483  ;;  %v2327_v46 = vpack.c.bf16 %v4482_v62, %v4478_v25  ;;  %v1834_v56 = vmul.f32 1.442695, %v1718_v61  ;;  %v1976_v38 = vadd.f32 %v4474_v1, %v8156_v53  ;;  %v9331_v53 = vld [vmem:[#allocation30_spill] sm:$0xff]  ;;  %v1985_v34 = vadd.f32 %v4482_v62, %v8171_v5  ;;  %v9332_v62 = vld [vmem:[#allocation71_spill] sm:$0xff] }
 0x40d   : > { %v2330_v51 = vpack.c.bf16 %v8186_v6, %v4480_v33  ;;  %4499 = vpow2.f32 %v1840_v63  ;;  %v1725_v1 = vsub.f32 %v9331_v53, %v1654_v37  ;;  %v1979_v63 = vadd.f32 %v8167_v21, %v8159_v50 }
 0x40e   : > { %v4486_v39 = vpop.eup %4485  ;;  %4501 = vpow2.f32 %v1834_v56 }
 0x40f   : > { %1950 = vadd.xlane.f32.xlu0 %v8056_v55  ;;  %v1961_v55 = vadd.f32 %v8111_v17, %v8109_v2  ;;  %v4488_v7 = vpop.eup %4487  ;;  %4503 = vpow2.f32 %v1838_v9  ;;  %v9330_v2 = vld [vmem:[#allocation27_spill] sm:$0xff]  ;;  %v1988_v44 = vadd.f32 %v4486_v39, %v4480_v33  ;;  %v1848_v45 = vmul.f32 1.442695, %v1725_v1 }
 0x410   : > { %1965 = vadd.xlane.f32.xlu1 %v1964_v49  ;;  %v1724_v17 = vsub.f32 %v9330_v2, %v1654_v37 }
 0x411   : > { %v4490_v35 = vpop.eup %4489 }
 0x412   : > { %v4492_v57 = vpop.eup %4491  ;;  %v2329_v0 = vpack.c.bf16 %v4490_v35, %v4486_v39  ;;  %v1991_v40 = vadd.f32 %v4490_v35, %v8186_v6  ;;  %v9333_v6 = vld [vmem:[#allocation73_spill] sm:$0xff] }
 0x413   : > { %2452 = vmatmul.mubr.bf16.gmra.mxu1 %v2327_v46  ;;  %1956 = vadd.xlane.f32.xlu0 %v8060_v48  ;;  %v1967_v48 = vadd.f32 %v8128_v54, %v8126_v26  ;;  %v2332_v19 = vpack.c.bf16 %v4492_v57, %v4488_v7  ;;  %v1846_v26 = vmul.f32 1.442695, %v1724_v17 }
 0x414   : > { %1971 = vadd.xlane.f32.xlu1 %v1970_v60  ;;  %2459 = vmatprep.mubr.bf16.mxu1 %v2330_v51 }
 0x415   : > { %v4494_v61 = vpop.eup %4493  ;;  %4505 = vpow2.f32 %v1846_v26 }
 0x416   : > { %v4496_v49 = vpop.eup %4495  ;;  %v1994_v46 = vadd.f32 %v4494_v61, %v4488_v7  ;;  %4507 = vpow2.f32 %v1848_v45 }
 0x417   : > { %1962 = vadd.xlane.f32.xlu0 %v1961_v55  ;;  %v4498_v31 = vpop.eup %4497 }
 0x418   : > { %1977 = vadd.xlane.f32.xlu1 %v1976_v38  ;;  %v2331_v25 = vpack.c.bf16 %v4498_v31, %v4494_v61  ;;  %v1997_v50 = vadd.f32 %v4498_v31, %v4492_v57 }
 0x41a   : > { %v4500_v54 = vpop.eup %4499 }
 0x41b   : > { %2460 = vmatmul.mubr.bf16.gmra.mxu1 %v2329_v0  ;;  %1968 = vadd.xlane.f32.xlu0 %v1967_v48  ;;  %v2334_v56 = vpack.c.bf16 %v4500_v54, %v4496_v49  ;;  %v4502_v60 = vpop.eup %4501  ;;  %v9334_v48 = vld [vmem:[#allocation76_spill] sm:$0xff] }
 0x41c   : > { %1983 = vadd.xlane.f32.xlu1 %v1982_v32  ;;  %2467 = vmatprep.mubr.bf16.mxu1 %v2332_v19  ;;  %v2000_v41 = vadd.f32 %v4502_v60, %v4496_v49  ;;  %v4504_v33 = vpop.eup %4503 }
 0x41d   : > { %v2333_v51 = vpack.c.bf16 %v4504_v33, %v4502_v60  ;;  %v2003_v22 = vadd.f32 %v4504_v33, %v4500_v54 }
 0x41f   : > { %1974 = vadd.xlane.f32.xlu0 %v1973_v12 }
 0x420   : > { %1989 = vadd.xlane.f32.xlu1 %v1988_v44 }
 0x422   : > { %v4506_v21 = vpop.eup %4505 }
 0x423   : > { %2468 = vmatmul.mubr.bf16.gmra.mxu1 %v2331_v25  ;;  %1980 = vadd.xlane.f32.xlu0 %v1979_v63  ;;  %v4508_v55 = vpop.eup %4507  ;;  %v9336_v63 = vld [vmem:[#allocation37_spill] sm:$0xff] }
 0x424   : > { %1995 = vadd.xlane.f32.xlu1 %v1994_v46  ;;  %2475 = vmatprep.mubr.bf16.mxu1 %v2334_v56  ;;  %v2009_v39 = vadd.f32 %v4508_v55, %v4506_v21 }
 0x427   : > { %1986 = vadd.xlane.f32.xlu0 %v1985_v34 }
 0x428   : > { %2001 = vadd.xlane.f32.xlu1 %v2000_v41 }
 0x42b   : > { %2476 = vmatmul.mubr.bf16.gmra.mxu1 %v2333_v51  ;;  %1992 = vadd.xlane.f32.xlu0 %v1991_v40  ;;  %v9338_v40 = vld [vmem:[#allocation31_spill] sm:$0xff] }
 0x42f   : > { %1998 = vadd.xlane.f32.xlu0 %v1997_v50  ;;  %v9339_v50 = vld [vmem:[#allocation33_spill] sm:$0xff] }
 0x433   : > { %2004 = vadd.xlane.f32.xlu0 %v2003_v22 }
 0x437   : > { %2010 = vadd.xlane.f32.xlu0 %v2009_v39 }
 0x44a   : > { %v1649_v38 = vpop.permute.xlu0 %1648 }
 0x44b   : > { %v1722_v5 = vsub.f32 %v7916_v18, %v1649_v38  ;;  %v1723_v7 = vsub.f32 %v9332_v62, %v1649_v38  ;;  %v9341_v38 = vld [vmem:[#allocation39_spill] sm:$0xff] }
 0x44d   : > { %v1842_v9 = vmul.f32 1.442695, %v1722_v5  ;;  %v1844_v37 = vmul.f32 1.442695, %v1723_v7  ;;  %v9342_v5 = vld [vmem:[#allocation41_spill] sm:$0xff] }
 0x44e   : > { %v1664_v0 = vpop.permute.xlu1 %1663  ;;  %v9343_v62 = vsub.f32 %v9341_v38, %v9342_v5  ;;  %v9365_v38 = vld [vmem:[#allocation58_spill] sm:$0xff] }
 0x44f   : > { %4509 = vpow2.f32 %v1842_v9  ;;  %v1728_v35 = vsub.f32 %v9333_v6, %v1664_v0  ;;  %v1729_v57 = vsub.f32 %v9334_v48, %v1664_v0  ;;  %v9344_v0 = vld [vmem:[#allocation32_spill] sm:$0xff]  ;;  %v9345_v6 = vld [vmem:[#allocation34_spill] sm:$0xff]  ;;  %v9366_v5 = vsub.f32 %v9365_v38, %v7818_v23 }
 0x450   : > { %4511 = vpow2.f32 %v1844_v37  ;;  %v1450_v7 = vmul.f32 1.442695, %v9343_v62 }
 0x451   : > { %v1854_v32 = vmul.f32 1.442695, %v1728_v35  ;;  %v1856_v19 = vmul.f32 1.442695, %v1729_v57  ;;  %v9346_v35 = vsub.f32 %v9344_v0, %v9345_v6  ;;  %v9347_v57 = vld [vmem:[#allocation43_spill] sm:$0xff] }
 0x452   : > { %v1466_v62 = vmul.f32 1.442695, %v9366_v5 }
 0x453   : > { %4513 = vpow2.f32 %v1854_v32  ;;  %v1446_v48 = vmul.f32 1.442695, %v9346_v35  ;;  %v9348_v32 = vld [vmem:[#allocation45_spill] sm:$0xff]  ;;  %v9367_v35 = vld [vmem:[#allocation50_spill] sm:$0xff] }
 0x454   : > { %4515 = vpow2.f32 %v1856_v19  ;;  %v9349_v19 = vsub.f32 %v9347_v57, %v9348_v32 }
 0x457   : > { %v1659_v2 = vpop.permute.xlu0 %1658 }
 0x458   : > { %v1726_v17 = vsub.f32 %v7987_v16, %v1659_v2  ;;  %v1727_v18 = vsub.f32 %v7993_v14, %v1659_v2  ;;  %v9335_v16 = vld [vmem:[#allocation35_spill] sm:$0xff]  ;;  %v1454_v2 = vmul.f32 1.442695, %v9349_v19 }
 0x459   : > { %v9337_v14 = vsub.f32 %v9335_v16, %v9336_v63  ;;  %v9357_v16 = vld [vmem:[#allocation42_spill] sm:$0xff] }
 0x45a   : > { %v1850_v53 = vmul.f32 1.442695, %v1726_v17  ;;  %v1852_v1 = vmul.f32 1.442695, %v1727_v18 }
 0x45b   : > { %v1444_v46 = vmul.f32 1.442695, %v9337_v14 }
 0x45c   : > { %v4510_v12 = vpop.eup %4509  ;;  %4517 = vpow2.f32 %v1850_v53  ;;  %v9350_v53 = vld [vmem:[#allocation36_spill] sm:$0xff] }
 0x45d   : > { %v4512_v61 = vpop.eup %4511  ;;  %4519 = vpow2.f32 %v1852_v1  ;;  %v2335_v44 = vpack.c.bf16 %v4506_v21, %v4510_v12  ;;  %v9340_v21 = vsub.f32 %v9338_v40, %v9339_v50  ;;  %v9351_v1 = vld [vmem:[#allocation38_spill] sm:$0xff]  ;;  %v9362_v50 = vld [vmem:[#allocation44_spill] sm:$0xff] }
 0x45e   : > { %v2336_v49 = vpack.c.bf16 %v4508_v55, %v4512_v61  ;;  %v2006_v31 = vadd.f32 %v4512_v61, %v4510_v12  ;;  %4521 = vpow2.f32 %v1444_v46  ;;  %v9352_v12 = vsub.f32 %v9350_v53, %v9351_v1  ;;  %v9359_v46 = vld [vmem:[#allocation49_spill] sm:$0xff]  ;;  %v9370_v53 = vld [vmem:[#allocation56_spill] sm:$0xff] }
 0x45f   : > { %v1442_v22 = vmul.f32 1.442695, %v9340_v21  ;;  %v9363_v21 = vld [vmem:[#allocation46_spill] sm:$0xff]  ;;  %v9371_v1 = vsub.f32 %v9370_v53, %v7837_v24  ;;  %v9381_v53 = vld [vmem:[#allocation61_spill] sm:$0xff] }
 0x460   : > { %v4514_v26 = vpop.eup %4513  ;;  %2483 = vmatprep.mubr.bf16.mxu1 %v2336_v49  ;;  %2007 = vadd.xlane.f32.xlu1 %v2006_v31  ;;  %v1448_v61 = vmul.f32 1.442695, %v9352_v12  ;;  %v9354_v49 = vld [vmem:[#allocation51_spill] sm:$0xff]  ;;  %v9375_v24 = vld [vmem:[#allocation62_spill] sm:$0xff] }
 0x461   : > { %v4516_v54 = vpop.eup %4515  ;;  %2484 = vmatmul.mubr.bf16.gmra.mxu1 %v2335_v44  ;;  %4523 = vpow2.f32 %v1442_v22  ;;  %v9353_v44 = vld [vmem:[#allocation47_spill] sm:$0xff]  ;;  %v9364_v22 = vsub.f32 %v9362_v50, %v9363_v21  ;;  %v1470_v12 = vmul.f32 1.442695, %v9371_v1  ;;  %v1860_v21 = vld [vmem:[#allocation3 + $0x10] sm:$0xff]  ;;  %v1430_v1 = vsub.f32 %v9381_v53, %v7887_v28 }
 0x462   : > { %v2015_v45 = vadd.f32 %v4516_v54, %v4514_v26  ;;  %4525 = vpow2.f32 %v1450_v7  ;;  %v9355_v31 = vsub.f32 %v9353_v44, %v9354_v49  ;;  %v1859_v7 = vld [vmem:[#allocation3 + $0x8] sm:$0xff] }
 0x463   : > { %4527 = vpow2.f32 %v1446_v48  ;;  %v9368_v48 = vld [vmem:[#allocation48_spill] sm:$0xff] }
 0x464   : > { %2016 = vadd.xlane.f32.xlu0 %v2015_v45  ;;  %4529 = vpow2.f32 %v1454_v2  ;;  %v9369_v57 = vsub.f32 %v9367_v35, %v9368_v48 }
 0x465   : > { %4531 = vpow2.f32 %v1448_v61  ;;  %v1858_v61 = vld [vmem:[#allocation3] sm:$0xff] }
 0x466   : > { %v3259_v25 = vpop.f32.mrf.mxu1  ;;  %v1460_v32 = vmul.f32 1.442695, %v9369_v57  ;;  %v9379_v57 = vld [vmem:[#allocation60_spill] sm:$0xff] }
 0x468   : > { %v3260_v56 = vpop.f32.mrf.mxu1 }
 0x469   : > { %v4518_v60 = vpop.eup %4517  ;;  %v8215_v34 = vadd.f32 %v3260_v56, %v3259_v25  ;;  %v9356_v25 = vld [vmem:[#allocation40_spill] sm:$0xff]  ;;  %v9360_v56 = vld [vmem:[#allocation55_spill] sm:$0xff] }
 0x46a   : > { %v4520_v41 = vpop.eup %4519  ;;  %v8217_v33 = vpop.f32.mrf.mxu1  ;;  %v2337_v51 = vpack.c.bf16 %v4514_v26, %v4518_v60  ;;  %v1458_v26 = vmul.f32 1.442695, %v9355_v31  ;;  %v9358_v63 = vsub.f32 %v9356_v25, %v9357_v16  ;;  %v9372_v25 = vld [vmem:[#allocation54_spill] sm:$0xff]  ;;  %v9373_v16 = vld [vmem:[#allocation52_spill] sm:$0xff] }
 0x46b   : > { %v2338_v55 = vpack.c.bf16 %v4516_v54, %v4520_v41  ;;  %v2012_v39 = vadd.f32 %v4520_v41, %v4518_v60  ;;  %v9361_v60 = vsub.f32 %v9359_v46, %v9360_v56 }
 0x46c   : > { %v8225_v9 = vpop.f32.mrf.mxu1  ;;  %v1452_v14 = vmul.f32 1.442695, %v9358_v63  ;;  %4533 = vpow2.f32 %v1458_v26  ;;  %v1862_v26 = vld [vmem:[#allocation3 + $0x20] sm:$0xff]  ;;  %v9374_v63 = vsub.f32 %v9372_v25, %v9373_v16 }
 0x46d   : > { %2491 = vmatprep.mubr.bf16.mxu1 %v2338_v55  ;;  %2013 = vadd.xlane.f32.xlu1 %v2012_v39  ;;  %v1462_v41 = vmul.f32 1.442695, %v9361_v60  ;;  %v1456_v55 = vmul.f32 1.442695, %v9364_v22  ;;  %v9376_v60 = vsub.f32 %v9375_v24, %v7856_v29  ;;  %v9384_v24 = vld [vmem:[#allocation66_spill] sm:$0xff] }
 0x46e   : > { %v8227_v37 = vpop.f32.mrf.mxu1  ;;  %2492 = vmatmul.mubr.bf16.gmra.mxu1 %v2337_v51  ;;  %v4522_v51 = vpop.eup %4521  ;;  %4535 = vpow2.f32 %v1452_v14  ;;  %v1464_v14 = vmul.f32 1.442695, %v9374_v63 }
 0x46f   : > { %v4524_v39 = vpop.eup %4523  ;;  %4537 = vpow2.f32 %v1462_v41  ;;  %v1891_v19 = vmul.f32 %v4522_v51, %v1859_v7  ;;  %v1474_v41 = vmul.f32 1.442695, %v9376_v60  ;;  %v1432_v60 = vsub.f32 %v9384_v24, %v7903_v10  ;;  %v9387_v10 = vld [vmem:[#allocation63_spill] sm:$0xff] }
 0x470   : > { %v8235_v17 = vpop.f32.mrf.mxu1  ;;  %v4526_v0 = vpop.eup %4525  ;;  %4539 = vpow2.f32 %v1456_v55  ;;  %v1890_v46 = vmul.f32 %v4524_v39, %v1858_v61  ;;  %v1861_v61 = vld [vmem:[#allocation3 + $0x18] sm:$0xff] }
 0x471   : > { %v4528_v2 = vpop.eup %4527  ;;  %4541 = vpow2.f32 %v1466_v62  ;;  %v1864_v62 = vld [vmem:[#allocation3 + $0x30] sm:$0xff] }
 0x472   : > { %v8237_v18 = vpop.f32.mrf.mxu1  ;;  %v4530_v44 = vpop.eup %4529  ;;  %4543 = vpow2.f32 %v1460_v32  ;;  %v1892_v29 = vmul.f32 %v4528_v2, %v1860_v21  ;;  %v9380_v32 = vsub.f32 %v9379_v57, %v7874_v20  ;;  %v9382_v20 = vld [vmem:[#allocation59_spill] sm:$0xff]  ;;  %v1486_v57 = vmul.f32 1.442695, %v1432_v60 }
 0x473   : > { %v4532_v56 = vpop.eup %4531  ;;  %4545 = vpow2.f32 %v1470_v12  ;;  %v1896_v12 = vmul.f32 %v4530_v44, %v1864_v62  ;;  %v9383_v63 = vsub.f32 %v9382_v20, %v7834_v27  ;;  %v1868_v62 = vld [vmem:[#allocation3 + $0x50] sm:$0xff] }
 0x474   : > { %v8245_v54 = vpop.f32.mrf.mxu1  ;;  %4547 = vpow2.f32 %v1464_v14  ;;  %v1893_v28 = vmul.f32 %v4532_v56, %v1861_v61 }
 0x475   : > { %4549 = vpow2.f32 %v1474_v41  ;;  %v1472_v14 = vmul.f32 1.442695, %v9383_v63 }
 0x476   : > { %v8247_v45 = vpop.f32.mrf.mxu1 }
 0x478   : > { %v8255_v40 = vpop.f32.mrf.mxu1 }
 0x479   : > { %v4534_v22 = vpop.eup %4533 }
 0x47a   : > { %2122 = vperm.xlu0 %4391, %v4522_v51   ;;  %v8263_v6 = vpop.f32.mrf.mxu1  ;;  %v1894_v51 = vmul.f32 %v4526_v0, %v1862_v26 }
 0x47c   : > { %v8271_v49 = vpop.f32.mrf.mxu1 }
 0x47e   : > { %2137 = vperm.xlu0 %4391, %v4526_v0   ;;  %2117 = vperm.xlu1 %4392, %v4524_v39   ;;  %v8280_v55 = vpop.f32.mrf.mxu1  ;;  %v9377_v39 = vld [vmem:[#allocation53_spill] sm:$0xff]  ;;  %v4536_v0 = vpop.eup %4535 }
 0x47f   : > { %v9378_v35 = vsub.f32 %v9377_v39, %v7815_v4 }
 0x480   : > { %v1927_v23 = vpop.xlane.xlu1 %1926  ;;  %v8292_v4 = vpop.f32.mrf.mxu1 }
 0x481   : > { %v2019_v31 = vadd.f32 %v1927_v23, %v1891_v19  ;;  %v1468_v48 = vmul.f32 1.442695, %v9378_v35  ;;  %v1478_v19 = vmul.f32 1.442695, %v9380_v32  ;;  %v9388_v32 = vld [vmem:[#allocation70_spill] sm:$0xff] }
 0x482   : > { %2147 = vperm.xlu0 %4391, %v4530_v44   ;;  %2127 = vperm.xlu1 %4392, %v4528_v2   ;;  %v1866_v2 = vld [vmem:[#allocation3 + $0x40] sm:$0xff] }
 0x483   : > { %2052 = vst.msk [vmem:[#allocation3 + $0x8] sm:$0xff] %vm2050_vm11, %v2019_v31  ;;  %v4538_v31 = vpop.eup %4537  ;;  %4551 = vpow2.f32 %v1468_v48  ;;  %v1898_v41 = vmul.f32 %v4534_v22, %v1866_v2  ;;  %v1429_v48 = vsub.f32 %v9387_v10, %v7871_v36  ;;  %v1870_v36 = vld [vmem:[#allocation3 + $0x60] sm:$0xff] }
 0x484   : > { %v1924_v50 = vpop.xlane.xlu0 %1923  ;;  %v4540_v44 = vpop.eup %4539  ;;  %4553 = vpow2.f32 %v1478_v19  ;;  %v1434_v19 = vsub.f32 %v9388_v32, %v7934_v15  ;;  %v1900_v53 = vmul.f32 %v4538_v31, %v1868_v62  ;;  %v1874_v32 = vld [vmem:[#allocation3 + $0x80] sm:$0xff] }
 0x485   : > { %v1936_v38 = vpop.xlane.xlu1 %1935  ;;  %v2018_v5 = vadd.f32 %v1924_v50, %v1890_v46  ;;  %v1482_v46 = vmul.f32 1.442695, %v1430_v1  ;;  %v1863_v50 = vld [vmem:[#allocation3 + $0x28] sm:$0xff]  ;;  %v4542_v21 = vpop.eup %4541  ;;  %4555 = vpow2.f32 %v1472_v14 }
 0x486   : > { %v2022_v7 = vadd.f32 %v1936_v38, %v1894_v51  ;;  %2157 = vperm.xlu0 %4391, %v4534_v22   ;;  %2132 = vperm.xlu1 %4392, %v4532_v56   ;;  %v8301_v38 = vpop.f32.mrf.mxu1  ;;  %v9385_v56 = vld [vmem:[#allocation57_spill] sm:$0xff]  ;;  %v1895_v22 = vmul.f32 %v4536_v0, %v1863_v50  ;;  %v1902_v63 = vmul.f32 %v4542_v21, %v1870_v36 }
 0x487   : > { %2051 = vst.msk [vmem:[#allocation3] sm:$0xff] %vm2050_vm11, %v2018_v5  ;;  %v9386_v39 = vsub.f32 %v9385_v56, %v7853_v8  ;;  %4557 = vpow2.f32 %v1482_v46 }
 0x488   : > { %2055 = vst.msk [vmem:[#allocation3 + $0x20] sm:$0xff] %vm2050_vm11, %v2022_v7  ;;  %v1930_v23 = vpop.xlane.xlu0 %1929  ;;  %v8312_v8 = vpop.f32.mrf.mxu1 }
 0x489   : > { %v1942_v26 = vpop.xlane.xlu1 %1941  ;;  %v2020_v25 = vadd.f32 %v1930_v23, %v1892_v29  ;;  %v1476_v35 = vmul.f32 1.442695, %v9386_v39  ;;  %v4544_v29 = vpop.eup %4543 }
 0x48a   : > { %v2024_v16 = vadd.f32 %v1942_v26, %v1896_v12  ;;  %2167 = vperm.xlu0 %4391, %v4538_v31   ;;  %2142 = vperm.xlu1 %4392, %v4536_v0   ;;  %v1865_v12 = vld [vmem:[#allocation3 + $0x38] sm:$0xff]  ;;  %v4546_v23 = vpop.eup %4545  ;;  %v1480_v0 = vmul.f32 1.442695, %v1429_v48  ;;  %v8318_v24 = vpop.f32.mrf.mxu1 }
 0x48b   : > { %2053 = vst.msk [vmem:[#allocation3 + $0x10] sm:$0xff] %vm2050_vm11, %v2020_v25  ;;  %4559 = vpow2.f32 %v1476_v35  ;;  %v1897_v2 = vmul.f32 %v4540_v44, %v1865_v12  ;;  %v4548_v15 = vpop.eup %4547  ;;  %v9389_v31 = vld [vmem:[#allocation75_spill] sm:$0xff] }
 0x48c   : > { %2057 = vst.msk [vmem:[#allocation3 + $0x30] sm:$0xff] %vm2050_vm11, %v2024_v16  ;;  %v1933_v51 = vpop.xlane.xlu0 %1932  ;;  %4561 = vpow2.f32 %v1486_v57  ;;  %v1490_v16 = vmul.f32 1.442695, %v1434_v19  ;;  %v1436_v20 = vsub.f32 %v9389_v31, %v7961_v3  ;;  %v4550_v46 = vpop.eup %4549  ;;  %v1869_v35 = vld [vmem:[#allocation3 + $0x58] sm:$0xff] }
 0x48d   : > { %v1948_v5 = vpop.xlane.xlu1 %1947  ;;  %v2021_v27 = vadd.f32 %v1933_v51, %v1893_v28  ;;  %v1867_v28 = vld [vmem:[#allocation3 + $0x48] sm:$0xff]  ;;  %v1872_v51 = vld [vmem:[#allocation3 + $0x70] sm:$0xff]  ;;  %4563 = vpow2.f32 %v1480_v0  ;;  %v8325_v48 = vpop.f32.mrf.mxu1  ;;  %v1906_v36 = vmul.f32 %v4550_v46, %v1874_v32 }
 0x48e   : > { %v2026_v7 = vadd.f32 %v1948_v5, %v1898_v41  ;;  %2177 = vperm.xlu0 %4391, %v4542_v21   ;;  %2152 = vperm.xlu1 %4392, %v4540_v44   ;;  %v9390_v44 = vld [vmem:[#allocation64_spill] sm:$0xff]  ;;  %v9391_v5 = vld [vmem:[#allocation65_spill] sm:$0xff]  ;;  %v1899_v3 = vmul.f32 %v4544_v29, %v1867_v28  ;;  %4565 = vpow2.f32 %v1490_v16  ;;  %v1904_v56 = vmul.f32 %v4546_v23, %v1872_v51  ;;  %v9397_v28 = vld [vmem:[#allocation74_spill] sm:$0xff] }
 0x48f   : > { %2054 = vst.msk [vmem:[#allocation3 + $0x18] sm:$0xff] %vm2050_vm11, %v2021_v27  ;;  %v9392_v27 = vsub.f32 %v9390_v44, %v9391_v5  ;;  %v1871_v0 = vld [vmem:[#allocation3 + $0x68] sm:$0xff]  ;;  %v8335_v16 = vpop.f32.mrf.mxu1 }
 0x490   : > { %2059 = vst.msk [vmem:[#allocation3 + $0x40] sm:$0xff] %vm2050_vm11, %v2026_v7  ;;  %v1939_v1 = vpop.xlane.xlu0 %1938  ;;  %v4552_v21 = vpop.eup %4551  ;;  %v1494_v7 = vmul.f32 1.442695, %v1436_v20 }
 0x491   : > { %v1954_v61 = vpop.xlane.xlu1 %1953  ;;  %v2023_v26 = vadd.f32 %v1939_v1, %v1895_v22  ;;  %v1484_v62 = vmul.f32 1.442695, %v9392_v27  ;;  %v4554_v10 = vpop.eup %4553  ;;  %v1903_v11 = vmul.f32 %v4552_v21, %v1871_v0 }
 0x492   : > { %v2028_v25 = vadd.f32 %v1954_v61, %v1900_v53  ;;  %2187 = vperm.xlu0 %4391, %v4546_v23   ;;  %2162 = vperm.xlu1 %4392, %v4544_v29   ;;  %v9393_v53 = vld [vmem:[#allocation67_spill] sm:$0xff]  ;;  %v9394_v29 = vld [vmem:[#allocation68_spill] sm:$0xff]  ;;  %v1901_v61 = vmul.f32 %v4548_v15, %v1869_v35  ;;  %v4556_v23 = vpop.eup %4555  ;;  %v8345_v5 = vpop.f32.mrf.mxu1 }
 0x493   : > { %2056 = vst.msk [vmem:[#allocation3 + $0x28] sm:$0xff] %vm2050_vm11, %v2023_v26  ;;  %4567 = vpow2.f32 %v1484_v62  ;;  %v9395_v1 = vsub.f32 %v9393_v53, %v9394_v29  ;;  %v1498_v26 = vmul.f32 1.442695, %v1438_v47  ;;  %v1880_v29 = vld [vmem:[#allocation3 + $0xb0] sm:$0xff] }
 0x494   : > { %2061 = vst.msk [vmem:[#allocation3 + $0x50] sm:$0xff] %vm2050_vm11, %v2028_v25  ;;  %v1945_v14 = vpop.xlane.xlu0 %1944  ;;  %4569 = vpow2.f32 %v1494_v7  ;;  %v8352_v32 = vpop.f32.mrf.mxu1 }
 0x495   : > { %v1960_v60 = vpop.xlane.xlu1 %1959  ;;  %v2025_v41 = vadd.f32 %v1945_v14, %v1897_v2  ;;  %v1488_v12 = vmul.f32 1.442695, %v9395_v1  ;;  %v4558_v2 = vpop.eup %4557 }
 0x496   : > { %v2030_v50 = vadd.f32 %v1960_v60, %v1902_v63  ;;  %2197 = vperm.xlu0 %4391, %v4550_v46   ;;  %2172 = vperm.xlu1 %4392, %v4548_v15   ;;  %v1876_v63 = vld [vmem:[#allocation3 + $0x90] sm:$0xff]  ;;  %v9396_v15 = vld [vmem:[#allocation69_spill] sm:$0xff]  ;;  %v1502_v46 = vmul.f32 1.442695, %v1440_v43 }
 0x497   : > { %2058 = vst.msk [vmem:[#allocation3 + $0x38] sm:$0xff] %vm2050_vm11, %v2025_v41  ;;  %4571 = vpow2.f32 %v1488_v12  ;;  %v9398_v60 = vsub.f32 %v9396_v15, %v9397_v28  ;;  %v1908_v41 = vmul.f32 %v4554_v10, %v1876_v63  ;;  %v9400_v43 = vld [vmem:[#allocation77_spill] sm:$0xff]  ;;  %v8359_v63 = vpop.f32.mrf.mxu1  ;;  %v1882_v28 = vld [vmem:[#allocation3 + $0xc0] sm:$0xff] }
 0x498   : > { %2063 = vst.msk [vmem:[#allocation3 + $0x60] sm:$0xff] %vm2050_vm11, %v2030_v50  ;;  %v1951_v39 = vpop.xlane.xlu0 %1950  ;;  %v4560_v47 = vpop.eup %4559  ;;  %4573 = vpow2.f32 %v1498_v26  ;;  %v1873_v50 = vld [vmem:[#allocation3 + $0x78] sm:$0xff]  ;;  %v9403_v26 = vld [vmem:[#allocation78_spill] sm:$0xff] }
 0x499   : > { %v1966_v22 = vpop.xlane.xlu1 %1965  ;;  %v2027_v57 = vadd.f32 %v1951_v39, %v1899_v3  ;;  %v1492_v42 = vmul.f32 1.442695, %v9398_v60  ;;  %v4562_v44 = vpop.eup %4561  ;;  %v1878_v3 = vld [vmem:[#allocation3 + $0xa0] sm:$0xff] }
 0x49a   : > { %v2032_v19 = vadd.f32 %v1966_v22, %v1904_v56  ;;  %2207 = vperm.xlu0 %4391, %v4554_v10   ;;  %2182 = vperm.xlu1 %4392, %v4552_v21   ;;  %v1905_v21 = vmul.f32 %v4556_v23, %v1873_v50  ;;  %v4564_v30 = vpop.eup %4563  ;;  %v9401_v56 = vsub.f32 %v9399_v59, %v9400_v43  ;;  %v1875_v22 = vld [vmem:[#allocation3 + $0x88] sm:$0xff] }
 0x49b   : > { %2060 = vst.msk [vmem:[#allocation3 + $0x48] sm:$0xff] %vm2050_vm11, %v2027_v57  ;;  %4575 = vpow2.f32 %v1492_v42  ;;  %v1910_v35 = vmul.f32 %v4558_v2, %v1878_v3  ;;  %v4566_v57 = vpop.eup %4565  ;;  %v1907_v12 = vmul.f32 %v4560_v47, %v1875_v22  ;;  %v1912_v0 = vmul.f32 %v4562_v44, %v1880_v29  ;;  %v1884_v3 = vld [vmem:[#allocation3 + $0xd0] sm:$0xff] }
 0x49c   : > { %2065 = vst.msk [vmem:[#allocation3 + $0x70] sm:$0xff] %vm2050_vm11, %v2032_v19  ;;  %v1957_v25 = vpop.xlane.xlu0 %1956  ;;  %v1496_v39 = vmul.f32 1.442695, %v9401_v56  ;;  %4577 = vpow2.f32 %v1502_v46  ;;  %v1914_v46 = vmul.f32 %v4566_v57, %v1882_v28 }
 0x49d   : > { %v1972_v31 = vpop.xlane.xlu1 %1971  ;;  %v2029_v20 = vadd.f32 %v1957_v25, %v1901_v61 }
 0x49e   : > { %v2034_v14 = vadd.f32 %v1972_v31, %v1906_v36  ;;  %2217 = vperm.xlu0 %4391, %v4558_v2   ;;  %2192 = vperm.xlu1 %4392, %v4556_v23   ;;  %4579 = vpow2.f32 %v1496_v39  ;;  %v9402_v23 = vld [vmem:[#allocation159_spill] sm:$0xff]  ;;  %v1877_v31 = vld [vmem:[#allocation3 + $0x98] sm:$0xff] }
 0x49f   : > { %2062 = vst.msk [vmem:[#allocation3 + $0x58] sm:$0xff] %vm2050_vm11, %v2029_v20  ;;  %v9404_v36 = vsub.f32 %v9402_v23, %v9403_v26  ;;  %v1909_v42 = vmul.f32 %v4564_v30, %v1877_v31  ;;  %v1885_v26 = vld [vmem:[#allocation3 + $0xd8] sm:$0xff] }
 0x4a0   : > { %2067 = vst.msk [vmem:[#allocation3 + $0x80] sm:$0xff] %vm2050_vm11, %v2034_v14  ;;  %v1963_v51 = vpop.xlane.xlu0 %1962  ;;  %v4568_v61 = vpop.eup %4567 }
 0x4a1   : > { %v1978_v27 = vpop.xlane.xlu1 %1977  ;;  %v2031_v62 = vadd.f32 %v1963_v51, %v1903_v11  ;;  %v1500_v25 = vmul.f32 1.442695, %v9404_v36  ;;  %v4570_v20 = vpop.eup %4569  ;;  %v1879_v51 = vld [vmem:[#allocation3 + $0xa8] sm:$0xff] }
 0x4a2   : > { %v2036_v7 = vadd.f32 %v1978_v27, %v1908_v41  ;;  %2227 = vperm.xlu0 %4391, %v4562_v44   ;;  %2202 = vperm.xlu1 %4392, %v4560_v47   ;;  %v1504_v47 = vmul.f32 1.442695, %v1441_v58  ;;  %v8368_v44 = vpop.f32.mrf.mxu1  ;;  %v1911_v13 = vmul.f32 %v4568_v61, %v1879_v51  ;;  %v1916_v58 = vmul.f32 %v4570_v20, %v1884_v3 }
 0x4a3   : > { %2064 = vst.msk [vmem:[#allocation3 + $0x68] sm:$0xff] %vm2050_vm11, %v2031_v62  ;;  %4581 = vpow2.f32 %v1500_v25 }
 0x4a4   : > { %2069 = vst.msk [vmem:[#allocation3 + $0x90] sm:$0xff] %vm2050_vm11, %v2036_v7  ;;  %v1969_v10 = vpop.xlane.xlu0 %1968  ;;  %v4572_v11 = vpop.eup %4571  ;;  %4583 = vpow2.f32 %v1504_v47 }
 0x4a5   : > { %v1984_v19 = vpop.xlane.xlu1 %1983  ;;  %v2033_v53 = vadd.f32 %v1969_v10, %v1905_v21  ;;  %v8366_v50 = vpop.eup %4573 }
 0x4a6   : > { %v2038_v1 = vadd.f32 %v1984_v19, %v1910_v35  ;;  %2237 = vperm.xlu0 %4391, %v4566_v57   ;;  %2212 = vperm.xlu1 %4392, %v4564_v30   ;;  %v1881_v30 = vld [vmem:[#allocation3 + $0xb8] sm:$0xff]  ;;  %v8375_v43 = vpop.f32.mrf.mxu1  ;;  %v1883_v19 = vld [vmem:[#allocation3 + $0xc8] sm:$0xff] }
 0x4a7   : > { %2066 = vst.msk [vmem:[#allocation3 + $0x78] sm:$0xff] %vm2050_vm11, %v2033_v53  ;;  %v1913_v22 = vmul.f32 %v4572_v11, %v1881_v30  ;;  %v1886_v30 = vld [vmem:[#allocation3 + $0xe0] sm:$0xff] }
 0x4a8   : > { %2071 = vst.msk [vmem:[#allocation3 + $0xa0] sm:$0xff] %vm2050_vm11, %v2038_v1  ;;  %v1975_v2 = vpop.xlane.xlu0 %1974  ;;  %v4576_v52 = vpop.eup %4575 }
 0x4a9   : > { %v1990_v14 = vpop.xlane.xlu1 %1989  ;;  %v2035_v15 = vadd.f32 %v1975_v2, %v1907_v12  ;;  %v8373_v59 = vpop.eup %4577 }
 0x4aa   : > { %v2040_v60 = vadd.f32 %v1990_v14, %v1912_v0  ;;  %2247 = vperm.xlu0 %4391, %v4570_v20   ;;  %2222 = vperm.xlu1 %4392, %v4568_v61   ;;  %v1915_v61 = vmul.f32 %v4576_v52, %v1883_v19  ;;  %v1887_v14 = vld [vmem:[#allocation3 + $0xe8] sm:$0xff] }
 0x4ab   : > { %2068 = vst.msk [vmem:[#allocation3 + $0x88] sm:$0xff] %vm2050_vm11, %v2035_v15  ;;  %v4580_v53 = vpop.eup %4579 }
 0x4ac   : > { %2073 = vst.msk [vmem:[#allocation3 + $0xb0] sm:$0xff] %vm2050_vm11, %v2040_v60  ;;  %v1981_v41 = vpop.xlane.xlu0 %1980  ;;  %v1917_v31 = vmul.f32 %v4580_v53, %v1885_v26  ;;  %v1888_v26 = vld [vmem:[#allocation3 + $0xf0] sm:$0xff] }
 0x4ad   : > { %v1996_v27 = vpop.xlane.xlu1 %1995  ;;  %v2037_v62 = vadd.f32 %v1981_v41, %v1909_v42 }
 0x4ae   : > { %v2042_v7 = vadd.f32 %v1996_v27, %v1914_v46  ;;  %2257 = vperm.xlu0 %4391, %v8366_v50   ;;  %2232 = vperm.xlu1 %4392, %v4572_v11  }
 0x4af   : > { %2070 = vst.msk [vmem:[#allocation3 + $0x98] sm:$0xff] %vm2050_vm11, %v2037_v62 }
 0x4b0   : > { %2075 = vst.msk [vmem:[#allocation3 + $0xc0] sm:$0xff] %vm2050_vm11, %v2042_v7  ;;  %v1987_v21 = vpop.xlane.xlu0 %1986  ;;  %v4582_v36 = vpop.eup %4581 }
 0x4b1   : > { %v2002_v56 = vpop.xlane.xlu1 %2001  ;;  %v2039_v39 = vadd.f32 %v1987_v21, %v1911_v13  ;;  %v4584_v15 = vpop.eup %4583  ;;  %v1919_v11 = vmul.f32 %v4582_v36, %v1887_v14 }
 0x4b2   : > { %v2044_v35 = vadd.f32 %v2002_v56, %v1916_v58  ;;  %2267 = vperm.xlu0 %4391, %v8373_v59   ;;  %2242 = vperm.xlu1 %4392, %v4576_v52  }
 0x4b3   : > { %2072 = vst.msk [vmem:[#allocation3 + $0xa8] sm:$0xff] %vm2050_vm11, %v2039_v39  ;;  %v8379_v10 = vpop.f32.mrf.mxu1  ;;  %v1918_v39 = vmul.f32 %v8366_v50, %v1886_v30  ;;  %v1920_v50 = vmul.f32 %v8373_v59, %v1888_v26  ;;  %v2083_v30 = vld [vmem:[#allocation4 + $0xb0] sm:$0xff] }
 0x4b4   : > { %2077 = vst.msk [vmem:[#allocation3 + $0xd0] sm:$0xff] %vm2050_vm11, %v2044_v35  ;;  %v1993_v57 = vpop.xlane.xlu0 %1992 }
 0x4b5   : > { %v8382_v29 = vpop.f32.mrf.mxu1  ;;  %v2041_v1 = vadd.f32 %v1993_v57, %v1913_v22  ;;  %v1889_v22 = vld [vmem:[#allocation3 + $0xf8] sm:$0xff] }
 0x4b6   : > { %2252 = vperm.xlu1 %4392, %v4580_v53   ;;  %v1921_v53 = vmul.f32 %v4584_v15, %v1889_v22 }
 0x4b7   : > { %2074 = vst.msk [vmem:[#allocation3 + $0xb8] sm:$0xff] %vm2050_vm11, %v2041_v1  ;;  %v8385_v12 = vpop.f32.mrf.mxu1 }
 0x4b8   : > { %v1999_v23 = vpop.xlane.xlu0 %1998 }
 0x4b9   : > { %v8387_v25 = vpop.f32.mrf.mxu1  ;;  %v2043_v0 = vadd.f32 %v1999_v23, %v1915_v61 }
 0x4ba   : > { %2262 = vperm.xlu1 %4392, %v4582_v36  }
 0x4bb   : > { %2076 = vst.msk [vmem:[#allocation3 + $0xc8] sm:$0xff] %vm2050_vm11, %v2043_v0  ;;  %v8390_v2 = vpop.f32.mrf.mxu1  ;;  %v2084_v0 = vld [vmem:[#allocation4] sm:$0xff] }
 0x4bc   : > { %v2005_v20 = vpop.xlane.xlu0 %2004 }
 0x4bd   : > { %v8392_v28 = vpop.f32.mrf.mxu1  ;;  %v2045_v60 = vadd.f32 %v2005_v20, %v1917_v31  ;;  %v3264_v20 = vadd.f32 %v8225_v9, %v8217_v33  ;;  %v2089_v9 = vld [vmem:[#allocation4 + $0x30] sm:$0xff] }
 0x4be   : > { %2272 = vperm.xlu1 %4392, %v4584_v15  }
 0x4bf   : > { %2078 = vst.msk [vmem:[#allocation3 + $0xd8] sm:$0xff] %vm2050_vm11, %v2045_v60  ;;  %v8395_v42 = vpop.f32.mrf.mxu1 }
 0x4c0   : > { %v2011_v47 = vpop.xlane.xlu0 %2010 }
 0x4c1   : > { %v8397_v46 = vpop.f32.mrf.mxu1  ;;  %v2047_v41 = vadd.f32 %v2011_v47, %v1919_v11  ;;  %v2087_v47 = vld [vmem:[#allocation4 + $0x50] sm:$0xff] }
 0x4c3   : > { %2080 = vst.msk [vmem:[#allocation3 + $0xe8] sm:$0xff] %vm2050_vm11, %v2047_v41  ;;  %v8400_v51 = vpop.f32.mrf.mxu1 }
 0x4c5   : > { %v8402_v27 = vpop.f32.mrf.mxu1 }
 0x4c7   : > { %v8404_v62 = vpop.f32.mrf.mxu1 }
 0x4c9   : > { %v8406_v3 = vpop.f32.mrf.mxu1 }
 0x4cb   : > { %v8408_v7 = vpop.f32.mrf.mxu1 }
 0x4cd   : > { %v8410_v13 = vpop.f32.mrf.mxu1 }
 0x4cf   : > { %v8412_v52 = vpop.f32.mrf.mxu1 }
 0x4d1   : > { %v8414_v58 = vpop.f32.mrf.mxu1 }
 0x4d3   : > { %v8416_v21 = vpop.f32.mrf.mxu1 }
 0x4d5   : > { %v8418_v56 = vpop.f32.mrf.mxu1 }
 0x4d7   : > { %v8421_v19 = vpop.f32.mrf.mxu1 }
 0x4d9   : > { %v8424_v23 = vpop.f32.mrf.mxu1 }
 0x4db   : > { %v8427_v36 = vpop.f32.mrf.mxu1 }
 0x4dd   : > { %v8432_v11 = vpop.f32.mrf.mxu1 }
 0x4e9   : > { %v2008_v35 = vpop.xlane.xlu1 %2007 }
 0x4ea   : > { %v2046_v57 = vadd.f32 %v2008_v35, %v1918_v39  ;;  %v3273_v35 = vadd.f32 %v8255_v40, %v8247_v45  ;;  %v3267_v45 = vadd.f32 %v8235_v17, %v8227_v37  ;;  %v2093_v17 = vld [vmem:[#allocation4 + $0xe8] sm:$0xff] }
 0x4ec   : > { %2079 = vst.msk [vmem:[#allocation3 + $0xe0] sm:$0xff] %vm2050_vm11, %v2046_v57  ;;  %v8437_v57 = vpop.f32.mrf.mxu1 }
 0x4ed   : > { %v2017_v1 = vpop.xlane.xlu0 %2016 }
 0x4ee   : > { %v2049_v61 = vadd.f32 %v2017_v1, %v1921_v53  ;;  %v2085_v1 = vld [vmem:[#allocation4 + $0xd8] sm:$0xff]  ;;  %v8444_v40 = vpop.f32.mrf.mxu1 }
 0x4f0   : > { %2082 = vst.msk [vmem:[#allocation3 + $0xf8] sm:$0xff] %vm2050_vm11, %v2049_v61 }
 0x4f5   : > { %v2123_v31 = vpop.permute.xlu0 %2122 }
 0x4f6   : > { %v2276_v14 = vmul.f32 %v2123_v31, %v2084_v0  ;;  %v2014_v60 = vpop.xlane.xlu1 %2013  ;;  %v3279_v0 = vadd.f32 %v8292_v4, %v8280_v55 }
 0x4f7   : > { %v2048_v15 = vadd.f32 %v2014_v60, %v1920_v50 }
 0x4f8   : > { %v2501_v41 = vadd.f32 %v3264_v20, %v2276_v14  ;;  %v2091_v14 = vld [vmem:[#allocation4 + $0x80] sm:$0xff] }
 0x4f9   : > { %2081 = vst.msk [vmem:[#allocation3 + $0xf0] sm:$0xff] %vm2050_vm11, %v2048_v15  ;;  %v2138_v39 = vpop.permute.xlu0 %2137  ;;  %v2086_v15 = vld [vmem:[#allocation4 + $0x18] sm:$0xff] }
 0x4fa   : > { %2533 = vst [vmem:[#allocation4] sm:$0xff] %v2501_v41  ;;  %v2279_v22 = vmul.f32 %v2138_v39, %v2087_v47  ;;  %v2118_v59 = vpop.permute.xlu1 %2117  ;;  %v8450_v39 = vpop.f32.mrf.mxu1 }
 0x4fb   : > { %v2275_v33 = vmul.f32 %v2118_v59, %v2083_v30  ;;  %v3270_v30 = vadd.f32 %v8245_v54, %v8237_v18  ;;  %v2095_v54 = vld [vmem:[#allocation4 + $0x60] sm:$0xff] }
 0x4fc   : > { %v2504_v53 = vadd.f32 %v3273_v35, %v2279_v22  ;;  %v2088_v22 = vld [vmem:[#allocation4 + $0x68] sm:$0xff] }
 0x4fd   : > { %v2500_v61 = vadd.f32 %v8215_v34, %v2275_v33  ;;  %v2148_v26 = vpop.permute.xlu0 %2147  ;;  %v3285_v34 = vadd.f32 %v8325_v48, %v8318_v24 }
 0x4fe   : > { %2536 = vst [vmem:[#allocation4 + $0x50] sm:$0xff] %v2504_v53  ;;  %v2281_v31 = vmul.f32 %v2148_v26, %v2089_v9  ;;  %v2128_v50 = vpop.permute.xlu1 %2127  ;;  %v3291_v9 = vadd.f32 %v8359_v63, %v8352_v32  ;;  %v3276_v53 = vadd.f32 %v8271_v49, %v8263_v6  ;;  %v2090_v26 = vld [vmem:[#allocation4 + $0x48] sm:$0xff] }
 0x4ff   : > { %2532 = vst [vmem:[#allocation4 + $0xb0] sm:$0xff] %v2500_v61  ;;  %v2277_v20 = vmul.f32 %v2128_v50, %v2085_v1  ;;  %v8456_v1 = vpop.f32.mrf.mxu1  ;;  %v3297_v50 = vadd.f32 %v8382_v29, %v8379_v10  ;;  %v2097_v49 = vld [vmem:[#allocation4 + $0x8] sm:$0xff] }
 0x500   : > { %v2506_v60 = vadd.f32 %v3279_v0, %v2281_v31 }
 0x501   : > { %v2502_v47 = vadd.f32 %v3267_v45, %v2277_v20  ;;  %v2158_v41 = vpop.permute.xlu0 %2157  ;;  %v3282_v45 = vadd.f32 %v8312_v8, %v8301_v38  ;;  %v8462_v20 = vpop.f32.mrf.mxu1  ;;  %v2099_v8 = vld [vmem:[#allocation4 + $0x38] sm:$0xff] }
 0x502   : > { %2538 = vst [vmem:[#allocation4 + $0x30] sm:$0xff] %v2506_v60  ;;  %v2283_v55 = vmul.f32 %v2158_v41, %v2091_v14  ;;  %v2133_v4 = vpop.permute.xlu1 %2132  ;;  %v2092_v60 = vld [vmem:[#allocation4 + $0x88] sm:$0xff]  ;;  %v3303_v41 = vadd.f32 %v8392_v28, %v8390_v2 }
 0x503   : > { %2534 = vst [vmem:[#allocation4 + $0xd8] sm:$0xff] %v2502_v47  ;;  %v2278_v37 = vmul.f32 %v2133_v4, %v2086_v15 }
 0x504   : > { %v2508_v35 = vadd.f32 %v3285_v34, %v2283_v55  ;;  %v3288_v34 = vadd.f32 %v8345_v5, %v8335_v16  ;;  %v8468_v55 = vpop.f32.mrf.mxu1  ;;  %v2101_v5 = vld [vmem:[#allocation4 + $0x40] sm:$0xff] }
 0x505   : > { %v2503_v59 = vadd.f32 %v3270_v30, %v2278_v37  ;;  %v2168_v33 = vpop.permute.xlu0 %2167  ;;  %v2094_v30 = vld [vmem:[#allocation4 + $0xb8] sm:$0xff] }
 0x506   : > { %2540 = vst [vmem:[#allocation4 + $0x80] sm:$0xff] %v2508_v35  ;;  %v2285_v24 = vmul.f32 %v2168_v33, %v2093_v17  ;;  %v2143_v48 = vpop.permute.xlu1 %2142  ;;  %v3309_v35 = vadd.f32 %v8402_v27, %v8400_v51  ;;  %v3300_v27 = vadd.f32 %v8387_v25, %v8385_v12  ;;  %v2105_v25 = vld [vmem:[#allocation4 + $0x70] sm:$0xff] }
 0x507   : > { %2535 = vst [vmem:[#allocation4 + $0x18] sm:$0xff] %v2503_v59  ;;  %v2280_v18 = vmul.f32 %v2143_v48, %v2088_v22  ;;  %v3294_v22 = vadd.f32 %v8375_v43, %v8368_v44  ;;  %v3337_v59 = vpop.f32.mrf.mxu1  ;;  %v2103_v43 = vld [vmem:[#allocation4 + $0xe0] sm:$0xff] }
 0x508   : > { %v2510_v61 = vadd.f32 %v3291_v9, %v2285_v24  ;;  %v2096_v9 = vld [vmem:[#allocation4 + $0xf0] sm:$0xff] }
 0x509   : > { %v2505_v0 = vadd.f32 %v3276_v53, %v2280_v18  ;;  %v2178_v31 = vpop.permute.xlu0 %2177  ;;  %v3315_v53 = vadd.f32 %v8410_v13, %v8408_v7  ;;  %v3306_v13 = vadd.f32 %v8397_v46, %v8395_v42  ;;  %v2107_v46 = vld [vmem:[#allocation4 + $0xa8] sm:$0xff] }
 0x50a   : > { %2542 = vst [vmem:[#allocation4 + $0xe8] sm:$0xff] %v2510_v61  ;;  %v2287_v32 = vmul.f32 %v2178_v31, %v2095_v54  ;;  %v2153_v63 = vpop.permute.xlu1 %2152  ;;  %v3338_v54 = vpop.f32.mrf.mxu1 }
 0x50b   : > { %2537 = vst [vmem:[#allocation4 + $0x68] sm:$0xff] %v2505_v0  ;;  %v2282_v6 = vmul.f32 %v2153_v63, %v2090_v26  ;;  %v2098_v26 = vld [vmem:[#allocation4 + $0x78] sm:$0xff] }
 0x50c   : > { %v2512_v14 = vadd.f32 %v3297_v50, %v2287_v32  ;;  %v3321_v50 = vadd.f32 %v8418_v56, %v8416_v21  ;;  %v8482_v63 = vpop.f32.mrf.mxu1 }
 0x50d   : > { %v2507_v15 = vadd.f32 %v3282_v45, %v2282_v6  ;;  %v2188_v47 = vpop.permute.xlu0 %2187  ;;  %v2100_v6 = vld [vmem:[#allocation4 + $0x58] sm:$0xff] }
 0x50e   : > { %2544 = vst [vmem:[#allocation4 + $0x60] sm:$0xff] %v2512_v14  ;;  %v2289_v10 = vmul.f32 %v2188_v47, %v2097_v49  ;;  %v2163_v29 = vpop.permute.xlu1 %2162  ;;  %v3341_v47 = vpop.f32.mrf.mxu1 }
 0x50f   : > { %2539 = vst [vmem:[#allocation4 + $0x48] sm:$0xff] %v2507_v15  ;;  %v2284_v38 = vmul.f32 %v2163_v29, %v2092_v60  ;;  %v3327_v60 = vadd.f32 %v8432_v11, %v8427_v36  ;;  %v3312_v15 = vadd.f32 %v8406_v3, %v8404_v62  ;;  %v2109_v3 = vld [vmem:[#allocation4 + $0x10] sm:$0xff] }
 0x510   : > { %v2514_v4 = vadd.f32 %v3303_v41, %v2289_v10  ;;  %v2102_v10 = vld [vmem:[#allocation4 + $0xc8] sm:$0xff] }
 0x511   : > { %v2509_v37 = vadd.f32 %v3288_v34, %v2284_v38  ;;  %v2198_v17 = vpop.permute.xlu0 %2197 }
 0x512   : > { %2546 = vst [vmem:[#allocation4 + $0x8] sm:$0xff] %v2514_v4  ;;  %v2291_v2 = vmul.f32 %v2198_v17, %v2099_v8  ;;  %v2173_v28 = vpop.permute.xlu1 %2172  ;;  %v3333_v8 = vadd.f32 %v8456_v1, %v8450_v39  ;;  %v3318_v4 = vadd.f32 %v8414_v58, %v8412_v52  ;;  %v2104_v17 = vld [vmem:[#allocation4 + $0x90] sm:$0xff]  ;;  %v3324_v39 = vadd.f32 %v8424_v23, %v8421_v19  ;;  %v2106_v58 = vld [vmem:[#allocation4 + $0xc0] sm:$0xff] }
 0x513   : > { %2541 = vst [vmem:[#allocation4 + $0x88] sm:$0xff] %v2509_v37  ;;  %v2286_v16 = vmul.f32 %v2173_v28, %v2094_v30  ;;  %v3339_v28 = vadd.f32 %v3338_v54, %v3337_v59  ;;  %v3330_v59 = vadd.f32 %v8444_v40, %v8437_v57  ;;  %v2108_v19 = vld [vmem:[#allocation4 + $0xd0] sm:$0xff] }
 0x514   : > { %v2516_v33 = vadd.f32 %v3309_v35, %v2291_v2 }
 0x515   : > { %v2511_v24 = vadd.f32 %v3294_v22, %v2286_v16  ;;  %v2208_v48 = vpop.permute.xlu0 %2207 }
 0x516   : > { %2548 = vst [vmem:[#allocation4 + $0x38] sm:$0xff] %v2516_v33  ;;  %v2293_v18 = vmul.f32 %v2208_v48, %v2101_v5  ;;  %v2183_v51 = vpop.permute.xlu1 %2182  ;;  %v2111_v5 = vld [vmem:[#allocation4 + $0xa0] sm:$0xff] }
 0x517   : > { %2543 = vst [vmem:[#allocation4 + $0xb8] sm:$0xff] %v2511_v24  ;;  %v2288_v44 = vmul.f32 %v2183_v51, %v2096_v9 }
 0x518   : > { %v2518_v61 = vadd.f32 %v3315_v53, %v2293_v18 }
 0x519   : > { %v2513_v0 = vadd.f32 %v3300_v27, %v2288_v44  ;;  %v2218_v31 = vpop.permute.xlu0 %2217 }
 0x51a   : > { %2550 = vst [vmem:[#allocation4 + $0x40] sm:$0xff] %v2518_v61  ;;  %v2295_v32 = vmul.f32 %v2218_v31, %v2103_v43  ;;  %v2193_v7 = vpop.permute.xlu1 %2192  ;;  %v2113_v43 = vld [vmem:[#allocation4 + $0x20] sm:$0xff] }
 0x51b   : > { %2545 = vst [vmem:[#allocation4 + $0xf0] sm:$0xff] %v2513_v0  ;;  %v2290_v12 = vmul.f32 %v2193_v7, %v2098_v26  ;;  %v3336_v0 = vadd.f32 %v8468_v55, %v8462_v20 }
 0x51c   : > { %v2520_v45 = vadd.f32 %v3321_v50, %v2295_v32  ;;  %v2110_v32 = vld [vmem:[#allocation4 + $0x28] sm:$0xff] }
 0x51d   : > { %v2515_v49 = vadd.f32 %v3306_v13, %v2290_v12  ;;  %v2228_v14 = vpop.permute.xlu0 %2227  ;;  %v3342_v12 = vadd.f32 %v3341_v47, %v8482_v63 }
 0x51e   : > { %2552 = vst [vmem:[#allocation4 + $0xe0] sm:$0xff] %v2520_v45  ;;  %v2297_v21 = vmul.f32 %v2228_v14, %v2105_v25  ;;  %v2203_v56 = vpop.permute.xlu1 %2202 }
 0x51f   : > { %2547 = vst [vmem:[#allocation4 + $0x78] sm:$0xff] %v2515_v49  ;;  %v2292_v42 = vmul.f32 %v2203_v56, %v2100_v6  ;;  %v2112_v49 = vld [vmem:[#allocation4 + $0xf8] sm:$0xff] }
 0x520   : > { %v2522_v41 = vadd.f32 %v3327_v60, %v2297_v21  ;;  %v2114_v56 = vld [vmem:[#allocation4 + $0x98] sm:$0xff] }
 0x521   : > { %v2517_v29 = vadd.f32 %v3312_v15, %v2292_v42  ;;  %v3343_v34 = vpop.f32.mrf.mxu1  ;;  %v2238_v38 = vpop.permute.xlu0 %2237 }
 0x522   : > { %2554 = vst [vmem:[#allocation4 + $0x70] sm:$0xff] %v2522_v41  ;;  %v2299_v36 = vmul.f32 %v2238_v38, %v2107_v46  ;;  %v2213_v11 = vpop.permute.xlu1 %2212 }
 0x523   : > { %2549 = vst [vmem:[#allocation4 + $0x58] sm:$0xff] %v2517_v29  ;;  %v2294_v62 = vmul.f32 %v2213_v11, %v2102_v10  ;;  %v3344_v37 = vpop.f32.mrf.mxu1 }
 0x524   : > { %v2524_v30 = vadd.f32 %v3333_v8, %v2299_v36  ;;  %v3345_v48 = vadd.f32 %v3344_v37, %v3343_v34 }
 0x525   : > { %v2519_v35 = vadd.f32 %v3318_v4, %v2294_v62  ;;  %v2248_v2 = vpop.permute.xlu0 %2247  ;;  %v3346_v33 = vpop.f32.mrf.mxu1 }
 0x526   : > { %2556 = vst [vmem:[#allocation4 + $0xa8] sm:$0xff] %v2524_v30  ;;  %v2301_v22 = vmul.f32 %v2248_v2, %v2109_v3  ;;  %v2223_v16 = vpop.permute.xlu1 %2222 }
 0x527   : > { %2551 = vst [vmem:[#allocation4 + $0xc8] sm:$0xff] %v2519_v35  ;;  %v2296_v1 = vmul.f32 %v2223_v16, %v2104_v17  ;;  %v3347_v27 = vpop.f32.mrf.mxu1 }
 0x528   : > { %v2526_v52 = vadd.f32 %v3339_v28, %v2301_v22  ;;  %v3348_v21 = vadd.f32 %v3347_v27, %v3346_v33 }
 0x529   : > { %v2521_v9 = vadd.f32 %v3324_v39, %v2296_v1  ;;  %v2258_v24 = vpop.permute.xlu0 %2257 }
 0x52a   : > { %2558 = vst [vmem:[#allocation4 + $0x10] sm:$0xff] %v2526_v52  ;;  %v2303_v53 = vmul.f32 %v2258_v24, %v2111_v5  ;;  %v2233_v18 = vpop.permute.xlu1 %2232 }
 0x52b   : > { %2553 = vst [vmem:[#allocation4 + $0x90] sm:$0xff] %v2521_v9  ;;  %v2298_v51 = vmul.f32 %v2233_v18, %v2106_v58 }
 0x52c   : > { %v2528_v54 = vadd.f32 %v3345_v48, %v2303_v53 }
 0x52d   : > { %v2523_v23 = vadd.f32 %v3330_v59, %v2298_v51  ;;  %v2268_v44 = vpop.permute.xlu0 %2267 }
 0x52e   : > { %2560 = vst [vmem:[#allocation4 + $0xa0] sm:$0xff] %v2528_v54  ;;  %v3349_v61 = vpop.f32.mrf.mxu1  ;;  %v2243_v26 = vpop.permute.xlu1 %2242  ;;  %v2305_v7 = vmul.f32 %v2268_v44, %v2113_v43 }
 0x52f   : > { %2555 = vst [vmem:[#allocation4 + $0xc0] sm:$0xff] %v2523_v23  ;;  %v2300_v31 = vmul.f32 %v2243_v26, %v2108_v19 }
 0x530   : > { %v3350_v50 = vpop.f32.mrf.mxu1 }
 0x531   : > { %v2525_v57 = vadd.f32 %v3336_v0, %v2300_v31  ;;  %v3351_v40 = vadd.f32 %v3350_v50, %v3349_v61 }
 0x532   : > { %v2253_v13 = vpop.permute.xlu1 %2252  ;;  %v3352_v6 = vpop.f32.mrf.mxu1 }
 0x533   : > { %2557 = vst [vmem:[#allocation4 + $0xd0] sm:$0xff] %v2525_v57  ;;  %v2530_v25 = vadd.f32 %v3351_v40, %v2305_v7  ;;  %v2302_v45 = vmul.f32 %v2253_v13, %v2110_v32 }
 0x534   : > { %v3353_v55 = vpop.f32.mrf.mxu1 }
 0x535   : > { %2562 = vst [vmem:[#allocation4 + $0x20] sm:$0xff] %v2530_v25  ;;  %v2527_v14 = vadd.f32 %v3342_v12, %v2302_v45  ;;  %v3354_v46 = vadd.f32 %v3353_v55, %v3352_v6 }
 0x536   : > { %v2263_v60 = vpop.permute.xlu1 %2262 }
 0x537   : > { %2559 = vst [vmem:[#allocation4 + $0x28] sm:$0xff] %v2527_v14  ;;  %v2304_v20 = vmul.f32 %v2263_v60, %v2112_v49 }
 0x539   : > { %v2529_v15 = vadd.f32 %v3348_v21, %v2304_v20 }
 0x53a   : > { %v2273_v42 = vpop.permute.xlu1 %2272 }
 0x53b   : > { %2561 = vst [vmem:[#allocation4 + $0xf8] sm:$0xff] %v2529_v15  ;;  %v2306_v41 = vmul.f32 %v2273_v42, %v2114_v56  ;;  %2598 = sbr.rel (%p3172_p2) target bundleno = 1553 (0x611), region = 52 }
 0x53d   : > { %v2531_v10 = vadd.f32 %v3354_v46, %v2306_v41 }
 0x53f   : > { %2563 = vst [vmem:[#allocation4 + $0x98] sm:$0xff] %v2531_v10 }
 0x540   : > { %v2601_v63 = vld [vmem:[#allocation3 + $0x10] sm:$0xff]  ;;  %v2599_v47 = vld [vmem:[#allocation3] sm:$0xff]  ;;  %v2602_v29 = vld [vmem:[#allocation3 + $0x18] sm:$0xff]  ;;  %v5392_v34 = vmov 0  }
 0x541   : > { %4586 = vset.pattern.permute.xlu1 %v5392_v34  ;;  %4585 = vset.pattern.permute.xlu0 %v5392_v34  ;;  %4587 = vrcp.f32 %v2601_v63  ;;  %v2600_v38 = vld [vmem:[#allocation3 + $0x8] sm:$0xff]  ;;  %v2603_v36 = vld [vmem:[#allocation3 + $0x20] sm:$0xff]  ;;  %v2606_v11 = vld [vmem:[#allocation3 + $0x38] sm:$0xff] }
 0x542   : > { %4589 = vrcp.f32 %v2599_v47  ;;  %v2604_v8 = vld [vmem:[#allocation3 + $0x28] sm:$0xff]  ;;  %v2605_v4 = vld [vmem:[#allocation3 + $0x30] sm:$0xff]  ;;  %v2607_v3 = vld [vmem:[#allocation3 + $0x40] sm:$0xff] }
 0x543   : > { %4591 = vrcp.f32 %v2602_v29  ;;  %v2608_v62 = vld [vmem:[#allocation3 + $0x48] sm:$0xff]  ;;  %v2610_v30 = vld [vmem:[#allocation3 + $0x58] sm:$0xff]  ;;  %v8501_v37 = vld [vmem:[#allocation3 + $0x50] sm:$0xff] }
 0x544   : > { %4593 = vrcp.f32 %v2600_v38  ;;  %v8504_v35 = vld [vmem:[#allocation3 + $0x68] sm:$0xff]  ;;  %v8506_v22 = vld [vmem:[#allocation3 + $0x60] sm:$0xff]  ;;  %v8510_v24 = vld [vmem:[#allocation3 + $0x78] sm:$0xff] }
 0x545   : > { %4595 = vrcp.f32 %v2604_v8  ;;  %v8512_v51 = vld [vmem:[#allocation3 + $0x70] sm:$0xff]  ;;  %v2616_v7 = vld [vmem:[#allocation3 + $0x88] sm:$0xff]  ;;  %v8516_v40 = vld [vmem:[#allocation3 + $0x80] sm:$0xff] }
 0x546   : > { %4597 = vrcp.f32 %v2603_v36  ;;  %v2618_v60 = vld [vmem:[#allocation3 + $0x98] sm:$0xff]  ;;  %v8519_v20 = vld [vmem:[#allocation3 + $0x90] sm:$0xff] }
 0x547   : > { %4599 = vrcp.f32 %v2606_v11 }
 0x548   : > { %4601 = vrcp.f32 %v2605_v4 }
 0x549   : > { %4603 = vrcp.f32 %v2608_v62 }
 0x54a   : > { %4605 = vrcp.f32 %v2607_v3 }
 0x54b   : > { %4607 = vrcp.f32 %v2610_v30 }
 0x54c   : > { %4609 = vrcp.f32 %v8501_v37 }
 0x54d   : > { %4611 = vrcp.f32 %v8504_v35 }
 0x54e   : > { %v4588_v17 = vpop.eup %4587  ;;  %4613 = vrcp.f32 %v8506_v22 }
 0x54f   : > { %v4590_v2 = vpop.eup %4589  ;;  %v2665_v28 = vmul.f32 %v4588_v17, %v2601_v63  ;;  %4615 = vrcp.f32 %v8510_v24  ;;  %v2620_v63 = vld [vmem:[#allocation3 + $0xa8] sm:$0xff] }
 0x550   : > { %v4592_v16 = vpop.eup %4591  ;;  %v2663_v39 = vmul.f32 %v4590_v2, %v2599_v47  ;;  %4617 = vrcp.f32 %v8512_v51 }
 0x551   : > { %v4594_v1 = vpop.eup %4593  ;;  %v2697_v5 = vsub.f32 2.0, %v2665_v28  ;;  %v2666_v33 = vmul.f32 %v4592_v16, %v2602_v29  ;;  %4619 = vrcp.f32 %v2616_v7  ;;  %v8523_v29 = vld [vmem:[#allocation3 + $0xa0] sm:$0xff] }
 0x552   : > { %v4596_v52 = vpop.eup %4595  ;;  %v2695_v58 = vsub.f32 2.0, %v2663_v39  ;;  %v2664_v9 = vmul.f32 %v4594_v1, %v2600_v38  ;;  %4621 = vrcp.f32 %v8516_v40 }
 0x553   : > { %v4598_v48 = vpop.eup %4597  ;;  %v2729_v53 = vmul.f32 %v4588_v17, %v2697_v5  ;;  %v2698_v18 = vsub.f32 2.0, %v2666_v33  ;;  %v2668_v59 = vmul.f32 %v4596_v52, %v2604_v8  ;;  %4623 = vrcp.f32 %v2618_v60  ;;  %v8533_v33 = vld [vmem:[#allocation3 + $0xc0] sm:$0xff] }
 0x554   : > { %v4600_v27 = vpop.eup %4599  ;;  %v2727_v54 = vmul.f32 %v4590_v2, %v2695_v58  ;;  %v2696_v19 = vsub.f32 2.0, %v2664_v9  ;;  %v2667_v23 = vmul.f32 %v4598_v48, %v2603_v36  ;;  %4625 = vrcp.f32 %v8519_v20 }
 0x555   : > { %v4602_v44 = vpop.eup %4601  ;;  %2803 = vperm.xlu1 %4586, %v2729_v53   ;;  %v2730_v43 = vmul.f32 %v4592_v16, %v2698_v18  ;;  %v2700_v61 = vsub.f32 2.0, %v2668_v59  ;;  %v2670_v26 = vmul.f32 %v4600_v27, %v2606_v11  ;;  %4627 = vrcp.f32 %v2620_v63  ;;  %v2626_v59 = vld [vmem:[#allocation3 + $0xd8] sm:$0xff] }
 0x556   : > { %v4604_v0 = vpop.eup %4603  ;;  %2793 = vperm.xlu0 %4585, %v2727_v54   ;;  %v2728_v31 = vmul.f32 %v4594_v1, %v2696_v19  ;;  %v2699_v50 = vsub.f32 2.0, %v2667_v23  ;;  %v2669_v32 = vmul.f32 %v4602_v44, %v2605_v4  ;;  %4629 = vrcp.f32 %v8523_v29 }
 0x557   : > { %v4606_v57 = vpop.eup %4605  ;;  %v2732_v13 = vmul.f32 %v4596_v52, %v2700_v61  ;;  %v2702_v12 = vsub.f32 2.0, %v2670_v26  ;;  %v2672_v25 = vmul.f32 %v4604_v0, %v2608_v62 }
 0x558   : > { %v4608_v45 = vpop.eup %4607  ;;  %v2731_v6 = vmul.f32 %v4598_v48, %v2699_v50  ;;  %v2701_v49 = vsub.f32 2.0, %v2669_v32  ;;  %v2671_v14 = vmul.f32 %v4606_v57, %v2607_v3  ;;  %v2622_v3 = vld [vmem:[#allocation3 + $0xb8] sm:$0xff]  ;;  %v2627_v50 = vld [vmem:[#allocation3 + $0xe0] sm:$0xff] }
 0x559   : > { %2808 = vperm.xlu1 %4586, %v2730_v43   ;;  %v4610_v21 = vpop.eup %4609  ;;  %v2734_v55 = vmul.f32 %v4600_v27, %v2702_v12  ;;  %v2704_v56 = vsub.f32 2.0, %v2672_v25  ;;  %v2674_v15 = vmul.f32 %v4608_v45, %v2610_v30  ;;  %4631 = vrcp.f32 %v2622_v3  ;;  %v2625_v27 = vld [vmem:[#allocation3 + $0xd0] sm:$0xff] }
 0x55a   : > { %2798 = vperm.xlu0 %4585, %v2728_v31   ;;  %v4612_v42 = vpop.eup %4611  ;;  %v2733_v46 = vmul.f32 %v4602_v44, %v2701_v49  ;;  %v2703_v41 = vsub.f32 2.0, %v2671_v14  ;;  %v2673_v10 = vmul.f32 %v4610_v21, %v8501_v37  ;;  %v8528_v37 = vld [vmem:[#allocation3 + $0xb0] sm:$0xff] }
 0x55b   : > { %v4614_v47 = vpop.eup %4613  ;;  %v2736_v34 = vmul.f32 %v4604_v0, %v2704_v56  ;;  %v2706_v38 = vsub.f32 2.0, %v2674_v15  ;;  %v2676_v8 = vmul.f32 %v4612_v42, %v8504_v35  ;;  %4633 = vrcp.f32 %v8528_v37  ;;  %v2628_v0 = vld [vmem:[#allocation3 + $0xe8] sm:$0xff]  ;;  %v2629_v49 = vld [vmem:[#allocation3 + $0xf0] sm:$0xff] }
 0x55c   : > { %v4616_v36 = vpop.eup %4615  ;;  %v2735_v11 = vmul.f32 %v4606_v57, %v2703_v41  ;;  %v2705_v4 = vsub.f32 2.0, %v2673_v10  ;;  %v2675_v62 = vmul.f32 %v4614_v47, %v8506_v22  ;;  %v2624_v22 = vld [vmem:[#allocation3 + $0xc8] sm:$0xff] }
 0x55d   : > { %2818 = vperm.xlu1 %4586, %v2732_v13   ;;  %v4618_v30 = vpop.eup %4617  ;;  %v2738_v17 = vmul.f32 %v4608_v45, %v2706_v38  ;;  %v2708_v2 = vsub.f32 2.0, %v2676_v8  ;;  %v2678_v28 = vmul.f32 %v4616_v36, %v8510_v24  ;;  %4635 = vrcp.f32 %v2624_v22  ;;  %v2630_v45 = vld [vmem:[#allocation3 + $0xf8] sm:$0xff] }
 0x55e   : > { %2813 = vperm.xlu0 %4585, %v2731_v6   ;;  %v4620_v35 = vpop.eup %4619  ;;  %v2737_v16 = vmul.f32 %v4610_v21, %v2705_v4  ;;  %v2707_v39 = vsub.f32 2.0, %v2675_v62  ;;  %v2677_v1 = vmul.f32 %v4618_v30, %v8512_v51  ;;  %4637 = vrcp.f32 %v8533_v33 }
 0x55f   : > { %v4622_v5 = vpop.eup %4621  ;;  %v2740_v52 = vmul.f32 %v4612_v42, %v2708_v2  ;;  %v2710_v58 = vsub.f32 2.0, %v2678_v28  ;;  %v2680_v9 = vmul.f32 %v4620_v35, %v2616_v7  ;;  %4639 = vrcp.f32 %v2626_v59 }
 0x560   : > { %v4624_v48 = vpop.eup %4623  ;;  %v2739_v24 = vmul.f32 %v4614_v47, %v2707_v39  ;;  %v2709_v53 = vsub.f32 2.0, %v2677_v1  ;;  %v2679_v18 = vmul.f32 %v4622_v5, %v8516_v40  ;;  %4641 = vrcp.f32 %v2625_v27 }
 0x561   : > { %2828 = vperm.xlu1 %4586, %v2734_v55   ;;  %v4626_v51 = vpop.eup %4625  ;;  %v2742_v54 = vmul.f32 %v4616_v36, %v2710_v58  ;;  %v2712_v19 = vsub.f32 2.0, %v2680_v9  ;;  %v2682_v23 = vmul.f32 %v4624_v48, %v2618_v60  ;;  %4643 = vrcp.f32 %v2628_v0 }
 0x562   : > { %2823 = vperm.xlu0 %4585, %v2733_v46   ;;  %v4628_v44 = vpop.eup %4627  ;;  %v2741_v43 = vmul.f32 %v4618_v30, %v2709_v53  ;;  %v2711_v61 = vsub.f32 2.0, %v2679_v18  ;;  %v2681_v26 = vmul.f32 %v4626_v51, %v8519_v20  ;;  %4645 = vrcp.f32 %v2627_v50 }
 0x563   : > { %v4630_v31 = vpop.eup %4629  ;;  %v2744_v32 = vmul.f32 %v4620_v35, %v2712_v19  ;;  %v2714_v7 = vsub.f32 2.0, %v2682_v23  ;;  %v2684_v57 = vmul.f32 %v4628_v44, %v2620_v63  ;;  %4647 = vrcp.f32 %v2630_v45  ;;  %v2759_v19 = vld [vmem:[#allocation4 + $0xb0] sm:$0xff] }
 0x564   : > { %v2743_v13 = vmul.f32 %v4622_v5, %v2711_v61  ;;  %v2713_v12 = vsub.f32 2.0, %v2681_v26  ;;  %v2683_v25 = vmul.f32 %v4630_v31, %v8523_v29  ;;  %4649 = vrcp.f32 %v2629_v49  ;;  %v2762_v26 = vld [vmem:[#allocation4 + $0x18] sm:$0xff] }
 0x565   : > { %2838 = vperm.xlu1 %4586, %v2736_v34   ;;  %v2746_v14 = vmul.f32 %v4624_v48, %v2714_v7  ;;  %v2716_v60 = vsub.f32 2.0, %v2684_v57  ;;  %v2764_v57 = vld [vmem:[#allocation4 + $0x68] sm:$0xff] }
 0x566   : > { %2833 = vperm.xlu0 %4585, %v2735_v11   ;;  %v4632_v40 = vpop.eup %4631  ;;  %v2745_v55 = vmul.f32 %v4626_v51, %v2713_v12  ;;  %v2715_v56 = vsub.f32 2.0, %v2683_v25 }
 0x567   : > { %v2686_v21 = vmul.f32 %v4632_v40, %v2622_v3  ;;  %v2748_v46 = vmul.f32 %v4628_v44, %v2716_v60 }
 0x568   : > { %v4634_v6 = vpop.eup %4633  ;;  %v2747_v47 = vmul.f32 %v4630_v31, %v2715_v56  ;;  %v2767_v56 = vld [vmem:[#allocation4 + $0x80] sm:$0xff] }
 0x569   : > { %2848 = vperm.xlu1 %4586, %v2738_v17   ;;  %v2685_v15 = vmul.f32 %v4634_v6, %v8528_v37  ;;  %v2718_v41 = vsub.f32 2.0, %v2686_v21 }
 0x56a   : > { %2843 = vperm.xlu0 %4585, %v2737_v16   ;;  %v4636_v20 = vpop.eup %4635 }
 0x56b   : > { %v4638_v42 = vpop.eup %4637  ;;  %v2688_v10 = vmul.f32 %v4636_v20, %v2624_v22  ;;  %v2717_v29 = vsub.f32 2.0, %v2685_v15  ;;  %v2750_v8 = vmul.f32 %v4632_v40, %v2718_v41  ;;  %v2763_v40 = vld [vmem:[#allocation4 + $0x50] sm:$0xff] }
 0x56c   : > { %v4640_v63 = vpop.eup %4639  ;;  %v2687_v34 = vmul.f32 %v4638_v42, %v8533_v33 }
 0x56d   : > { %2858 = vperm.xlu1 %4586, %v2740_v52   ;;  %v4642_v38 = vpop.eup %4641  ;;  %v2720_v36 = vsub.f32 2.0, %v2688_v10  ;;  %v2690_v11 = vmul.f32 %v4640_v63, %v2626_v59  ;;  %v2749_v62 = vmul.f32 %v4634_v6, %v2717_v29  ;;  %v2766_v6 = vld [vmem:[#allocation4 + $0x48] sm:$0xff]  ;;  %v2770_v10 = vld [vmem:[#allocation4 + $0xb8] sm:$0xff] }
 0x56e   : > { %2853 = vperm.xlu0 %4585, %v2739_v24   ;;  %v4644_v4 = vpop.eup %4643  ;;  %v2719_v3 = vsub.f32 2.0, %v2687_v34  ;;  %v2689_v30 = vmul.f32 %v4642_v38, %v2625_v27 }
 0x56f   : > { %v4646_v37 = vpop.eup %4645  ;;  %v2752_v17 = vmul.f32 %v4636_v20, %v2720_v36  ;;  %v2722_v2 = vsub.f32 2.0, %v2690_v11  ;;  %v2692_v28 = vmul.f32 %v4644_v4, %v2628_v0  ;;  %v2760_v0 = vld [vmem:[#allocation4] sm:$0xff] }
 0x570   : > { %v4648_v35 = vpop.eup %4647  ;;  %v2751_v16 = vmul.f32 %v4638_v42, %v2719_v3  ;;  %v2721_v39 = vsub.f32 2.0, %v2689_v30  ;;  %v2691_v1 = vmul.f32 %v4646_v37, %v2627_v50  ;;  %v2771_v36 = vld [vmem:[#allocation4 + $0x60] sm:$0xff]  ;;  %v2774_v30 = vld [vmem:[#allocation4 + $0x78] sm:$0xff] }
 0x571   : > { %2868 = vperm.xlu1 %4586, %v2742_v54   ;;  %v4650_v22 = vpop.eup %4649  ;;  %v2754_v5 = vmul.f32 %v4640_v63, %v2722_v2  ;;  %v2724_v33 = vsub.f32 2.0, %v2692_v28  ;;  %v2694_v52 = vmul.f32 %v4648_v35, %v2630_v45  ;;  %v2761_v54 = vld [vmem:[#allocation4 + $0xd8] sm:$0xff]  ;;  %v2769_v63 = vld [vmem:[#allocation4 + $0xe8] sm:$0xff] }
 0x572   : > { %2863 = vperm.xlu0 %4585, %v2741_v43   ;;  %v2753_v58 = vmul.f32 %v4642_v38, %v2721_v39  ;;  %v2723_v9 = vsub.f32 2.0, %v2691_v1  ;;  %v2693_v48 = vmul.f32 %v4650_v22, %v2629_v49  ;;  %v2765_v49 = vld [vmem:[#allocation4 + $0x30] sm:$0xff]  ;;  %v2775_v39 = vld [vmem:[#allocation4 + $0x38] sm:$0xff] }
 0x573   : > { %v2756_v24 = vmul.f32 %v4644_v4, %v2724_v33  ;;  %v2726_v53 = vsub.f32 2.0, %v2694_v52  ;;  %v2778_v52 = vld [vmem:[#allocation4 + $0xc8] sm:$0xff] }
 0x574   : > { %v2755_v18 = vmul.f32 %v4646_v37, %v2723_v9  ;;  %v2725_v59 = vsub.f32 2.0, %v2693_v48  ;;  %v2773_v37 = vld [vmem:[#allocation4 + $0x8] sm:$0xff] }
 0x575   : > { %2878 = vperm.xlu1 %4586, %v2744_v32   ;;  %v2758_v51 = vmul.f32 %v4648_v35, %v2726_v53 }
 0x576   : > { %2873 = vperm.xlu0 %4585, %v2743_v13   ;;  %v2757_v27 = vmul.f32 %v4650_v22, %v2725_v59  ;;  %v2779_v59 = vld [vmem:[#allocation4 + $0xe0] sm:$0xff] }
 0x579   : > { %2888 = vperm.xlu1 %4586, %v2746_v14  }
 0x57a   : > { %2883 = vperm.xlu0 %4585, %v2745_v55   ;;  %v2768_v55 = vld [vmem:[#allocation4 + $0x88] sm:$0xff] }
 0x57d   : > { %2898 = vperm.xlu1 %4586, %v2748_v46  }
 0x57e   : > { %2893 = vperm.xlu0 %4585, %v2747_v47  }
 0x581   : > { %2908 = vperm.xlu1 %4586, %v2750_v8   ;;  %v2772_v8 = vld [vmem:[#allocation4 + $0xf0] sm:$0xff] }
 0x582   : > { %2903 = vperm.xlu0 %4585, %v2749_v62  }
 0x585   : > { %2918 = vperm.xlu1 %4586, %v2752_v17  }
 0x586   : > { %2913 = vperm.xlu0 %4585, %v2751_v16   ;;  %v2776_v16 = vld [vmem:[#allocation4 + $0x58] sm:$0xff] }
 0x589   : > { %2928 = vperm.xlu1 %4586, %v2754_v5  }
 0x58a   : > { %2923 = vperm.xlu0 %4585, %v2753_v58   ;;  %v2777_v58 = vld [vmem:[#allocation4 + $0x40] sm:$0xff] }
 0x58d   : > { %2938 = vperm.xlu1 %4586, %v2756_v24  }
 0x58e   : > { %2933 = vperm.xlu0 %4585, %v2755_v18   ;;  %v2780_v18 = vld [vmem:[#allocation4 + $0x90] sm:$0xff] }
 0x591   : > { %2948 = vperm.xlu1 %4586, %v2758_v51  }
 0x592   : > { %2943 = vperm.xlu0 %4585, %v2757_v27  }
 0x5d0   : > { %v2804_v23 = vpop.permute.xlu1 %2803 }
 0x5d1   : > { %v2953_v44 = vmul.f32 %v2804_v23, %v2761_v54  ;;  %v2794_v43 = vpop.permute.xlu0 %2793  ;;  %v2782_v23 = vld [vmem:[#allocation4 + $0xc0] sm:$0xff] }
 0x5d2   : > { %v2951_v61 = vmul.f32 %v2794_v43, %v2759_v19 }
 0x5d3   : > { %2985 = vst [vmem:[%s5533_s24 + $0x10] sm:$0xff] %v2953_v44  ;;  %v2781_v44 = vld [vmem:[#allocation4 + $0x70] sm:$0xff] }
 0x5d4   : > { %2983 = vst [vmem:[%s5533_s24] sm:$0xff] %v2951_v61  ;;  %v2809_v31 = vpop.permute.xlu1 %2808 }
 0x5d5   : > { %v2954_v50 = vmul.f32 %v2809_v31, %v2762_v26  ;;  %v2799_v32 = vpop.permute.xlu0 %2798  ;;  %v2784_v31 = vld [vmem:[#allocation4 + $0xd0] sm:$0xff] }
 0x5d6   : > { %v2952_v7 = vmul.f32 %v2799_v32, %v2760_v0 }
 0x5d7   : > { %2986 = vst [vmem:[%s5533_s24 + $0x18] sm:$0xff] %v2954_v50  ;;  %v2783_v50 = vld [vmem:[#allocation4 + $0xa8] sm:$0xff] }
 0x5d8   : > { %2984 = vst [vmem:[%s5533_s24 + $0x8] sm:$0xff] %v2952_v7  ;;  %v2819_v13 = vpop.permute.xlu1 %2818 }
 0x5d9   : > { %v2956_v12 = vmul.f32 %v2819_v13, %v2764_v57  ;;  %v2814_v25 = vpop.permute.xlu0 %2813  ;;  %v2786_v13 = vld [vmem:[#allocation4 + $0x28] sm:$0xff] }
 0x5da   : > { %v2955_v45 = vmul.f32 %v2814_v25, %v2763_v40 }
 0x5db   : > { %2988 = vst [vmem:[%s5533_s24 + $0x28] sm:$0xff] %v2956_v12  ;;  %v2785_v12 = vld [vmem:[#allocation4 + $0x10] sm:$0xff] }
 0x5dc   : > { %2987 = vst [vmem:[%s5533_s24 + $0x20] sm:$0xff] %v2955_v45  ;;  %v2829_v14 = vpop.permute.xlu1 %2828 }
 0x5dd   : > { %v2958_v60 = vmul.f32 %v2829_v14, %v2766_v6  ;;  %v2824_v21 = vpop.permute.xlu0 %2823  ;;  %v2788_v14 = vld [vmem:[#allocation4 + $0xf8] sm:$0xff] }
 0x5de   : > { %v2957_v20 = vmul.f32 %v2824_v21, %v2765_v49 }
 0x5df   : > { %2990 = vst [vmem:[%s5533_s24 + $0x38] sm:$0xff] %v2958_v60  ;;  %v2787_v60 = vld [vmem:[#allocation4 + $0xa0] sm:$0xff] }
 0x5e0   : > { %2989 = vst [vmem:[%s5533_s24 + $0x30] sm:$0xff] %v2957_v20  ;;  %v2839_v15 = vpop.permute.xlu1 %2838 }
 0x5e1   : > { %v2960_v42 = vmul.f32 %v2839_v15, %v2768_v55  ;;  %v2834_v46 = vpop.permute.xlu0 %2833  ;;  %v2790_v15 = vld [vmem:[#allocation4 + $0x98] sm:$0xff] }
 0x5e2   : > { %v2959_v41 = vmul.f32 %v2834_v46, %v2767_v56 }
 0x5e3   : > { %2992 = vst [vmem:[%s5533_s24 + $0x48] sm:$0xff] %v2960_v42  ;;  %v2789_v42 = vld [vmem:[#allocation4 + $0x20] sm:$0xff] }
 0x5e4   : > { %2991 = vst [vmem:[%s5533_s24 + $0x40] sm:$0xff] %v2959_v41  ;;  %v2849_v47 = vpop.permute.xlu1 %2848 }
 0x5e5   : > { %v2962_v29 = vmul.f32 %v2849_v47, %v2770_v10  ;;  %v2844_v34 = vpop.permute.xlu0 %2843 }
 0x5e6   : > { %v2961_v38 = vmul.f32 %v2844_v34, %v2769_v63 }
 0x5e7   : > { %2994 = vst [vmem:[%s5533_s24 + $0x58] sm:$0xff] %v2962_v29 }
 0x5e8   : > { %2993 = vst [vmem:[%s5533_s24 + $0x50] sm:$0xff] %v2961_v38  ;;  %v2859_v11 = vpop.permute.xlu1 %2858 }
 0x5e9   : > { %v2964_v4 = vmul.f32 %v2859_v11, %v2772_v8  ;;  %v2854_v62 = vpop.permute.xlu0 %2853 }
 0x5ea   : > { %v2963_v3 = vmul.f32 %v2854_v62, %v2771_v36 }
 0x5eb   : > { %2996 = vst [vmem:[%s5533_s24 + $0x68] sm:$0xff] %v2964_v4 }
 0x5ec   : > { %2995 = vst [vmem:[%s5533_s24 + $0x60] sm:$0xff] %v2963_v3  ;;  %v2869_v17 = vpop.permute.xlu1 %2868 }
 0x5ed   : > { %v2966_v2 = vmul.f32 %v2869_v17, %v2774_v30  ;;  %v2864_v28 = vpop.permute.xlu0 %2863 }
 0x5ee   : > { %v2965_v35 = vmul.f32 %v2864_v28, %v2773_v37 }
 0x5ef   : > { %2998 = vst [vmem:[%s5533_s24 + $0x78] sm:$0xff] %v2966_v2 }
 0x5f0   : > { %2997 = vst [vmem:[%s5533_s24 + $0x70] sm:$0xff] %v2965_v35  ;;  %v2879_v1 = vpop.permute.xlu1 %2878 }
 0x5f1   : > { %v2968_v22 = vmul.f32 %v2879_v1, %v2776_v16  ;;  %v2874_v5 = vpop.permute.xlu0 %2873 }
 0x5f2   : > { %v2967_v33 = vmul.f32 %v2874_v5, %v2775_v39 }
 0x5f3   : > { %3000 = vst [vmem:[%s5533_s24 + $0x88] sm:$0xff] %v2968_v22 }
 0x5f4   : > { %2999 = vst [vmem:[%s5533_s24 + $0x80] sm:$0xff] %v2967_v33  ;;  %v2889_v9 = vpop.permute.xlu1 %2888 }
 0x5f5   : > { %v2970_v48 = vmul.f32 %v2889_v9, %v2778_v52  ;;  %v2884_v24 = vpop.permute.xlu0 %2883 }
 0x5f6   : > { %v2969_v53 = vmul.f32 %v2884_v24, %v2777_v58 }
 0x5f7   : > { %3002 = vst [vmem:[%s5533_s24 + $0x98] sm:$0xff] %v2970_v48 }
 0x5f8   : > { %3001 = vst [vmem:[%s5533_s24 + $0x90] sm:$0xff] %v2969_v53  ;;  %v2899_v51 = vpop.permute.xlu1 %2898 }
 0x5f9   : > { %v2972_v27 = vmul.f32 %v2899_v51, %v2780_v18  ;;  %v2894_v54 = vpop.permute.xlu0 %2893 }
 0x5fa   : > { %v2971_v19 = vmul.f32 %v2894_v54, %v2779_v59 }
 0x5fb   : > { %3004 = vst [vmem:[%s5533_s24 + $0xa8] sm:$0xff] %v2972_v27 }
 0x5fc   : > { %3003 = vst [vmem:[%s5533_s24 + $0xa0] sm:$0xff] %v2971_v19  ;;  %v2909_v43 = vpop.permute.xlu1 %2908 }
 0x5fd   : > { %v2974_v61 = vmul.f32 %v2909_v43, %v2782_v23  ;;  %v2904_v26 = vpop.permute.xlu0 %2903 }
 0x5fe   : > { %v2973_v0 = vmul.f32 %v2904_v26, %v2781_v44 }
 0x5ff   : > { %3006 = vst [vmem:[%s5533_s24 + $0xb8] sm:$0xff] %v2974_v61 }
 0x600   : > { %3005 = vst [vmem:[%s5533_s24 + $0xb0] sm:$0xff] %v2973_v0  ;;  %v2919_v32 = vpop.permute.xlu1 %2918 }
 0x601   : > { %v2976_v7 = vmul.f32 %v2919_v32, %v2784_v31  ;;  %v2914_v57 = vpop.permute.xlu0 %2913 }
 0x602   : > { %v2975_v40 = vmul.f32 %v2914_v57, %v2783_v50 }
 0x603   : > { %3008 = vst [vmem:[%s5533_s24 + $0xc8] sm:$0xff] %v2976_v7 }
 0x604   : > { %3007 = vst [vmem:[%s5533_s24 + $0xc0] sm:$0xff] %v2975_v40  ;;  %v2929_v25 = vpop.permute.xlu1 %2928 }
 0x605   : > { %v2978_v45 = vmul.f32 %v2929_v25, %v2786_v13  ;;  %v2924_v6 = vpop.permute.xlu0 %2923 }
 0x606   : > { %v2977_v49 = vmul.f32 %v2924_v6, %v2785_v12 }
 0x607   : > { %3010 = vst [vmem:[%s5533_s24 + $0xd8] sm:$0xff] %v2978_v45 }
 0x608   : > { %3009 = vst [vmem:[%s5533_s24 + $0xd0] sm:$0xff] %v2977_v49  ;;  %v2939_v21 = vpop.permute.xlu1 %2938 }
 0x609   : > { %v2980_v20 = vmul.f32 %v2939_v21, %v2788_v14  ;;  %v2934_v55 = vpop.permute.xlu0 %2933 }
 0x60a   : > { %v2979_v56 = vmul.f32 %v2934_v55, %v2787_v60 }
 0x60b   : > { %3012 = vst [vmem:[%s5533_s24 + $0xe8] sm:$0xff] %v2980_v20 }
 0x60c   : > { %3011 = vst [vmem:[%s5533_s24 + $0xe0] sm:$0xff] %v2979_v56  ;;  %v2949_v46 = vpop.permute.xlu1 %2948 }
 0x60d   : > { %v2982_v41 = vmul.f32 %v2949_v46, %v2790_v15  ;;  %v2944_v10 = vpop.permute.xlu0 %2943 }
 0x60e   : > { %v2981_v63 = vmul.f32 %v2944_v10, %v2789_v42 }
 0x60f   : > { %3014 = vst [vmem:[%s5533_s24 + $0xf8] sm:$0xff] %v2982_v41 }
 0x610   : > { %3013 = vst [vmem:[%s5533_s24 + $0xf0] sm:$0xff] %v2981_v63 }
 0x611 PF: > { %s16_s19 = sadd.s32 1, %s5063_s19   ;;  %s9405_s12 = smov %s5039_s13 }
 0x612   : > { %p13_p3 = scmp.ge.s32.totalorder %s16_s19, 6   ;;  %s9406_s13 = smov %s5043_s14 }
 0x613   : > { %s9407_s14 = smov %s5473_s28  ;;  %s9408_s15 = smov %s5055_s17 }
 0x614   : > { %s9409_s16 = smov %s5059_s18  ;;  %s9410_s17 = smov %s9413_s20 }
 0x615   : > { %s9411_s18 = smov %s9417_s21  ;;  %15 = sbr.rel (!%p13_p3) target bundleno = 5 (0x5), region = 94 }
 0x61a   :  { %3045 = vsyncpa [#allocation6], 1 }
 0x61b   :  { %3047 = vsyncpa [#allocation6 + $0x1], 1 }

</bundles_post_ra>
